<compile_context>
chip_gen: v7x
topology: tpu7x:2x2x1
jax: 0.10.0
libtpu: 0.0.40
codegen_flags: <defaults>
</compile_context>

<pallas_src>
import math

import jax
import jax.numpy as jnp
from jax import lax
from jax.experimental import pallas as pl
from jax.experimental.pallas import tpu as pltpu

# ----------------------------- static config --------------------------------
C = 32                # in_chan
SIZE = 16             # H = W (matches pos_embedding_decoder size)
HW = SIZE * SIZE      # 256 lanes -> lane-dense
HW2 = 2 * HW          # feature1 | feature2 lane-stacked
TOKEN_LEN = 4
ENC_HEADS = 4
ENC_DH = 64
ENC_INNER = ENC_HEADS * ENC_DH       # 256
DEC_HEADS = 8
DEC_DH = 1                           # dim_head=True -> 1
DEC_INNER = DEC_HEADS * DEC_DH       # 8
MLP_ENC = 64                         # Transformer(mlp_dim=64)
MLP_DEC = 2 * C                      # TransformerDecoder(mlp_dim=in_chan*2)
SCALE = C ** -0.5                    # BIT/MSCANet use dim ** -0.5
EPS = 1e-5
BF = jnp.bfloat16


# ----------------------------- in-kernel helpers -----------------------------
def _ln(x, g, b):
    """LayerNorm over the last axis (row-major tokens)."""
    mu = jnp.mean(x, axis=-1, keepdims=True)
    xc = x - mu
    var = jnp.mean(xc * xc, axis=-1, keepdims=True)
    return xc * lax.rsqrt(var + EPS) * g + b


def _ln_ch(x, g, b):
    """LayerNorm over the channel axis (axis 0) of a channel-major (C, N) array."""
    mu = jnp.mean(x, axis=0, keepdims=True)
    xc = x - mu
    var = jnp.mean(xc * xc, axis=0, keepdims=True)
    return xc * lax.rsqrt(var + EPS) * g + b


def _softmax(x, axis=-1):
    m = jnp.max(x, axis=axis, keepdims=True)
    e = jnp.exp(x - m)
    return e * pl.reciprocal(jnp.sum(e, axis=axis, keepdims=True), approx=True)


def _gelu(x):
    # TODO(synk): PyTorch nn.GELU default is the exact erf form; tanh approximation
    # kept for guaranteed Mosaic lowering (differs at ~1e-3 level).
    c = math.sqrt(2.0 / math.pi)
    return 0.5 * x * (1.0 + jnp.tanh(c * (x + 0.044715 * x * x * x)))


def _mm(a, b):
    return jnp.dot(a, b, preferred_element_type=jnp.float32)


def _mmT(a, b):
    """Contract the last dims of both operands: (m,k) x (n,k) -> (m,n)."""
    return lax.dot_general(a, b, (((1,), (1,)), ((), ())),
                           preferred_element_type=jnp.float32)


# ----------------------------- fused kernel ----------------------------------
def fused_kernel(x12_ref,
                 vecs_ref, e_ba_ref, e_b1_ref, e_wqkv_ref, e_wo_ref, e_w1_ref, e_w2_ref,
                 d_pos2_ref, d_cvec_ref, d_b1_ref,
                 d_wqT_ref, d_wkvT_ref, d_woT_ref, d_w1T_ref, d_w2T_ref,
                 out_ref):
    bblk = x12_ref.shape[0]

    # ---- hoist parameter loads / tiny casts (constant across batch elements) ----
    vecs = vecs_ref[...]                       # (16, C) f32
    ln1_g, ln1_b = vecs[0:1], vecs[1:2]        # encoder attn PreNorm
    ln2_g, ln2_b = vecs[2:3], vecs[3:4]        # encoder FF PreNorm
    e_bo, e_b2 = vecs[4:5], vecs[5:6]          # encoder attn-out / FF-out biases
    lnm_g, lnm_b = vecs[6:7], vecs[7:8]        # decoder token-LN
    e_pos = vecs[8:12]                         # (L, C) encoder pos embedding
    e_wa_bf = vecs[12:16].astype(BF)           # (L, C) conv_a 1x1 weight

    e_ba = e_ba_ref[...]                       # (L, 1)
    e_b1 = e_b1_ref[...]                       # (1, MLP_ENC)
    e_wqkv = e_wqkv_ref[...]                   # (C, 3*ENC_INNER) bf16
    e_wo = e_wo_ref[...]                       # (ENC_INNER, C)   bf16
    e_w1 = e_w1_ref[...]                       # (C, MLP_ENC)     bf16
    e_w2 = e_w2_ref[...]                       # (MLP_ENC, C)     bf16

    d_pos2 = d_pos2_ref[...]                   # (C, HW2) f32 (pos tiled over both halves)
    dc = d_cvec_ref[...]                       # (6, C, 1) f32
    lnx_g, lnx_b = dc[0], dc[1]
    lnd2_g, lnd2_b = dc[2], dc[3]
    d_bo, d_b2 = dc[4], dc[5]
    d_b1 = d_b1_ref[...]                       # (MLP_DEC, 1)
    d_wqT = d_wqT_ref[...]                     # (DEC_INNER, C)    bf16
    d_wkvT = d_wkvT_ref[...]                   # (2*DEC_INNER, C)  bf16  [k rows ; v rows]
    d_woT = d_woT_ref[...]                     # (C, DEC_INNER)    bf16
    d_w1T = d_w1T_ref[...]                     # (MLP_DEC, C)      bf16
    d_w2T = d_w2T_ref[...]                     # (C, MLP_DEC)      bf16

    # lane mask: first HW lanes = feature1, last HW lanes = feature2
    half1 = lax.broadcasted_iota(jnp.int32, (DEC_INNER, HW2), 1) < HW

    def encode_pair(x12_bf):
        """token_encoder on both features at once. x12_bf: (C, HW2) bf16 -> two (L, C)."""
        # conv_a (1x1) + per-feature spatial softmax + token pooling
        att = _mm(e_wa_bf, x12_bf) + e_ba                       # (L, HW2)
        att1 = _softmax(att[:, :HW], -1).astype(BF)
        att2 = _softmax(att[:, HW:], -1).astype(BF)
        tok1 = _mmT(att1, x12_bf[:, :HW]) + e_pos               # (L, C)
        tok2 = _mmT(att2, x12_bf[:, HW:]) + e_pos
        tok = jnp.concatenate([tok1, tok2], axis=0)             # (2L, C), rows 0:L = f1

        # --- Transformer layer (depth=1): PreNorm attention + residual ---
        y = _ln(tok, ln1_g, ln1_b).astype(BF)
        qkv = _mm(y, e_wqkv)                                    # (2L, 3*ENC_INNER) one push
        q = (qkv[:, :ENC_INNER] * SCALE).astype(BF)
        k = qkv[:, ENC_INNER:2 * ENC_INNER].astype(BF)
        v = qkv[:, 2 * ENC_INNER:].astype(BF)

        feat_outs = []
        for f in range(2):                                      # each feature attends only to its own 4 tokens
            r0 = f * TOKEN_LEN
            head_outs = []
            for h in range(ENC_HEADS):
                c0 = h * ENC_DH
                qh = q[r0:r0 + TOKEN_LEN, c0:c0 + ENC_DH]
                kh = k[r0:r0 + TOKEN_LEN, c0:c0 + ENC_DH]
                vh = v[r0:r0 + TOKEN_LEN, c0:c0 + ENC_DH]
                p = _softmax(_mmT(qh, kh), -1).astype(BF)       # (L, L)
                head_outs.append(_mm(p, vh))                    # (L, ENC_DH)
            feat_outs.append(jnp.concatenate(head_outs, axis=-1))   # (L, ENC_INNER)
        attn_cat = jnp.concatenate(feat_outs, axis=0).astype(BF)    # (2L, ENC_INNER)
        tok = tok + _mm(attn_cat, e_wo) + e_bo                  # single fused output proj

        # --- FeedForward: PreNorm + residual ---
        y2 = _ln(tok, ln2_g, ln2_b).astype(BF)
        h1 = _gelu(_mm(y2, e_w1) + e_b1).astype(BF)             # (2L, MLP_ENC)
        tok = tok + _mm(h1, e_w2) + e_b2
        return tok[:TOKEN_LEN], tok[TOKEN_LEN:]

    def decode_pair(x12, m1, m2):
        """token_decoder on both features lane-stacked. x12: (C, HW2) f32 -> (C, HW2)."""
        x = x12 + d_pos2

        # --- Cross_Attention (heads=8, per-head dim 1): PreNorm2 + residual ---
        yx = _ln_ch(x, lnx_g, lnx_b).astype(BF)                 # (C, HW2)
        ym1 = _ln(m1, lnm_g, lnm_b).astype(BF)                  # (L, C)
        ym2 = _ln(m2, lnm_g, lnm_b).astype(BF)
        qs = _mm(d_wqT, yx) * SCALE                             # (8, HW2) lane-dense f32
        kv1 = _mmT(d_wkvT, ym1)                                 # (16, L): k rows 0:8, v rows 8:16
        kv2 = _mmT(d_wkvT, ym2)

        def kcol(j):   # per-token k scalar per head, lane-broadcast, per-half select
            return jnp.where(half1, kv1[0:DEC_INNER, j:j + 1], kv2[0:DEC_INNER, j:j + 1])

        def vcol(j):
            return jnp.where(half1, kv1[DEC_INNER:, j:j + 1], kv2[DEC_INNER:, j:j + 1])

        # online softmax over the 4 tokens (two passes, nothing materialized in lists)
        mx = qs * kcol(0)
        for j in range(1, TOKEN_LEN):
            mx = jnp.maximum(mx, qs * kcol(j))
        den = jnp.zeros_like(qs)
        num = jnp.zeros_like(qs)
        for j in range(TOKEN_LEN):
            e = jnp.exp(qs * kcol(j) - mx)
            den = den + e
            num = num + e * vcol(j)
        attn = (num * pl.reciprocal(den, approx=True)).astype(BF)   # (8, HW2)
        x = x + _mm(d_woT, attn) + d_bo

        # --- FeedForward: PreNorm + residual ---
        y2 = _ln_ch(x, lnd2_g, lnd2_b).astype(BF)
        h1 = _gelu(_mm(d_w1T, y2) + d_b1).astype(BF)            # (MLP_DEC, HW2)
        x = x + _mm(d_w2T, h1) + d_b2
        return x

    # Static unrolled loop over the batch elements of this block (bblk <= 8).
    # Everything is dead at the end of each iteration (stored into out_ref[i]),
    # so live ranges stay bounded while the scheduler can interleave chains.
    for i in range(bblk):
        x12 = x12_ref[i]                                        # (C, HW2) f32
        m1, m2 = encode_pair(x12.astype(BF))
        dec = decode_pair(x12, m1, m2)
        out_ref[i] = jnp.abs(dec[:, HW:] - dec[:, :HW])         # |out2 - out1|


# ----------------------------- pallas_call wrapper ----------------------------
PARAM_ORDER = ["vecs", "e_ba", "e_b1", "e_wqkv", "e_wo", "e_w1", "e_w2",
               "d_pos2", "d_cvec", "d_b1", "d_wqT", "d_wkvT", "d_woT", "d_w1T", "d_w2T"]


def _const_spec(shape):
    nd = len(shape)
    return pl.BlockSpec(shape, lambda b, _nd=nd: (0,) * _nd)


def _choose_bblk(B):
    """Largest divisor of B (<= 8) that keeps >= 2 grid steps (v7x megacore)."""
    best = 1
    cap = min(8, max(1, B // 2))
    for d in range(1, cap + 1):
        if B % d == 0:
            best = d
    return best


@jax.jit
def context_aggregator_forward(params, feature1, feature2):
    B = feature1.shape[0]
    # NCHW is already channel-major; lane-stack the two features -> (B, C, 2*HW).
    x12 = jnp.concatenate(
        [feature1.reshape(B, C, HW), feature2.reshape(B, C, HW)], axis=-1)

    bblk = _choose_bblk(B)
    grid = (B // bblk,)
    plist = [params[k] for k in PARAM_ORDER]

    in_specs = [pl.BlockSpec((bblk, C, HW2), lambda b: (b, 0, 0))] \
        + [_const_spec(p.shape) for p in plist]

    diff = pl.pallas_call(
        fused_kernel,
        out_shape=jax.ShapeDtypeStruct((B, C, HW), jnp.float32),
        grid=grid,
        in_specs=in_specs,
        out_specs=pl.BlockSpec((bblk, C, HW), lambda b: (b, 0, 0)),
        compiler_params=pltpu.CompilerParams(dimension_semantics=("parallel",)),
    )(x12, *plist)

    return diff.reshape(B, C, SIZE, SIZE)


# ----------------------------- params ----------------------------------------
def init_params(key):
    ks = iter(jax.random.split(key, 24))

    def nrm(shape, s=0.05):
        return (s * jax.random.normal(next(ks), shape)).astype(jnp.float32)

    ones = lambda s: jnp.ones(s, jnp.float32)
    zeros = lambda s: jnp.zeros(s, jnp.float32)

    # ---- encoder ----
    e_wa = nrm((TOKEN_LEN, C))                                        # conv_a 1x1 weight
    e_pos = jax.random.normal(next(ks), (TOKEN_LEN, C)).astype(jnp.float32)
    vecs = jnp.concatenate([
        ones((1, C)), zeros((1, C)),      # encoder attn PreNorm g/b
        ones((1, C)), zeros((1, C)),      # encoder FF PreNorm g/b
        nrm((1, C)), nrm((1, C)),         # encoder attn-out / FF-out biases
        ones((1, C)), zeros((1, C)),      # decoder token-LN g/b
        e_pos,                            # rows 8-11
        e_wa,                             # rows 12-15
    ], axis=0)                            # (16, C)

    e_wq, e_wk, e_wv = nrm((C, ENC_INNER)), nrm((C, ENC_INNER)), nrm((C, ENC_INNER))
    enc = dict(
        vecs=vecs,
        e_ba=nrm((TOKEN_LEN, 1)),
        e_b1=nrm((1, MLP_ENC)),
        e_wqkv=jnp.concatenate([e_wq, e_wk, e_wv], axis=-1).astype(BF),   # (C, 768)
        e_wo=nrm((ENC_INNER, C)).astype(BF),
        e_w1=nrm((C, MLP_ENC)).astype(BF),
        e_w2=nrm((MLP_ENC, C)).astype(BF),
    )

    # ---- decoder (weights stored for channel-major activations) ----
    d_pos = jax.random.normal(next(ks), (C, SIZE, SIZE)).astype(jnp.float32).reshape(C, HW)
    dec = dict(
        d_pos2=jnp.tile(d_pos, (1, 2)),                                   # (C, 2*HW)
        d_cvec=jnp.stack([ones((C, 1)), zeros((C, 1)),                    # lnx g/b
                          ones((C, 1)), zeros((C, 1)),                    # ln2 g/b
                          nrm((C, 1)), nrm((C, 1))]),                     # bo, b2
        d_b1=nrm((MLP_DEC, 1)),
        d_wqT=nrm((DEC_INNER, C)).astype(BF),
        d_wkvT=nrm((2 * DEC_INNER, C)).astype(BF),                        # [wk^T ; wv^T]
        d_woT=nrm((C, DEC_INNER)).astype(BF),
        d_w1T=nrm((MLP_DEC, C)).astype(BF),
        d_w2T=nrm((C, MLP_DEC)).astype(BF),
    )
    return {**enc, **dec}


# ----------------------------- main -------------------------------------------
if __name__ == "__main__":
    key = jax.random.PRNGKey(0)
    kp, k1, k2 = jax.random.split(key, 3)
    params = init_params(kp)
    feature1 = jax.random.normal(k1, (2, C, SIZE, SIZE), jnp.float32)
    feature2 = jax.random.normal(k2, (2, C, SIZE, SIZE), jnp.float32)

    out = context_aggregator_forward(params, feature1, feature2)
    jax.block_until_ready(out)
    assert out.shape == (2, C, SIZE, SIZE), out.shape
    print("KERNEL_OK")
</pallas_src>

<mosaic_0001>
module attributes {stable_mosaic.version = 11 : i64} {
  func.func @fused_kernel(%arg0: i32, %arg1: memref<1x32x512xf32, #tpu.memory_space<vmem>>, %arg2: memref<16x32xf32, #tpu.memory_space<vmem>>, %arg3: memref<4x1xf32, #tpu.memory_space<vmem>>, %arg4: memref<1x64xf32, #tpu.memory_space<vmem>>, %arg5: memref<32x768xbf16, #tpu.memory_space<vmem>>, %arg6: memref<256x32xbf16, #tpu.memory_space<vmem>>, %arg7: memref<32x64xbf16, #tpu.memory_space<vmem>>, %arg8: memref<64x32xbf16, #tpu.memory_space<vmem>>, %arg9: memref<32x512xf32, #tpu.memory_space<vmem>>, %arg10: memref<6x32x1xf32, #tpu.memory_space<vmem>>, %arg11: memref<64x1xf32, #tpu.memory_space<vmem>>, %arg12: memref<8x32xbf16, #tpu.memory_space<vmem>>, %arg13: memref<16x32xbf16, #tpu.memory_space<vmem>>, %arg14: memref<32x8xbf16, #tpu.memory_space<vmem>>, %arg15: memref<64x32xbf16, #tpu.memory_space<vmem>>, %arg16: memref<32x64xbf16, #tpu.memory_space<vmem>>, %arg17: memref<1x32x256xf32, #tpu.memory_space<vmem>>) attributes {dimension_semantics = [#tpu.dimension_semantics<parallel>], iteration_bounds = array<i64: 2>, scalar_prefetch = 0 : i64, scratch_operands = 0 : i64, tpu.core_type = #tpu.core_type<tc>, window_params = [{transform_indices = @transform_0, window_bounds = array<i64: 1, 32, 512>}, {pipeline_mode = #tpu.pipeline_mode<synchronous>, transform_indices = @transform_1, window_bounds = array<i64: 16, 32>}, {pipeline_mode = #tpu.pipeline_mode<synchronous>, transform_indices = @transform_2, window_bounds = array<i64: 4, 1>}, {pipeline_mode = #tpu.pipeline_mode<synchronous>, transform_indices = @transform_3, window_bounds = array<i64: 1, 64>}, {pipeline_mode = #tpu.pipeline_mode<synchronous>, transform_indices = @transform_4, window_bounds = array<i64: 32, 768>}, {pipeline_mode = #tpu.pipeline_mode<synchronous>, transform_indices = @transform_5, window_bounds = array<i64: 256, 32>}, {pipeline_mode = #tpu.pipeline_mode<synchronous>, transform_indices = @transform_6, window_bounds = array<i64: 32, 64>}, {pipeline_mode = #tpu.pipeline_mode<synchronous>, transform_indices = @transform_7, window_bounds = array<i64: 64, 32>}, {pipeline_mode = #tpu.pipeline_mode<synchronous>, transform_indices = @transform_8, window_bounds = array<i64: 32, 512>}, {pipeline_mode = #tpu.pipeline_mode<synchronous>, transform_indices = @transform_9, window_bounds = array<i64: 6, 32, 1>}, {pipeline_mode = #tpu.pipeline_mode<synchronous>, transform_indices = @transform_10, window_bounds = array<i64: 64, 1>}, {pipeline_mode = #tpu.pipeline_mode<synchronous>, transform_indices = @transform_11, window_bounds = array<i64: 8, 32>}, {pipeline_mode = #tpu.pipeline_mode<synchronous>, transform_indices = @transform_12, window_bounds = array<i64: 16, 32>}, {pipeline_mode = #tpu.pipeline_mode<synchronous>, transform_indices = @transform_13, window_bounds = array<i64: 32, 8>}, {pipeline_mode = #tpu.pipeline_mode<synchronous>, transform_indices = @transform_14, window_bounds = array<i64: 64, 32>}, {pipeline_mode = #tpu.pipeline_mode<synchronous>, transform_indices = @transform_15, window_bounds = array<i64: 32, 64>}, {transform_indices = @transform_16, window_bounds = array<i64: 1, 32, 256>}]} {
    %c0 = arith.constant 0 : index
    %c0_0 = arith.constant 0 : index
    %0 = vector.load %arg2[%c0, %c0_0] : memref<16x32xf32, #tpu.memory_space<vmem>>, vector<16x32xf32>
    %1 = vector.extract_strided_slice %0 {offsets = [0, 0], sizes = [1, 32], strides = [1, 1]} : vector<16x32xf32> to vector<1x32xf32>
    %2 = vector.extract_strided_slice %0 {offsets = [1, 0], sizes = [1, 32], strides = [1, 1]} : vector<16x32xf32> to vector<1x32xf32>
    %3 = vector.extract_strided_slice %0 {offsets = [2, 0], sizes = [1, 32], strides = [1, 1]} : vector<16x32xf32> to vector<1x32xf32>
    %4 = vector.extract_strided_slice %0 {offsets = [3, 0], sizes = [1, 32], strides = [1, 1]} : vector<16x32xf32> to vector<1x32xf32>
    %5 = vector.extract_strided_slice %0 {offsets = [4, 0], sizes = [1, 32], strides = [1, 1]} : vector<16x32xf32> to vector<1x32xf32>
    %6 = vector.extract_strided_slice %0 {offsets = [5, 0], sizes = [1, 32], strides = [1, 1]} : vector<16x32xf32> to vector<1x32xf32>
    %7 = vector.extract_strided_slice %0 {offsets = [6, 0], sizes = [1, 32], strides = [1, 1]} : vector<16x32xf32> to vector<1x32xf32>
    %8 = vector.extract_strided_slice %0 {offsets = [7, 0], sizes = [1, 32], strides = [1, 1]} : vector<16x32xf32> to vector<1x32xf32>
    %9 = vector.extract_strided_slice %0 {offsets = [8, 0], sizes = [4, 32], strides = [1, 1]} : vector<16x32xf32> to vector<4x32xf32>
    %10 = vector.extract_strided_slice %0 {offsets = [12, 0], sizes = [4, 32], strides = [1, 1]} : vector<16x32xf32> to vector<4x32xf32>
    %11 = arith.truncf %10 : vector<4x32xf32> to vector<4x32xbf16>
    %c0_1 = arith.constant 0 : index
    %c0_2 = arith.constant 0 : index
    %12 = vector.load %arg3[%c0_1, %c0_2] : memref<4x1xf32, #tpu.memory_space<vmem>>, vector<4x1xf32>
    %c0_3 = arith.constant 0 : index
    %c0_4 = arith.constant 0 : index
    %13 = vector.load %arg4[%c0_3, %c0_4] : memref<1x64xf32, #tpu.memory_space<vmem>>, vector<1x64xf32>
    %c0_5 = arith.constant 0 : index
    %c0_6 = arith.constant 0 : index
    %14 = vector.load %arg5[%c0_5, %c0_6] : memref<32x768xbf16, #tpu.memory_space<vmem>>, vector<32x768xbf16>
    %c0_7 = arith.constant 0 : index
    %c0_8 = arith.constant 0 : index
    %15 = vector.load %arg6[%c0_7, %c0_8] : memref<256x32xbf16, #tpu.memory_space<vmem>>, vector<256x32xbf16>
    %c0_9 = arith.constant 0 : index
    %c0_10 = arith.constant 0 : index
    %16 = vector.load %arg7[%c0_9, %c0_10] : memref<32x64xbf16, #tpu.memory_space<vmem>>, vector<32x64xbf16>
    %c0_11 = arith.constant 0 : index
    %c0_12 = arith.constant 0 : index
    %17 = vector.load %arg8[%c0_11, %c0_12] : memref<64x32xbf16, #tpu.memory_space<vmem>>, vector<64x32xbf16>
    %c0_13 = arith.constant 0 : index
    %c0_14 = arith.constant 0 : index
    %18 = vector.load %arg9[%c0_13, %c0_14] : memref<32x512xf32, #tpu.memory_space<vmem>>, vector<32x512xf32>
    %c0_15 = arith.constant 0 : index
    %c0_16 = arith.constant 0 : index
    %c0_17 = arith.constant 0 : index
    %19 = vector.load %arg10[%c0_15, %c0_16, %c0_17] : memref<6x32x1xf32, #tpu.memory_space<vmem>>, vector<6x32x1xf32>
    %20 = vector.extract_strided_slice %19 {offsets = [0, 0, 0], sizes = [1, 32, 1], strides = [1, 1, 1]} : vector<6x32x1xf32> to vector<1x32x1xf32>
    %21 = vector.shape_cast %20 : vector<1x32x1xf32> to vector<32x1xf32>
    %22 = vector.extract_strided_slice %19 {offsets = [1, 0, 0], sizes = [1, 32, 1], strides = [1, 1, 1]} : vector<6x32x1xf32> to vector<1x32x1xf32>
    %23 = vector.shape_cast %22 : vector<1x32x1xf32> to vector<32x1xf32>
    %24 = vector.extract_strided_slice %19 {offsets = [2, 0, 0], sizes = [1, 32, 1], strides = [1, 1, 1]} : vector<6x32x1xf32> to vector<1x32x1xf32>
    %25 = vector.shape_cast %24 : vector<1x32x1xf32> to vector<32x1xf32>
    %26 = vector.extract_strided_slice %19 {offsets = [3, 0, 0], sizes = [1, 32, 1], strides = [1, 1, 1]} : vector<6x32x1xf32> to vector<1x32x1xf32>
    %27 = vector.shape_cast %26 : vector<1x32x1xf32> to vector<32x1xf32>
    %28 = vector.extract_strided_slice %19 {offsets = [4, 0, 0], sizes = [1, 32, 1], strides = [1, 1, 1]} : vector<6x32x1xf32> to vector<1x32x1xf32>
    %29 = vector.shape_cast %28 : vector<1x32x1xf32> to vector<32x1xf32>
    %30 = vector.extract_strided_slice %19 {offsets = [5, 0, 0], sizes = [1, 32, 1], strides = [1, 1, 1]} : vector<6x32x1xf32> to vector<1x32x1xf32>
    %31 = vector.shape_cast %30 : vector<1x32x1xf32> to vector<32x1xf32>
    %c0_18 = arith.constant 0 : index
    %c0_19 = arith.constant 0 : index
    %32 = vector.load %arg11[%c0_18, %c0_19] : memref<64x1xf32, #tpu.memory_space<vmem>>, vector<64x1xf32>
    %c0_20 = arith.constant 0 : index
    %c0_21 = arith.constant 0 : index
    %33 = vector.load %arg12[%c0_20, %c0_21] : memref<8x32xbf16, #tpu.memory_space<vmem>>, vector<8x32xbf16>
    %c0_22 = arith.constant 0 : index
    %c0_23 = arith.constant 0 : index
    %34 = vector.load %arg13[%c0_22, %c0_23] : memref<16x32xbf16, #tpu.memory_space<vmem>>, vector<16x32xbf16>
    %c0_24 = arith.constant 0 : index
    %c0_25 = arith.constant 0 : index
    %35 = vector.load %arg14[%c0_24, %c0_25] : memref<32x8xbf16, #tpu.memory_space<vmem>>, vector<32x8xbf16>
    %c0_26 = arith.constant 0 : index
    %c0_27 = arith.constant 0 : index
    %36 = vector.load %arg15[%c0_26, %c0_27] : memref<64x32xbf16, #tpu.memory_space<vmem>>, vector<64x32xbf16>
    %c0_28 = arith.constant 0 : index
    %c0_29 = arith.constant 0 : index
    %37 = vector.load %arg16[%c0_28, %c0_29] : memref<32x64xbf16, #tpu.memory_space<vmem>>, vector<32x64xbf16>
    %38 = tpu.iota {dimensions = array<i32: 1>} : vector<8x512xi32>
    %c256_i32 = arith.constant 256 : i32
    %39 = vector.broadcast %c256_i32 : i32 to vector<8x512xi32>
    %40 = arith.cmpi slt, %38, %39 : vector<8x512xi32>
    %c0_30 = arith.constant 0 : index
    %c0_31 = arith.constant 0 : index
    %c0_32 = arith.constant 0 : index
    %41 = vector.load %arg1[%c0_30, %c0_31, %c0_32] : memref<1x32x512xf32, #tpu.memory_space<vmem>>, vector<1x32x512xf32>
    %42 = vector.shape_cast %41 : vector<1x32x512xf32> to vector<32x512xf32>
    %43 = arith.truncf %42 : vector<32x512xf32> to vector<32x512xbf16>
    %cst = arith.constant dense<0.000000e+00> : vector<4x512xf32>
    %44 = tpu.matmul %11, %43, %cst {dimension_numbers = #tpu.dot_dimension_numbers<[1], [0], [0], [1], [0, 0, 1, 1], [], []>} : vector<4x32xbf16>, vector<32x512xbf16>, vector<4x512xf32> -> vector<4x512xf32>
    %45 = vector.broadcast %12 : vector<4x1xf32> to vector<4x512xf32>
    %46 = arith.addf %44, %45 : vector<4x512xf32>
    %47 = vector.extract_strided_slice %46 {offsets = [0, 0], sizes = [4, 256], strides = [1, 1]} : vector<4x512xf32> to vector<4x256xf32>
    %cst_33 = arith.constant dense<0xFF800000> : vector<4xf32>
    %48 = vector.multi_reduction <maximumf>, %47, %cst_33 [1] : vector<4x256xf32> to vector<4xf32>
    %49 = vector.shape_cast %48 : vector<4xf32> to vector<4x1xf32>
    %50 = vector.broadcast %49 : vector<4x1xf32> to vector<4x256xf32>
    %51 = arith.subf %47, %50 : vector<4x256xf32>
    %52 = math.exp %51 : vector<4x256xf32>
    %cst_34 = arith.constant dense<0.000000e+00> : vector<4xf32>
    %53 = vector.multi_reduction <add>, %52, %cst_34 [1] : vector<4x256xf32> to vector<4xf32>
    %54 = vector.shape_cast %53 : vector<4xf32> to vector<4x1xf32>
    %55 = tpu.reciprocal %54 {approx = true} : vector<4x1xf32> -> vector<4x1xf32>
    %56 = vector.broadcast %55 : vector<4x1xf32> to vector<4x256xf32>
    %57 = arith.mulf %52, %56 : vector<4x256xf32>
    %58 = arith.truncf %57 : vector<4x256xf32> to vector<4x256xbf16>
    %59 = vector.extract_strided_slice %46 {offsets = [0, 256], sizes = [4, 256], strides = [1, 1]} : vector<4x512xf32> to vector<4x256xf32>
    %cst_35 = arith.constant dense<0xFF800000> : vector<4xf32>
    %60 = vector.multi_reduction <maximumf>, %59, %cst_35 [1] : vector<4x256xf32> to vector<4xf32>
    %61 = vector.shape_cast %60 : vector<4xf32> to vector<4x1xf32>
    %62 = vector.broadcast %61 : vector<4x1xf32> to vector<4x256xf32>
    %63 = arith.subf %59, %62 : vector<4x256xf32>
    %64 = math.exp %63 : vector<4x256xf32>
    %cst_36 = arith.constant dense<0.000000e+00> : vector<4xf32>
    %65 = vector.multi_reduction <add>, %64, %cst_36 [1] : vector<4x256xf32> to vector<4xf32>
    %66 = vector.shape_cast %65 : vector<4xf32> to vector<4x1xf32>
    %67 = tpu.reciprocal %66 {approx = true} : vector<4x1xf32> -> vector<4x1xf32>
    %68 = vector.broadcast %67 : vector<4x1xf32> to vector<4x256xf32>
    %69 = arith.mulf %64, %68 : vector<4x256xf32>
    %70 = arith.truncf %69 : vector<4x256xf32> to vector<4x256xbf16>
    %71 = vector.extract_strided_slice %43 {offsets = [0, 0], sizes = [32, 256], strides = [1, 1]} : vector<32x512xbf16> to vector<32x256xbf16>
    %cst_37 = arith.constant dense<0.000000e+00> : vector<4x32xf32>
    %72 = tpu.matmul %58, %71, %cst_37 {dimension_numbers = #tpu.dot_dimension_numbers<[1], [1], [0], [0], [0, 0, 1, 0], [], []>} : vector<4x256xbf16>, vector<32x256xbf16>, vector<4x32xf32> -> vector<4x32xf32>
    %73 = arith.addf %72, %9 : vector<4x32xf32>
    %74 = vector.extract_strided_slice %43 {offsets = [0, 256], sizes = [32, 256], strides = [1, 1]} : vector<32x512xbf16> to vector<32x256xbf16>
    %cst_38 = arith.constant dense<0.000000e+00> : vector<4x32xf32>
    %75 = tpu.matmul %70, %74, %cst_38 {dimension_numbers = #tpu.dot_dimension_numbers<[1], [1], [0], [0], [0, 0, 1, 0], [], []>} : vector<4x256xbf16>, vector<32x256xbf16>, vector<4x32xf32> -> vector<4x32xf32>
    %76 = arith.addf %75, %9 : vector<4x32xf32>
    %77 = tpu.concatenate %73, %76 in 0 : vector<4x32xf32>, vector<4x32xf32> -> vector<8x32xf32>
    %cst_39 = arith.constant dense<0.000000e+00> : vector<8xf32>
    %78 = vector.multi_reduction <add>, %77, %cst_39 [1] : vector<8x32xf32> to vector<8xf32>
    %79 = vector.shape_cast %78 : vector<8xf32> to vector<8x1xf32>
    %cst_40 = arith.constant 3.200000e+01 : f32
    %80 = vector.broadcast %cst_40 : f32 to vector<8x1xf32>
    %81 = arith.divf %79, %80 : vector<8x1xf32>
    %82 = vector.broadcast %81 : vector<8x1xf32> to vector<8x32xf32>
    %83 = arith.subf %77, %82 : vector<8x32xf32>
    %84 = arith.mulf %83, %83 : vector<8x32xf32>
    %cst_41 = arith.constant dense<0.000000e+00> : vector<8xf32>
    %85 = vector.multi_reduction <add>, %84, %cst_41 [1] : vector<8x32xf32> to vector<8xf32>
    %86 = vector.shape_cast %85 : vector<8xf32> to vector<8x1xf32>
    %cst_42 = arith.constant 3.200000e+01 : f32
    %87 = vector.broadcast %cst_42 : f32 to vector<8x1xf32>
    %88 = arith.divf %86, %87 : vector<8x1xf32>
    %cst_43 = arith.constant 9.99999974E-6 : f32
    %89 = vector.broadcast %cst_43 : f32 to vector<8x1xf32>
    %90 = arith.addf %88, %89 : vector<8x1xf32>
    %91 = math.rsqrt %90 : vector<8x1xf32>
    %92 = vector.broadcast %91 : vector<8x1xf32> to vector<8x32xf32>
    %93 = arith.mulf %83, %92 : vector<8x32xf32>
    %94 = vector.broadcast %1 : vector<1x32xf32> to vector<8x32xf32>
    %95 = arith.mulf %93, %94 : vector<8x32xf32>
    %96 = vector.broadcast %2 : vector<1x32xf32> to vector<8x32xf32>
    %97 = arith.addf %95, %96 : vector<8x32xf32>
    %98 = arith.truncf %97 : vector<8x32xf32> to vector<8x32xbf16>
    %cst_44 = arith.constant dense<0.000000e+00> : vector<8x768xf32>
    %99 = tpu.matmul %98, %14, %cst_44 {dimension_numbers = #tpu.dot_dimension_numbers<[1], [0], [0], [1], [0, 0, 1, 1], [], []>} : vector<8x32xbf16>, vector<32x768xbf16>, vector<8x768xf32> -> vector<8x768xf32>
    %100 = vector.extract_strided_slice %99 {offsets = [0, 0], sizes = [8, 256], strides = [1, 1]} : vector<8x768xf32> to vector<8x256xf32>
    %cst_45 = arith.constant 0.176776692 : f32
    %101 = vector.broadcast %cst_45 : f32 to vector<8x256xf32>
    %102 = arith.mulf %100, %101 : vector<8x256xf32>
    %103 = arith.truncf %102 : vector<8x256xf32> to vector<8x256xbf16>
    %104 = vector.extract_strided_slice %99 {offsets = [0, 256], sizes = [8, 256], strides = [1, 1]} : vector<8x768xf32> to vector<8x256xf32>
    %105 = arith.truncf %104 : vector<8x256xf32> to vector<8x256xbf16>
    %106 = vector.extract_strided_slice %99 {offsets = [0, 512], sizes = [8, 256], strides = [1, 1]} : vector<8x768xf32> to vector<8x256xf32>
    %107 = arith.truncf %106 : vector<8x256xf32> to vector<8x256xbf16>
    %108 = vector.extract_strided_slice %103 {offsets = [0, 0], sizes = [4, 64], strides = [1, 1]} : vector<8x256xbf16> to vector<4x64xbf16>
    %109 = vector.extract_strided_slice %105 {offsets = [0, 0], sizes = [4, 64], strides = [1, 1]} : vector<8x256xbf16> to vector<4x64xbf16>
    %110 = vector.extract_strided_slice %107 {offsets = [0, 0], sizes = [4, 64], strides = [1, 1]} : vector<8x256xbf16> to vector<4x64xbf16>
    %cst_46 = arith.constant dense<0.000000e+00> : vector<4x4xf32>
    %111 = tpu.matmul %108, %109, %cst_46 {dimension_numbers = #tpu.dot_dimension_numbers<[1], [1], [0], [0], [0, 0, 1, 0], [], []>} : vector<4x64xbf16>, vector<4x64xbf16>, vector<4x4xf32> -> vector<4x4xf32>
    %cst_47 = arith.constant dense<0xFF800000> : vector<4xf32>
    %112 = vector.multi_reduction <maximumf>, %111, %cst_47 [1] : vector<4x4xf32> to vector<4xf32>
    %113 = vector.shape_cast %112 : vector<4xf32> to vector<4x1xf32>
    %114 = vector.broadcast %113 : vector<4x1xf32> to vector<4x4xf32>
    %115 = arith.subf %111, %114 : vector<4x4xf32>
    %116 = math.exp %115 : vector<4x4xf32>
    %cst_48 = arith.constant dense<0.000000e+00> : vector<4xf32>
    %117 = vector.multi_reduction <add>, %116, %cst_48 [1] : vector<4x4xf32> to vector<4xf32>
    %118 = vector.shape_cast %117 : vector<4xf32> to vector<4x1xf32>
    %119 = tpu.reciprocal %118 {approx = true} : vector<4x1xf32> -> vector<4x1xf32>
    %120 = vector.broadcast %119 : vector<4x1xf32> to vector<4x4xf32>
    %121 = arith.mulf %116, %120 : vector<4x4xf32>
    %122 = arith.truncf %121 : vector<4x4xf32> to vector<4x4xbf16>
    %cst_49 = arith.constant dense<0.000000e+00> : vector<4x64xf32>
    %123 = tpu.matmul %122, %110, %cst_49 {dimension_numbers = #tpu.dot_dimension_numbers<[1], [0], [0], [1], [0, 0, 1, 1], [], []>} : vector<4x4xbf16>, vector<4x64xbf16>, vector<4x64xf32> -> vector<4x64xf32>
    %124 = vector.extract_strided_slice %103 {offsets = [0, 64], sizes = [4, 64], strides = [1, 1]} : vector<8x256xbf16> to vector<4x64xbf16>
    %125 = vector.extract_strided_slice %105 {offsets = [0, 64], sizes = [4, 64], strides = [1, 1]} : vector<8x256xbf16> to vector<4x64xbf16>
    %126 = vector.extract_strided_slice %107 {offsets = [0, 64], sizes = [4, 64], strides = [1, 1]} : vector<8x256xbf16> to vector<4x64xbf16>
    %cst_50 = arith.constant dense<0.000000e+00> : vector<4x4xf32>
    %127 = tpu.matmul %124, %125, %cst_50 {dimension_numbers = #tpu.dot_dimension_numbers<[1], [1], [0], [0], [0, 0, 1, 0], [], []>} : vector<4x64xbf16>, vector<4x64xbf16>, vector<4x4xf32> -> vector<4x4xf32>
    %cst_51 = arith.constant dense<0xFF800000> : vector<4xf32>
    %128 = vector.multi_reduction <maximumf>, %127, %cst_51 [1] : vector<4x4xf32> to vector<4xf32>
    %129 = vector.shape_cast %128 : vector<4xf32> to vector<4x1xf32>
    %130 = vector.broadcast %129 : vector<4x1xf32> to vector<4x4xf32>
    %131 = arith.subf %127, %130 : vector<4x4xf32>
    %132 = math.exp %131 : vector<4x4xf32>
    %cst_52 = arith.constant dense<0.000000e+00> : vector<4xf32>
    %133 = vector.multi_reduction <add>, %132, %cst_52 [1] : vector<4x4xf32> to vector<4xf32>
    %134 = vector.shape_cast %133 : vector<4xf32> to vector<4x1xf32>
    %135 = tpu.reciprocal %134 {approx = true} : vector<4x1xf32> -> vector<4x1xf32>
    %136 = vector.broadcast %135 : vector<4x1xf32> to vector<4x4xf32>
    %137 = arith.mulf %132, %136 : vector<4x4xf32>
    %138 = arith.truncf %137 : vector<4x4xf32> to vector<4x4xbf16>
    %cst_53 = arith.constant dense<0.000000e+00> : vector<4x64xf32>
    %139 = tpu.matmul %138, %126, %cst_53 {dimension_numbers = #tpu.dot_dimension_numbers<[1], [0], [0], [1], [0, 0, 1, 1], [], []>} : vector<4x4xbf16>, vector<4x64xbf16>, vector<4x64xf32> -> vector<4x64xf32>
    %140 = vector.extract_strided_slice %103 {offsets = [0, 128], sizes = [4, 64], strides = [1, 1]} : vector<8x256xbf16> to vector<4x64xbf16>
    %141 = vector.extract_strided_slice %105 {offsets = [0, 128], sizes = [4, 64], strides = [1, 1]} : vector<8x256xbf16> to vector<4x64xbf16>
    %142 = vector.extract_strided_slice %107 {offsets = [0, 128], sizes = [4, 64], strides = [1, 1]} : vector<8x256xbf16> to vector<4x64xbf16>
    %cst_54 = arith.constant dense<0.000000e+00> : vector<4x4xf32>
    %143 = tpu.matmul %140, %141, %cst_54 {dimension_numbers = #tpu.dot_dimension_numbers<[1], [1], [0], [0], [0, 0, 1, 0], [], []>} : vector<4x64xbf16>, vector<4x64xbf16>, vector<4x4xf32> -> vector<4x4xf32>
    %cst_55 = arith.constant dense<0xFF800000> : vector<4xf32>
    %144 = vector.multi_reduction <maximumf>, %143, %cst_55 [1] : vector<4x4xf32> to vector<4xf32>
    %145 = vector.shape_cast %144 : vector<4xf32> to vector<4x1xf32>
    %146 = vector.broadcast %145 : vector<4x1xf32> to vector<4x4xf32>
    %147 = arith.subf %143, %146 : vector<4x4xf32>
    %148 = math.exp %147 : vector<4x4xf32>
    %cst_56 = arith.constant dense<0.000000e+00> : vector<4xf32>
    %149 = vector.multi_reduction <add>, %148, %cst_56 [1] : vector<4x4xf32> to vector<4xf32>
    %150 = vector.shape_cast %149 : vector<4xf32> to vector<4x1xf32>
    %151 = tpu.reciprocal %150 {approx = true} : vector<4x1xf32> -> vector<4x1xf32>
    %152 = vector.broadcast %151 : vector<4x1xf32> to vector<4x4xf32>
    %153 = arith.mulf %148, %152 : vector<4x4xf32>
    %154 = arith.truncf %153 : vector<4x4xf32> to vector<4x4xbf16>
    %cst_57 = arith.constant dense<0.000000e+00> : vector<4x64xf32>
    %155 = tpu.matmul %154, %142, %cst_57 {dimension_numbers = #tpu.dot_dimension_numbers<[1], [0], [0], [1], [0, 0, 1, 1], [], []>} : vector<4x4xbf16>, vector<4x64xbf16>, vector<4x64xf32> -> vector<4x64xf32>
    %156 = vector.extract_strided_slice %103 {offsets = [0, 192], sizes = [4, 64], strides = [1, 1]} : vector<8x256xbf16> to vector<4x64xbf16>
    %157 = vector.extract_strided_slice %105 {offsets = [0, 192], sizes = [4, 64], strides = [1, 1]} : vector<8x256xbf16> to vector<4x64xbf16>
    %158 = vector.extract_strided_slice %107 {offsets = [0, 192], sizes = [4, 64], strides = [1, 1]} : vector<8x256xbf16> to vector<4x64xbf16>
    %cst_58 = arith.constant dense<0.000000e+00> : vector<4x4xf32>
    %159 = tpu.matmul %156, %157, %cst_58 {dimension_numbers = #tpu.dot_dimension_numbers<[1], [1], [0], [0], [0, 0, 1, 0], [], []>} : vector<4x64xbf16>, vector<4x64xbf16>, vector<4x4xf32> -> vector<4x4xf32>
    %cst_59 = arith.constant dense<0xFF800000> : vector<4xf32>
    %160 = vector.multi_reduction <maximumf>, %159, %cst_59 [1] : vector<4x4xf32> to vector<4xf32>
    %161 = vector.shape_cast %160 : vector<4xf32> to vector<4x1xf32>
    %162 = vector.broadcast %161 : vector<4x1xf32> to vector<4x4xf32>
    %163 = arith.subf %159, %162 : vector<4x4xf32>
    %164 = math.exp %163 : vector<4x4xf32>
    %cst_60 = arith.constant dense<0.000000e+00> : vector<4xf32>
    %165 = vector.multi_reduction <add>, %164, %cst_60 [1] : vector<4x4xf32> to vector<4xf32>
    %166 = vector.shape_cast %165 : vector<4xf32> to vector<4x1xf32>
    %167 = tpu.reciprocal %166 {approx = true} : vector<4x1xf32> -> vector<4x1xf32>
    %168 = vector.broadcast %167 : vector<4x1xf32> to vector<4x4xf32>
    %169 = arith.mulf %164, %168 : vector<4x4xf32>
    %170 = arith.truncf %169 : vector<4x4xf32> to vector<4x4xbf16>
    %cst_61 = arith.constant dense<0.000000e+00> : vector<4x64xf32>
    %171 = tpu.matmul %170, %158, %cst_61 {dimension_numbers = #tpu.dot_dimension_numbers<[1], [0], [0], [1], [0, 0, 1, 1], [], []>} : vector<4x4xbf16>, vector<4x64xbf16>, vector<4x64xf32> -> vector<4x64xf32>
    %172 = tpu.concatenate %123, %139, %155, %171 in 1 : vector<4x64xf32>, vector<4x64xf32>, vector<4x64xf32>, vector<4x64xf32> -> vector<4x256xf32>
    %173 = vector.extract_strided_slice %103 {offsets = [4, 0], sizes = [4, 64], strides = [1, 1]} : vector<8x256xbf16> to vector<4x64xbf16>
    %174 = vector.extract_strided_slice %105 {offsets = [4, 0], sizes = [4, 64], strides = [1, 1]} : vector<8x256xbf16> to vector<4x64xbf16>
    %175 = vector.extract_strided_slice %107 {offsets = [4, 0], sizes = [4, 64], strides = [1, 1]} : vector<8x256xbf16> to vector<4x64xbf16>
    %cst_62 = arith.constant dense<0.000000e+00> : vector<4x4xf32>
    %176 = tpu.matmul %173, %174, %cst_62 {dimension_numbers = #tpu.dot_dimension_numbers<[1], [1], [0], [0], [0, 0, 1, 0], [], []>} : vector<4x64xbf16>, vector<4x64xbf16>, vector<4x4xf32> -> vector<4x4xf32>
    %cst_63 = arith.constant dense<0xFF800000> : vector<4xf32>
    %177 = vector.multi_reduction <maximumf>, %176, %cst_63 [1] : vector<4x4xf32> to vector<4xf32>
    %178 = vector.shape_cast %177 : vector<4xf32> to vector<4x1xf32>
    %179 = vector.broadcast %178 : vector<4x1xf32> to vector<4x4xf32>
    %180 = arith.subf %176, %179 : vector<4x4xf32>
    %181 = math.exp %180 : vector<4x4xf32>
    %cst_64 = arith.constant dense<0.000000e+00> : vector<4xf32>
    %182 = vector.multi_reduction <add>, %181, %cst_64 [1] : vector<4x4xf32> to vector<4xf32>
    %183 = vector.shape_cast %182 : vector<4xf32> to vector<4x1xf32>
    %184 = tpu.reciprocal %183 {approx = true} : vector<4x1xf32> -> vector<4x1xf32>
    %185 = vector.broadcast %184 : vector<4x1xf32> to vector<4x4xf32>
    %186 = arith.mulf %181, %185 : vector<4x4xf32>
    %187 = arith.truncf %186 : vector<4x4xf32> to vector<4x4xbf16>
    %cst_65 = arith.constant dense<0.000000e+00> : vector<4x64xf32>
    %188 = tpu.matmul %187, %175, %cst_65 {dimension_numbers = #tpu.dot_dimension_numbers<[1], [0], [0], [1], [0, 0, 1, 1], [], []>} : vector<4x4xbf16>, vector<4x64xbf16>, vector<4x64xf32> -> vector<4x64xf32>
    %189 = vector.extract_strided_slice %103 {offsets = [4, 64], sizes = [4, 64], strides = [1, 1]} : vector<8x256xbf16> to vector<4x64xbf16>
    %190 = vector.extract_strided_slice %105 {offsets = [4, 64], sizes = [4, 64], strides = [1, 1]} : vector<8x256xbf16> to vector<4x64xbf16>
    %191 = vector.extract_strided_slice %107 {offsets = [4, 64], sizes = [4, 64], strides = [1, 1]} : vector<8x256xbf16> to vector<4x64xbf16>
    %cst_66 = arith.constant dense<0.000000e+00> : vector<4x4xf32>
    %192 = tpu.matmul %189, %190, %cst_66 {dimension_numbers = #tpu.dot_dimension_numbers<[1], [1], [0], [0], [0, 0, 1, 0], [], []>} : vector<4x64xbf16>, vector<4x64xbf16>, vector<4x4xf32> -> vector<4x4xf32>
    %cst_67 = arith.constant dense<0xFF800000> : vector<4xf32>
    %193 = vector.multi_reduction <maximumf>, %192, %cst_67 [1] : vector<4x4xf32> to vector<4xf32>
    %194 = vector.shape_cast %193 : vector<4xf32> to vector<4x1xf32>
    %195 = vector.broadcast %194 : vector<4x1xf32> to vector<4x4xf32>
    %196 = arith.subf %192, %195 : vector<4x4xf32>
    %197 = math.exp %196 : vector<4x4xf32>
    %cst_68 = arith.constant dense<0.000000e+00> : vector<4xf32>
    %198 = vector.multi_reduction <add>, %197, %cst_68 [1] : vector<4x4xf32> to vector<4xf32>
    %199 = vector.shape_cast %198 : vector<4xf32> to vector<4x1xf32>
    %200 = tpu.reciprocal %199 {approx = true} : vector<4x1xf32> -> vector<4x1xf32>
    %201 = vector.broadcast %200 : vector<4x1xf32> to vector<4x4xf32>
    %202 = arith.mulf %197, %201 : vector<4x4xf32>
    %203 = arith.truncf %202 : vector<4x4xf32> to vector<4x4xbf16>
    %cst_69 = arith.constant dense<0.000000e+00> : vector<4x64xf32>
    %204 = tpu.matmul %203, %191, %cst_69 {dimension_numbers = #tpu.dot_dimension_numbers<[1], [0], [0], [1], [0, 0, 1, 1], [], []>} : vector<4x4xbf16>, vector<4x64xbf16>, vector<4x64xf32> -> vector<4x64xf32>
    %205 = vector.extract_strided_slice %103 {offsets = [4, 128], sizes = [4, 64], strides = [1, 1]} : vector<8x256xbf16> to vector<4x64xbf16>
    %206 = vector.extract_strided_slice %105 {offsets = [4, 128], sizes = [4, 64], strides = [1, 1]} : vector<8x256xbf16> to vector<4x64xbf16>
    %207 = vector.extract_strided_slice %107 {offsets = [4, 128], sizes = [4, 64], strides = [1, 1]} : vector<8x256xbf16> to vector<4x64xbf16>
    %cst_70 = arith.constant dense<0.000000e+00> : vector<4x4xf32>
    %208 = tpu.matmul %205, %206, %cst_70 {dimension_numbers = #tpu.dot_dimension_numbers<[1], [1], [0], [0], [0, 0, 1, 0], [], []>} : vector<4x64xbf16>, vector<4x64xbf16>, vector<4x4xf32> -> vector<4x4xf32>
    %cst_71 = arith.constant dense<0xFF800000> : vector<4xf32>
    %209 = vector.multi_reduction <maximumf>, %208, %cst_71 [1] : vector<4x4xf32> to vector<4xf32>
    %210 = vector.shape_cast %209 : vector<4xf32> to vector<4x1xf32>
    %211 = vector.broadcast %210 : vector<4x1xf32> to vector<4x4xf32>
    %212 = arith.subf %208, %211 : vector<4x4xf32>
    %213 = math.exp %212 : vector<4x4xf32>
    %cst_72 = arith.constant dense<0.000000e+00> : vector<4xf32>
    %214 = vector.multi_reduction <add>, %213, %cst_72 [1] : vector<4x4xf32> to vector<4xf32>
    %215 = vector.shape_cast %214 : vector<4xf32> to vector<4x1xf32>
    %216 = tpu.reciprocal %215 {approx = true} : vector<4x1xf32> -> vector<4x1xf32>
    %217 = vector.broadcast %216 : vector<4x1xf32> to vector<4x4xf32>
    %218 = arith.mulf %213, %217 : vector<4x4xf32>
    %219 = arith.truncf %218 : vector<4x4xf32> to vector<4x4xbf16>
    %cst_73 = arith.constant dense<0.000000e+00> : vector<4x64xf32>
    %220 = tpu.matmul %219, %207, %cst_73 {dimension_numbers = #tpu.dot_dimension_numbers<[1], [0], [0], [1], [0, 0, 1, 1], [], []>} : vector<4x4xbf16>, vector<4x64xbf16>, vector<4x64xf32> -> vector<4x64xf32>
    %221 = vector.extract_strided_slice %103 {offsets = [4, 192], sizes = [4, 64], strides = [1, 1]} : vector<8x256xbf16> to vector<4x64xbf16>
    %222 = vector.extract_strided_slice %105 {offsets = [4, 192], sizes = [4, 64], strides = [1, 1]} : vector<8x256xbf16> to vector<4x64xbf16>
    %223 = vector.extract_strided_slice %107 {offsets = [4, 192], sizes = [4, 64], strides = [1, 1]} : vector<8x256xbf16> to vector<4x64xbf16>
    %cst_74 = arith.constant dense<0.000000e+00> : vector<4x4xf32>
    %224 = tpu.matmul %221, %222, %cst_74 {dimension_numbers = #tpu.dot_dimension_numbers<[1], [1], [0], [0], [0, 0, 1, 0], [], []>} : vector<4x64xbf16>, vector<4x64xbf16>, vector<4x4xf32> -> vector<4x4xf32>
    %cst_75 = arith.constant dense<0xFF800000> : vector<4xf32>
    %225 = vector.multi_reduction <maximumf>, %224, %cst_75 [1] : vector<4x4xf32> to vector<4xf32>
    %226 = vector.shape_cast %225 : vector<4xf32> to vector<4x1xf32>
    %227 = vector.broadcast %226 : vector<4x1xf32> to vector<4x4xf32>
    %228 = arith.subf %224, %227 : vector<4x4xf32>
    %229 = math.exp %228 : vector<4x4xf32>
    %cst_76 = arith.constant dense<0.000000e+00> : vector<4xf32>
    %230 = vector.multi_reduction <add>, %229, %cst_76 [1] : vector<4x4xf32> to vector<4xf32>
    %231 = vector.shape_cast %230 : vector<4xf32> to vector<4x1xf32>
    %232 = tpu.reciprocal %231 {approx = true} : vector<4x1xf32> -> vector<4x1xf32>
    %233 = vector.broadcast %232 : vector<4x1xf32> to vector<4x4xf32>
    %234 = arith.mulf %229, %233 : vector<4x4xf32>
    %235 = arith.truncf %234 : vector<4x4xf32> to vector<4x4xbf16>
    %cst_77 = arith.constant dense<0.000000e+00> : vector<4x64xf32>
    %236 = tpu.matmul %235, %223, %cst_77 {dimension_numbers = #tpu.dot_dimension_numbers<[1], [0], [0], [1], [0, 0, 1, 1], [], []>} : vector<4x4xbf16>, vector<4x64xbf16>, vector<4x64xf32> -> vector<4x64xf32>
    %237 = tpu.concatenate %188, %204, %220, %236 in 1 : vector<4x64xf32>, vector<4x64xf32>, vector<4x64xf32>, vector<4x64xf32> -> vector<4x256xf32>
    %238 = tpu.concatenate %172, %237 in 0 : vector<4x256xf32>, vector<4x256xf32> -> vector<8x256xf32>
    %239 = arith.truncf %238 : vector<8x256xf32> to vector<8x256xbf16>
    %cst_78 = arith.constant dense<0.000000e+00> : vector<8x32xf32>
    %240 = tpu.matmul %239, %15, %cst_78 {dimension_numbers = #tpu.dot_dimension_numbers<[1], [0], [0], [1], [0, 0, 1, 1], [], []>} : vector<8x256xbf16>, vector<256x32xbf16>, vector<8x32xf32> -> vector<8x32xf32>
    %241 = arith.addf %77, %240 : vector<8x32xf32>
    %242 = vector.broadcast %5 : vector<1x32xf32> to vector<8x32xf32>
    %243 = arith.addf %241, %242 : vector<8x32xf32>
    %cst_79 = arith.constant dense<0.000000e+00> : vector<8xf32>
    %244 = vector.multi_reduction <add>, %243, %cst_79 [1] : vector<8x32xf32> to vector<8xf32>
    %245 = vector.shape_cast %244 : vector<8xf32> to vector<8x1xf32>
    %cst_80 = arith.constant 3.200000e+01 : f32
    %246 = vector.broadcast %cst_80 : f32 to vector<8x1xf32>
    %247 = arith.divf %245, %246 : vector<8x1xf32>
    %248 = vector.broadcast %247 : vector<8x1xf32> to vector<8x32xf32>
    %249 = arith.subf %243, %248 : vector<8x32xf32>
    %250 = arith.mulf %249, %249 : vector<8x32xf32>
    %cst_81 = arith.constant dense<0.000000e+00> : vector<8xf32>
    %251 = vector.multi_reduction <add>, %250, %cst_81 [1] : vector<8x32xf32> to vector<8xf32>
    %252 = vector.shape_cast %251 : vector<8xf32> to vector<8x1xf32>
    %cst_82 = arith.constant 3.200000e+01 : f32
    %253 = vector.broadcast %cst_82 : f32 to vector<8x1xf32>
    %254 = arith.divf %252, %253 : vector<8x1xf32>
    %cst_83 = arith.constant 9.99999974E-6 : f32
    %255 = vector.broadcast %cst_83 : f32 to vector<8x1xf32>
    %256 = arith.addf %254, %255 : vector<8x1xf32>
    %257 = math.rsqrt %256 : vector<8x1xf32>
    %258 = vector.broadcast %257 : vector<8x1xf32> to vector<8x32xf32>
    %259 = arith.mulf %249, %258 : vector<8x32xf32>
    %260 = vector.broadcast %3 : vector<1x32xf32> to vector<8x32xf32>
    %261 = arith.mulf %259, %260 : vector<8x32xf32>
    %262 = vector.broadcast %4 : vector<1x32xf32> to vector<8x32xf32>
    %263 = arith.addf %261, %262 : vector<8x32xf32>
    %264 = arith.truncf %263 : vector<8x32xf32> to vector<8x32xbf16>
    %cst_84 = arith.constant dense<0.000000e+00> : vector<8x64xf32>
    %265 = tpu.matmul %264, %16, %cst_84 {dimension_numbers = #tpu.dot_dimension_numbers<[1], [0], [0], [1], [0, 0, 1, 1], [], []>} : vector<8x32xbf16>, vector<32x64xbf16>, vector<8x64xf32> -> vector<8x64xf32>
    %266 = vector.broadcast %13 : vector<1x64xf32> to vector<8x64xf32>
    %267 = arith.addf %265, %266 : vector<8x64xf32>
    %cst_85 = arith.constant 5.000000e-01 : f32
    %268 = vector.broadcast %cst_85 : f32 to vector<8x64xf32>
    %269 = arith.mulf %268, %267 : vector<8x64xf32>
    %cst_86 = arith.constant 4.471500e-02 : f32
    %270 = vector.broadcast %cst_86 : f32 to vector<8x64xf32>
    %271 = arith.mulf %270, %267 : vector<8x64xf32>
    %272 = arith.mulf %271, %267 : vector<8x64xf32>
    %273 = arith.mulf %272, %267 : vector<8x64xf32>
    %274 = arith.addf %267, %273 : vector<8x64xf32>
    %cst_87 = arith.constant 0.797884583 : f32
    %275 = vector.broadcast %cst_87 : f32 to vector<8x64xf32>
    %276 = arith.mulf %275, %274 : vector<8x64xf32>
    %277 = math.tanh %276 : vector<8x64xf32>
    %cst_88 = arith.constant 1.000000e+00 : f32
    %278 = vector.broadcast %cst_88 : f32 to vector<8x64xf32>
    %279 = arith.addf %278, %277 : vector<8x64xf32>
    %280 = arith.mulf %269, %279 : vector<8x64xf32>
    %281 = arith.truncf %280 : vector<8x64xf32> to vector<8x64xbf16>
    %cst_89 = arith.constant dense<0.000000e+00> : vector<8x32xf32>
    %282 = tpu.matmul %281, %17, %cst_89 {dimension_numbers = #tpu.dot_dimension_numbers<[1], [0], [0], [1], [0, 0, 1, 1], [], []>} : vector<8x64xbf16>, vector<64x32xbf16>, vector<8x32xf32> -> vector<8x32xf32>
    %283 = arith.addf %243, %282 : vector<8x32xf32>
    %284 = vector.broadcast %6 : vector<1x32xf32> to vector<8x32xf32>
    %285 = arith.addf %283, %284 : vector<8x32xf32>
    %286 = vector.extract_strided_slice %285 {offsets = [0, 0], sizes = [4, 32], strides = [1, 1]} : vector<8x32xf32> to vector<4x32xf32>
    %287 = vector.extract_strided_slice %285 {offsets = [4, 0], sizes = [4, 32], strides = [1, 1]} : vector<8x32xf32> to vector<4x32xf32>
    %288 = arith.addf %42, %18 : vector<32x512xf32>
    %cst_90 = arith.constant dense<0.000000e+00> : vector<512xf32>
    %289 = vector.multi_reduction <add>, %288, %cst_90 [0] : vector<32x512xf32> to vector<512xf32>
    %290 = vector.shape_cast %289 : vector<512xf32> to vector<1x512xf32>
    %cst_91 = arith.constant 3.200000e+01 : f32
    %291 = vector.broadcast %cst_91 : f32 to vector<1x512xf32>
    %292 = arith.divf %290, %291 : vector<1x512xf32>
    %293 = vector.broadcast %292 : vector<1x512xf32> to vector<32x512xf32>
    %294 = arith.subf %288, %293 : vector<32x512xf32>
    %295 = arith.mulf %294, %294 : vector<32x512xf32>
    %cst_92 = arith.constant dense<0.000000e+00> : vector<512xf32>
    %296 = vector.multi_reduction <add>, %295, %cst_92 [0] : vector<32x512xf32> to vector<512xf32>
    %297 = vector.shape_cast %296 : vector<512xf32> to vector<1x512xf32>
    %cst_93 = arith.constant 3.200000e+01 : f32
    %298 = vector.broadcast %cst_93 : f32 to vector<1x512xf32>
    %299 = arith.divf %297, %298 : vector<1x512xf32>
    %cst_94 = arith.constant 9.99999974E-6 : f32
    %300 = vector.broadcast %cst_94 : f32 to vector<1x512xf32>
    %301 = arith.addf %299, %300 : vector<1x512xf32>
    %302 = math.rsqrt %301 : vector<1x512xf32>
    %303 = vector.broadcast %302 : vector<1x512xf32> to vector<32x512xf32>
    %304 = arith.mulf %294, %303 : vector<32x512xf32>
    %305 = vector.broadcast %21 : vector<32x1xf32> to vector<32x512xf32>
    %306 = arith.mulf %304, %305 : vector<32x512xf32>
    %307 = vector.broadcast %23 : vector<32x1xf32> to vector<32x512xf32>
    %308 = arith.addf %306, %307 : vector<32x512xf32>
    %309 = arith.truncf %308 : vector<32x512xf32> to vector<32x512xbf16>
    %cst_95 = arith.constant dense<0.000000e+00> : vector<4xf32>
    %310 = vector.multi_reduction <add>, %286, %cst_95 [1] : vector<4x32xf32> to vector<4xf32>
    %311 = vector.shape_cast %310 : vector<4xf32> to vector<4x1xf32>
    %cst_96 = arith.constant 3.200000e+01 : f32
    %312 = vector.broadcast %cst_96 : f32 to vector<4x1xf32>
    %313 = arith.divf %311, %312 : vector<4x1xf32>
    %314 = vector.broadcast %313 : vector<4x1xf32> to vector<4x32xf32>
    %315 = arith.subf %286, %314 : vector<4x32xf32>
    %316 = arith.mulf %315, %315 : vector<4x32xf32>
    %cst_97 = arith.constant dense<0.000000e+00> : vector<4xf32>
    %317 = vector.multi_reduction <add>, %316, %cst_97 [1] : vector<4x32xf32> to vector<4xf32>
    %318 = vector.shape_cast %317 : vector<4xf32> to vector<4x1xf32>
    %cst_98 = arith.constant 3.200000e+01 : f32
    %319 = vector.broadcast %cst_98 : f32 to vector<4x1xf32>
    %320 = arith.divf %318, %319 : vector<4x1xf32>
    %cst_99 = arith.constant 9.99999974E-6 : f32
    %321 = vector.broadcast %cst_99 : f32 to vector<4x1xf32>
    %322 = arith.addf %320, %321 : vector<4x1xf32>
    %323 = math.rsqrt %322 : vector<4x1xf32>
    %324 = vector.broadcast %323 : vector<4x1xf32> to vector<4x32xf32>
    %325 = arith.mulf %315, %324 : vector<4x32xf32>
    %326 = vector.broadcast %7 : vector<1x32xf32> to vector<4x32xf32>
    %327 = arith.mulf %325, %326 : vector<4x32xf32>
    %328 = vector.broadcast %8 : vector<1x32xf32> to vector<4x32xf32>
    %329 = arith.addf %327, %328 : vector<4x32xf32>
    %330 = arith.truncf %329 : vector<4x32xf32> to vector<4x32xbf16>
    %cst_100 = arith.constant dense<0.000000e+00> : vector<4xf32>
    %331 = vector.multi_reduction <add>, %287, %cst_100 [1] : vector<4x32xf32> to vector<4xf32>
    %332 = vector.shape_cast %331 : vector<4xf32> to vector<4x1xf32>
    %cst_101 = arith.constant 3.200000e+01 : f32
    %333 = vector.broadcast %cst_101 : f32 to vector<4x1xf32>
    %334 = arith.divf %332, %333 : vector<4x1xf32>
    %335 = vector.broadcast %334 : vector<4x1xf32> to vector<4x32xf32>
    %336 = arith.subf %287, %335 : vector<4x32xf32>
    %337 = arith.mulf %336, %336 : vector<4x32xf32>
    %cst_102 = arith.constant dense<0.000000e+00> : vector<4xf32>
    %338 = vector.multi_reduction <add>, %337, %cst_102 [1] : vector<4x32xf32> to vector<4xf32>
    %339 = vector.shape_cast %338 : vector<4xf32> to vector<4x1xf32>
    %cst_103 = arith.constant 3.200000e+01 : f32
    %340 = vector.broadcast %cst_103 : f32 to vector<4x1xf32>
    %341 = arith.divf %339, %340 : vector<4x1xf32>
    %cst_104 = arith.constant 9.99999974E-6 : f32
    %342 = vector.broadcast %cst_104 : f32 to vector<4x1xf32>
    %343 = arith.addf %341, %342 : vector<4x1xf32>
    %344 = math.rsqrt %343 : vector<4x1xf32>
    %345 = vector.broadcast %344 : vector<4x1xf32> to vector<4x32xf32>
    %346 = arith.mulf %336, %345 : vector<4x32xf32>
    %347 = vector.broadcast %7 : vector<1x32xf32> to vector<4x32xf32>
    %348 = arith.mulf %346, %347 : vector<4x32xf32>
    %349 = vector.broadcast %8 : vector<1x32xf32> to vector<4x32xf32>
    %350 = arith.addf %348, %349 : vector<4x32xf32>
    %351 = arith.truncf %350 : vector<4x32xf32> to vector<4x32xbf16>
    %cst_105 = arith.constant dense<0.000000e+00> : vector<8x512xf32>
    %352 = tpu.matmul %33, %309, %cst_105 {dimension_numbers = #tpu.dot_dimension_numbers<[1], [0], [0], [1], [0, 0, 1, 1], [], []>} : vector<8x32xbf16>, vector<32x512xbf16>, vector<8x512xf32> -> vector<8x512xf32>
    %cst_106 = arith.constant 0.176776692 : f32
    %353 = vector.broadcast %cst_106 : f32 to vector<8x512xf32>
    %354 = arith.mulf %352, %353 : vector<8x512xf32>
    %cst_107 = arith.constant dense<0.000000e+00> : vector<16x4xf32>
    %355 = tpu.matmul %34, %330, %cst_107 {dimension_numbers = #tpu.dot_dimension_numbers<[1], [1], [0], [0], [0, 0, 1, 0], [], []>} : vector<16x32xbf16>, vector<4x32xbf16>, vector<16x4xf32> -> vector<16x4xf32>
    %cst_108 = arith.constant dense<0.000000e+00> : vector<16x4xf32>
    %356 = tpu.matmul %34, %351, %cst_108 {dimension_numbers = #tpu.dot_dimension_numbers<[1], [1], [0], [0], [0, 0, 1, 0], [], []>} : vector<16x32xbf16>, vector<4x32xbf16>, vector<16x4xf32> -> vector<16x4xf32>
    %357 = vector.extract_strided_slice %355 {offsets = [0, 0], sizes = [8, 1], strides = [1, 1]} : vector<16x4xf32> to vector<8x1xf32>
    %358 = vector.extract_strided_slice %356 {offsets = [0, 0], sizes = [8, 1], strides = [1, 1]} : vector<16x4xf32> to vector<8x1xf32>
    %359 = vector.shape_cast %357 : vector<8x1xf32> to vector<8x1xf32>
    %360 = vector.broadcast %359 : vector<8x1xf32> to vector<8x512xf32>
    %361 = vector.shape_cast %358 : vector<8x1xf32> to vector<8x1xf32>
    %362 = vector.broadcast %361 : vector<8x1xf32> to vector<8x512xf32>
    %363 = arith.select %40, %360, %362 : vector<8x512xi1>, vector<8x512xf32>
    %364 = arith.mulf %354, %363 : vector<8x512xf32>
    %365 = vector.extract_strided_slice %355 {offsets = [0, 1], sizes = [8, 1], strides = [1, 1]} : vector<16x4xf32> to vector<8x1xf32>
    %366 = vector.extract_strided_slice %356 {offsets = [0, 1], sizes = [8, 1], strides = [1, 1]} : vector<16x4xf32> to vector<8x1xf32>
    %367 = vector.shape_cast %365 : vector<8x1xf32> to vector<8x1xf32>
    %368 = vector.broadcast %367 : vector<8x1xf32> to vector<8x512xf32>
    %369 = vector.shape_cast %366 : vector<8x1xf32> to vector<8x1xf32>
    %370 = vector.broadcast %369 : vector<8x1xf32> to vector<8x512xf32>
    %371 = arith.select %40, %368, %370 : vector<8x512xi1>, vector<8x512xf32>
    %372 = arith.mulf %354, %371 : vector<8x512xf32>
    %373 = arith.maximumf %364, %372 : vector<8x512xf32>
    %374 = vector.extract_strided_slice %355 {offsets = [0, 2], sizes = [8, 1], strides = [1, 1]} : vector<16x4xf32> to vector<8x1xf32>
    %375 = vector.extract_strided_slice %356 {offsets = [0, 2], sizes = [8, 1], strides = [1, 1]} : vector<16x4xf32> to vector<8x1xf32>
    %376 = vector.shape_cast %374 : vector<8x1xf32> to vector<8x1xf32>
    %377 = vector.broadcast %376 : vector<8x1xf32> to vector<8x512xf32>
    %378 = vector.shape_cast %375 : vector<8x1xf32> to vector<8x1xf32>
    %379 = vector.broadcast %378 : vector<8x1xf32> to vector<8x512xf32>
    %380 = arith.select %40, %377, %379 : vector<8x512xi1>, vector<8x512xf32>
    %381 = arith.mulf %354, %380 : vector<8x512xf32>
    %382 = arith.maximumf %373, %381 : vector<8x512xf32>
    %383 = vector.extract_strided_slice %355 {offsets = [0, 3], sizes = [8, 1], strides = [1, 1]} : vector<16x4xf32> to vector<8x1xf32>
    %384 = vector.extract_strided_slice %356 {offsets = [0, 3], sizes = [8, 1], strides = [1, 1]} : vector<16x4xf32> to vector<8x1xf32>
    %385 = vector.shape_cast %383 : vector<8x1xf32> to vector<8x1xf32>
    %386 = vector.broadcast %385 : vector<8x1xf32> to vector<8x512xf32>
    %387 = vector.shape_cast %384 : vector<8x1xf32> to vector<8x1xf32>
    %388 = vector.broadcast %387 : vector<8x1xf32> to vector<8x512xf32>
    %389 = arith.select %40, %386, %388 : vector<8x512xi1>, vector<8x512xf32>
    %390 = arith.mulf %354, %389 : vector<8x512xf32>
    %391 = arith.maximumf %382, %390 : vector<8x512xf32>
    %cst_109 = arith.constant 0.000000e+00 : f32
    %392 = vector.broadcast %cst_109 : f32 to vector<8x512xf32>
    %cst_110 = arith.constant 0.000000e+00 : f32
    %393 = vector.broadcast %cst_110 : f32 to vector<8x512xf32>
    %394 = vector.extract_strided_slice %355 {offsets = [0, 0], sizes = [8, 1], strides = [1, 1]} : vector<16x4xf32> to vector<8x1xf32>
    %395 = vector.extract_strided_slice %356 {offsets = [0, 0], sizes = [8, 1], strides = [1, 1]} : vector<16x4xf32> to vector<8x1xf32>
    %396 = vector.shape_cast %394 : vector<8x1xf32> to vector<8x1xf32>
    %397 = vector.broadcast %396 : vector<8x1xf32> to vector<8x512xf32>
    %398 = vector.shape_cast %395 : vector<8x1xf32> to vector<8x1xf32>
    %399 = vector.broadcast %398 : vector<8x1xf32> to vector<8x512xf32>
    %400 = arith.select %40, %397, %399 : vector<8x512xi1>, vector<8x512xf32>
    %401 = arith.mulf %354, %400 : vector<8x512xf32>
    %402 = arith.subf %401, %391 : vector<8x512xf32>
    %403 = math.exp %402 : vector<8x512xf32>
    %404 = arith.addf %392, %403 : vector<8x512xf32>
    %405 = vector.extract_strided_slice %355 {offsets = [8, 0], sizes = [8, 1], strides = [1, 1]} : vector<16x4xf32> to vector<8x1xf32>
    %406 = vector.extract_strided_slice %356 {offsets = [8, 0], sizes = [8, 1], strides = [1, 1]} : vector<16x4xf32> to vector<8x1xf32>
    %407 = vector.shape_cast %405 : vector<8x1xf32> to vector<8x1xf32>
    %408 = vector.broadcast %407 : vector<8x1xf32> to vector<8x512xf32>
    %409 = vector.shape_cast %406 : vector<8x1xf32> to vector<8x1xf32>
    %410 = vector.broadcast %409 : vector<8x1xf32> to vector<8x512xf32>
    %411 = arith.select %40, %408, %410 : vector<8x512xi1>, vector<8x512xf32>
    %412 = arith.mulf %403, %411 : vector<8x512xf32>
    %413 = arith.addf %393, %412 : vector<8x512xf32>
    %414 = vector.extract_strided_slice %355 {offsets = [0, 1], sizes = [8, 1], strides = [1, 1]} : vector<16x4xf32> to vector<8x1xf32>
    %415 = vector.extract_strided_slice %356 {offsets = [0, 1], sizes = [8, 1], strides = [1, 1]} : vector<16x4xf32> to vector<8x1xf32>
    %416 = vector.shape_cast %414 : vector<8x1xf32> to vector<8x1xf32>
    %417 = vector.broadcast %416 : vector<8x1xf32> to vector<8x512xf32>
    %418 = vector.shape_cast %415 : vector<8x1xf32> to vector<8x1xf32>
    %419 = vector.broadcast %418 : vector<8x1xf32> to vector<8x512xf32>
    %420 = arith.select %40, %417, %419 : vector<8x512xi1>, vector<8x512xf32>
    %421 = arith.mulf %354, %420 : vector<8x512xf32>
    %422 = arith.subf %421, %391 : vector<8x512xf32>
    %423 = math.exp %422 : vector<8x512xf32>
    %424 = arith.addf %404, %423 : vector<8x512xf32>
    %425 = vector.extract_strided_slice %355 {offsets = [8, 1], sizes = [8, 1], strides = [1, 1]} : vector<16x4xf32> to vector<8x1xf32>
    %426 = vector.extract_strided_slice %356 {offsets = [8, 1], sizes = [8, 1], strides = [1, 1]} : vector<16x4xf32> to vector<8x1xf32>
    %427 = vector.shape_cast %425 : vector<8x1xf32> to vector<8x1xf32>
    %428 = vector.broadcast %427 : vector<8x1xf32> to vector<8x512xf32>
    %429 = vector.shape_cast %426 : vector<8x1xf32> to vector<8x1xf32>
    %430 = vector.broadcast %429 : vector<8x1xf32> to vector<8x512xf32>
    %431 = arith.select %40, %428, %430 : vector<8x512xi1>, vector<8x512xf32>
    %432 = arith.mulf %423, %431 : vector<8x512xf32>
    %433 = arith.addf %413, %432 : vector<8x512xf32>
    %434 = vector.extract_strided_slice %355 {offsets = [0, 2], sizes = [8, 1], strides = [1, 1]} : vector<16x4xf32> to vector<8x1xf32>
    %435 = vector.extract_strided_slice %356 {offsets = [0, 2], sizes = [8, 1], strides = [1, 1]} : vector<16x4xf32> to vector<8x1xf32>
    %436 = vector.shape_cast %434 : vector<8x1xf32> to vector<8x1xf32>
    %437 = vector.broadcast %436 : vector<8x1xf32> to vector<8x512xf32>
    %438 = vector.shape_cast %435 : vector<8x1xf32> to vector<8x1xf32>
    %439 = vector.broadcast %438 : vector<8x1xf32> to vector<8x512xf32>
    %440 = arith.select %40, %437, %439 : vector<8x512xi1>, vector<8x512xf32>
    %441 = arith.mulf %354, %440 : vector<8x512xf32>
    %442 = arith.subf %441, %391 : vector<8x512xf32>
    %443 = math.exp %442 : vector<8x512xf32>
    %444 = arith.addf %424, %443 : vector<8x512xf32>
    %445 = vector.extract_strided_slice %355 {offsets = [8, 2], sizes = [8, 1], strides = [1, 1]} : vector<16x4xf32> to vector<8x1xf32>
    %446 = vector.extract_strided_slice %356 {offsets = [8, 2], sizes = [8, 1], strides = [1, 1]} : vector<16x4xf32> to vector<8x1xf32>
    %447 = vector.shape_cast %445 : vector<8x1xf32> to vector<8x1xf32>
    %448 = vector.broadcast %447 : vector<8x1xf32> to vector<8x512xf32>
    %449 = vector.shape_cast %446 : vector<8x1xf32> to vector<8x1xf32>
    %450 = vector.broadcast %449 : vector<8x1xf32> to vector<8x512xf32>
    %451 = arith.select %40, %448, %450 : vector<8x512xi1>, vector<8x512xf32>
    %452 = arith.mulf %443, %451 : vector<8x512xf32>
    %453 = arith.addf %433, %452 : vector<8x512xf32>
    %454 = vector.extract_strided_slice %355 {offsets = [0, 3], sizes = [8, 1], strides = [1, 1]} : vector<16x4xf32> to vector<8x1xf32>
    %455 = vector.extract_strided_slice %356 {offsets = [0, 3], sizes = [8, 1], strides = [1, 1]} : vector<16x4xf32> to vector<8x1xf32>
    %456 = vector.shape_cast %454 : vector<8x1xf32> to vector<8x1xf32>
    %457 = vector.broadcast %456 : vector<8x1xf32> to vector<8x512xf32>
    %458 = vector.shape_cast %455 : vector<8x1xf32> to vector<8x1xf32>
    %459 = vector.broadcast %458 : vector<8x1xf32> to vector<8x512xf32>
    %460 = arith.select %40, %457, %459 : vector<8x512xi1>, vector<8x512xf32>
    %461 = arith.mulf %354, %460 : vector<8x512xf32>
    %462 = arith.subf %461, %391 : vector<8x512xf32>
    %463 = math.exp %462 : vector<8x512xf32>
    %464 = arith.addf %444, %463 : vector<8x512xf32>
    %465 = vector.extract_strided_slice %355 {offsets = [8, 3], sizes = [8, 1], strides = [1, 1]} : vector<16x4xf32> to vector<8x1xf32>
    %466 = vector.extract_strided_slice %356 {offsets = [8, 3], sizes = [8, 1], strides = [1, 1]} : vector<16x4xf32> to vector<8x1xf32>
    %467 = vector.shape_cast %465 : vector<8x1xf32> to vector<8x1xf32>
    %468 = vector.broadcast %467 : vector<8x1xf32> to vector<8x512xf32>
    %469 = vector.shape_cast %466 : vector<8x1xf32> to vector<8x1xf32>
    %470 = vector.broadcast %469 : vector<8x1xf32> to vector<8x512xf32>
    %471 = arith.select %40, %468, %470 : vector<8x512xi1>, vector<8x512xf32>
    %472 = arith.mulf %463, %471 : vector<8x512xf32>
    %473 = arith.addf %453, %472 : vector<8x512xf32>
    %474 = tpu.reciprocal %464 {approx = true} : vector<8x512xf32> -> vector<8x512xf32>
    %475 = arith.mulf %473, %474 : vector<8x512xf32>
    %476 = arith.truncf %475 : vector<8x512xf32> to vector<8x512xbf16>
    %cst_111 = arith.constant dense<0.000000e+00> : vector<32x512xf32>
    %477 = tpu.matmul %35, %476, %cst_111 {dimension_numbers = #tpu.dot_dimension_numbers<[1], [0], [0], [1], [0, 0, 1, 1], [], []>} : vector<32x8xbf16>, vector<8x512xbf16>, vector<32x512xf32> -> vector<32x512xf32>
    %478 = arith.addf %288, %477 : vector<32x512xf32>
    %479 = vector.broadcast %29 : vector<32x1xf32> to vector<32x512xf32>
    %480 = arith.addf %478, %479 : vector<32x512xf32>
    %cst_112 = arith.constant dense<0.000000e+00> : vector<512xf32>
    %481 = vector.multi_reduction <add>, %480, %cst_112 [0] : vector<32x512xf32> to vector<512xf32>
    %482 = vector.shape_cast %481 : vector<512xf32> to vector<1x512xf32>
    %cst_113 = arith.constant 3.200000e+01 : f32
    %483 = vector.broadcast %cst_113 : f32 to vector<1x512xf32>
    %484 = arith.divf %482, %483 : vector<1x512xf32>
    %485 = vector.broadcast %484 : vector<1x512xf32> to vector<32x512xf32>
    %486 = arith.subf %480, %485 : vector<32x512xf32>
    %487 = arith.mulf %486, %486 : vector<32x512xf32>
    %cst_114 = arith.constant dense<0.000000e+00> : vector<512xf32>
    %488 = vector.multi_reduction <add>, %487, %cst_114 [0] : vector<32x512xf32> to vector<512xf32>
    %489 = vector.shape_cast %488 : vector<512xf32> to vector<1x512xf32>
    %cst_115 = arith.constant 3.200000e+01 : f32
    %490 = vector.broadcast %cst_115 : f32 to vector<1x512xf32>
    %491 = arith.divf %489, %490 : vector<1x512xf32>
    %cst_116 = arith.constant 9.99999974E-6 : f32
    %492 = vector.broadcast %cst_116 : f32 to vector<1x512xf32>
    %493 = arith.addf %491, %492 : vector<1x512xf32>
    %494 = math.rsqrt %493 : vector<1x512xf32>
    %495 = vector.broadcast %494 : vector<1x512xf32> to vector<32x512xf32>
    %496 = arith.mulf %486, %495 : vector<32x512xf32>
    %497 = vector.broadcast %25 : vector<32x1xf32> to vector<32x512xf32>
    %498 = arith.mulf %496, %497 : vector<32x512xf32>
    %499 = vector.broadcast %27 : vector<32x1xf32> to vector<32x512xf32>
    %500 = arith.addf %498, %499 : vector<32x512xf32>
    %501 = arith.truncf %500 : vector<32x512xf32> to vector<32x512xbf16>
    %cst_117 = arith.constant dense<0.000000e+00> : vector<64x512xf32>
    %502 = tpu.matmul %36, %501, %cst_117 {dimension_numbers = #tpu.dot_dimension_numbers<[1], [0], [0], [1], [0, 0, 1, 1], [], []>} : vector<64x32xbf16>, vector<32x512xbf16>, vector<64x512xf32> -> vector<64x512xf32>
    %503 = vector.broadcast %32 : vector<64x1xf32> to vector<64x512xf32>
    %504 = arith.addf %502, %503 : vector<64x512xf32>
    %cst_118 = arith.constant 5.000000e-01 : f32
    %505 = vector.broadcast %cst_118 : f32 to vector<64x512xf32>
    %506 = arith.mulf %505, %504 : vector<64x512xf32>
    %cst_119 = arith.constant 4.471500e-02 : f32
    %507 = vector.broadcast %cst_119 : f32 to vector<64x512xf32>
    %508 = arith.mulf %507, %504 : vector<64x512xf32>
    %509 = arith.mulf %508, %504 : vector<64x512xf32>
    %510 = arith.mulf %509, %504 : vector<64x512xf32>
    %511 = arith.addf %504, %510 : vector<64x512xf32>
    %cst_120 = arith.constant 0.797884583 : f32
    %512 = vector.broadcast %cst_120 : f32 to vector<64x512xf32>
    %513 = arith.mulf %512, %511 : vector<64x512xf32>
    %514 = math.tanh %513 : vector<64x512xf32>
    %cst_121 = arith.constant 1.000000e+00 : f32
    %515 = vector.broadcast %cst_121 : f32 to vector<64x512xf32>
    %516 = arith.addf %515, %514 : vector<64x512xf32>
    %517 = arith.mulf %506, %516 : vector<64x512xf32>
    %518 = arith.truncf %517 : vector<64x512xf32> to vector<64x512xbf16>
    %cst_122 = arith.constant dense<0.000000e+00> : vector<32x512xf32>
    %519 = tpu.matmul %37, %518, %cst_122 {dimension_numbers = #tpu.dot_dimension_numbers<[1], [0], [0], [1], [0, 0, 1, 1], [], []>} : vector<32x64xbf16>, vector<64x512xbf16>, vector<32x512xf32> -> vector<32x512xf32>
    %520 = arith.addf %480, %519 : vector<32x512xf32>
    %521 = vector.broadcast %31 : vector<32x1xf32> to vector<32x512xf32>
    %522 = arith.addf %520, %521 : vector<32x512xf32>
    %523 = vector.extract_strided_slice %522 {offsets = [0, 256], sizes = [32, 256], strides = [1, 1]} : vector<32x512xf32> to vector<32x256xf32>
    %524 = vector.extract_strided_slice %522 {offsets = [0, 0], sizes = [32, 256], strides = [1, 1]} : vector<32x512xf32> to vector<32x256xf32>
    %525 = arith.subf %523, %524 : vector<32x256xf32>
    %526 = math.absf %525 : vector<32x256xf32>
    %c0_123 = arith.constant 0 : index
    %c0_124 = arith.constant 0 : index
    %c0_125 = arith.constant 0 : index
    %527 = vector.load %arg17[%c0_123, %c0_124, %c0_125] : memref<1x32x256xf32, #tpu.memory_space<vmem>>, vector<1x32x256xf32>
    %528 = vector.shape_cast %527 : vector<1x32x256xf32> to vector<32x256xf32>
    %529 = vector.shape_cast %526 : vector<32x256xf32> to vector<1x32x256xf32>
    tpu.vector_store %arg17[%c0_123, %c0_124, %c0_125], %529 {strides = array<i32>} : memref<1x32x256xf32, #tpu.memory_space<vmem>>, vector<1x32x256xf32>,
    return
  }
  func.func @transform_0(%arg0: i32) -> (i32, i32, i32) {
    %c0_i32 = arith.constant 0 : i32
    %c0_i32_0 = arith.constant 0 : i32
    %c0_i32_1 = arith.constant 0 : i32
    return %arg0, %c0_i32, %c0_i32_0 : i32, i32, i32
  }
  func.func @transform_1(%arg0: i32) -> (i32, i32) {
    %c0_i32 = arith.constant 0 : i32
    %c0_i32_0 = arith.constant 0 : i32
    %c0_i32_1 = arith.constant 0 : i32
    return %c0_i32, %c0_i32_0 : i32, i32
  }
  func.func @transform_2(%arg0: i32) -> (i32, i32) {
    %c0_i32 = arith.constant 0 : i32
    %c0_i32_0 = arith.constant 0 : i32
    %c0_i32_1 = arith.constant 0 : i32
    return %c0_i32, %c0_i32_0 : i32, i32
  }
  func.func @transform_3(%arg0: i32) -> (i32, i32) {
    %c0_i32 = arith.constant 0 : i32
    %c0_i32_0 = arith.constant 0 : i32
    %c0_i32_1 = arith.constant 0 : i32
    return %c0_i32, %c0_i32_0 : i32, i32
  }
  func.func @transform_4(%arg0: i32) -> (i32, i32) {
    %c0_i32 = arith.constant 0 : i32
    %c0_i32_0 = arith.constant 0 : i32
    %c0_i32_1 = arith.constant 0 : i32
    return %c0_i32, %c0_i32_0 : i32, i32
  }
  func.func @transform_5(%arg0: i32) -> (i32, i32) {
    %c0_i32 = arith.constant 0 : i32
    %c0_i32_0 = arith.constant 0 : i32
    %c0_i32_1 = arith.constant 0 : i32
    return %c0_i32, %c0_i32_0 : i32, i32
  }
  func.func @transform_6(%arg0: i32) -> (i32, i32) {
    %c0_i32 = arith.constant 0 : i32
    %c0_i32_0 = arith.constant 0 : i32
    %c0_i32_1 = arith.constant 0 : i32
    return %c0_i32, %c0_i32_0 : i32, i32
  }
  func.func @transform_7(%arg0: i32) -> (i32, i32) {
    %c0_i32 = arith.constant 0 : i32
    %c0_i32_0 = arith.constant 0 : i32
    %c0_i32_1 = arith.constant 0 : i32
    return %c0_i32, %c0_i32_0 : i32, i32
  }
  func.func @transform_8(%arg0: i32) -> (i32, i32) {
    %c0_i32 = arith.constant 0 : i32
    %c0_i32_0 = arith.constant 0 : i32
    %c0_i32_1 = arith.constant 0 : i32
    return %c0_i32, %c0_i32_0 : i32, i32
  }
  func.func @transform_9(%arg0: i32) -> (i32, i32, i32) {
    %c0_i32 = arith.constant 0 : i32
    %c0_i32_0 = arith.constant 0 : i32
    %c0_i32_1 = arith.constant 0 : i32
    %c0_i32_2 = arith.constant 0 : i32
    return %c0_i32, %c0_i32_0, %c0_i32_1 : i32, i32, i32
  }
  func.func @transform_10(%arg0: i32) -> (i32, i32) {
    %c0_i32 = arith.constant 0 : i32
    %c0_i32_0 = arith.constant 0 : i32
    %c0_i32_1 = arith.constant 0 : i32
    return %c0_i32, %c0_i32_0 : i32, i32
  }
  func.func @transform_11(%arg0: i32) -> (i32, i32) {
    %c0_i32 = arith.constant 0 : i32
    %c0_i32_0 = arith.constant 0 : i32
    %c0_i32_1 = arith.constant 0 : i32
    return %c0_i32, %c0_i32_0 : i32, i32
  }
  func.func @transform_12(%arg0: i32) -> (i32, i32) {
    %c0_i32 = arith.constant 0 : i32
    %c0_i32_0 = arith.constant 0 : i32
    %c0_i32_1 = arith.constant 0 : i32
    return %c0_i32, %c0_i32_0 : i32, i32
  }
  func.func @transform_13(%arg0: i32) -> (i32, i32) {
    %c0_i32 = arith.constant 0 : i32
    %c0_i32_0 = arith.constant 0 : i32
    %c0_i32_1 = arith.constant 0 : i32
    return %c0_i32, %c0_i32_0 : i32, i32
  }
  func.func @transform_14(%arg0: i32) -> (i32, i32) {
    %c0_i32 = arith.constant 0 : i32
    %c0_i32_0 = arith.constant 0 : i32
    %c0_i32_1 = arith.constant 0 : i32
    return %c0_i32, %c0_i32_0 : i32, i32
  }
  func.func @transform_15(%arg0: i32) -> (i32, i32) {
    %c0_i32 = arith.constant 0 : i32
    %c0_i32_0 = arith.constant 0 : i32
    %c0_i32_1 = arith.constant 0 : i32
    return %c0_i32, %c0_i32_0 : i32, i32
  }
  func.func @transform_16(%arg0: i32) -> (i32, i32, i32) {
    %c0_i32 = arith.constant 0 : i32
    %c0_i32_0 = arith.constant 0 : i32
    %c0_i32_1 = arith.constant 0 : i32
    return %arg0, %c0_i32, %c0_i32_0 : i32, i32, i32
  }
}

</mosaic_0001>

<bundles_post_ra>
// kernel: context_aggregator_forward.1
= control target key start
LH: loop header
LB: loop body
LE: loop exit
PB: predicated region body
PF: predicated region fallthrough
CT: control target
= control target key end

     0   :  { %s4887_s21 = smov 0   ;;  %s6304_s0 = inlined_call_operand.vmem [shape: f32[2,32,512], index: 0, kind: input, shape index: {}]   ;;  %s6305_s1 = inlined_call_operand.vmem [shape: f32[16,32], index: 1, kind: input, shape index: {}]   ;;  %s6306_s2 = inlined_call_operand.vmem [shape: f32[4,1], index: 2, kind: input, shape index: {}]   ;;  %s6307_s3 = inlined_call_operand.vmem [shape: f32[1,64], index: 3, kind: input, shape index: {}]   ;;  %s6308_s4 = inlined_call_operand.vmem [shape: bf16[32,768], index: 4, kind: input, shape index: {}]   ;;  %s6309_s5 = inlined_call_operand.vmem [shape: bf16[256,32], index: 5, kind: input, shape index: {}]   ;;  %s6310_s6 = inlined_call_operand.vmem [shape: bf16[32,64], index: 6, kind: input, shape index: {}]   ;;  %s6311_s7 = inlined_call_operand.vmem [shape: bf16[64,32], index: 7, kind: input, shape index: {}]   ;;  %s6312_s8 = inlined_call_operand.vmem [shape: f32[32,512], index: 8, kind: input, shape index: {}]   ;;  %s6313_s9 = inlined_call_operand.vmem [shape: f32[6,32,1], index: 9, kind: input, shape index: {}]   ;;  %s6314_s10 = inlined_call_operand.vmem [shape: f32[64,1], index: 10, kind: input, shape index: {}]   ;;  %s6315_s11 = inlined_call_operand.vmem [shape: bf16[8,32], index: 11, kind: input, shape index: {}]   ;;  %s6316_s12 = inlined_call_operand.vmem [shape: bf16[16,32], index: 12, kind: input, shape index: {}]   ;;  %s6317_s13 = inlined_call_operand.vmem [shape: bf16[32,8], index: 13, kind: input, shape index: {}]   ;;  %s6318_s14 = inlined_call_operand.vmem [shape: bf16[64,32], index: 14, kind: input, shape index: {}]   ;;  %s6319_s15 = inlined_call_operand.vmem [shape: bf16[32,64], index: 15, kind: input, shape index: {}]   ;;  %s6320_s16 = inlined_call_operand.vmem [shape: f32[2,32,256], index: 16, kind: output, shape index: {}]  }
   0x1   :  { %6345 = sst [smem:[#allocation25_spill]] %s6304_s0 }
   0x2 LB: > { %s4210_s22 = sadd.s32 4294967295, %s4793_s21   ;;  %p4214_p0 = scmp.ge.s32.totalorder %s4793_s21, 1  ;;  %s4793_s21 = sphi %s4887_s21, %s26_s21  }
   0x3   : > { %p462_p1 = scmp.lt.s32.totalorder %s4793_s21, 3 }
   0x5   : > { %p463_p2 = pnand %p4214_p0, %p462_p1 }
   0x7   : > { %466 = sbr.rel (%p463_p2) target bundleno = 4968 (0x1368), region = 84 }
   0xe   : > { %p512_p3 = scmp.lt.s32.totalorder %s4210_s22, 1  ;;  %v6321_v0 = vmov 0   ;;  %s6346_s26 = sld [smem:[#allocation25_spill]]  ;;  %v4910_v1 = vld [vmem:[%s6305_s1 + $0x8] sm:$0xff]  ;;  %v526_v2 = vld [vmem:[%s6306_s2] sm:$0xf] }
   0xf   : > { %727 = vmatprep.mubr.bf16.mxu0 %v6321_v0  ;;  %768 = vmatprep.mubr.bf16.mxu1 %v6321_v0  ;;  %v525_v19 = vpack.c.bf16 %v4910_v1, %v4910_v1  ;;  %vm691_vm0 = vcmask 261120   ;;  %vm777_vm1 = vcmask 1043456   ;;  %vm4797_vm2 = vmmov 0   ;;  %s4798_s19 = smov 64  }
  0x10   : > { %s6396_s22 = smov (!%p512_p3, %s4210_s22), 1  ;;  %4521 = vset.pattern.permute.xlu0 %v6321_v0  ;;  %4532 = vset.pattern.permute.xlu1 %v6321_v0  ;;  %vm1123_vm3 = vcmask 523264   ;;  %vm1187_vm4 = vcmask 1041408   ;;  %vm1170_vm5 = vcmask 27648   ;;  %vm1183_vm6 = vcmask 31744  }
  0x11   : > { %s4310_s23 = sshll.u32 %s6396_s22, 7  ;;  %686 = vperm.xlu0 %4521, %v526_v2   ;;  %v690_v28 = vrot.slane %v525_v19, 2  ;;  %vm2592_vm7 = vcmask 261124   ;;  %vm2567_vm8 = vcmask 257024   ;;  %vm3042_vm9 = vcmask 64512  }
  0x14   : > { %s4905_s27 = scalar_lea.vmem %s6346_s26, %s4310_s23  ;;  %s4311_s26 = sshll.u32 %s6396_s22, 6 }
  0x15   : > { %v661_v3 = vld [vmem:[%s4905_s27 + $0x8] sm:$0xff]  ;;  %v663_v5 = vld [vmem:[%s4905_s27 + $0x18] sm:$0xff]  ;;  %v660_v8 = vld [vmem:[%s4905_s27] sm:$0xff]  ;;  %s6283_s30 = scalar_lea.vmem %s6320_s16, %s4311_s26 }
  0x16   : > { %v665_v4 = vld [vmem:[%s4905_s27 + $0x28] sm:$0xff]  ;;  %v667_v7 = vld [vmem:[%s4905_s27 + $0x38] sm:$0xff]  ;;  %v664_v9 = vld [vmem:[%s4905_s27 + $0x20] sm:$0xff] }
  0x17   : > { %v677_v6 = vpack.c.bf16 %v665_v4, %v661_v3  ;;  %v679_v10 = vpack.c.bf16 %v667_v7, %v663_v5  ;;  %v676_v11 = vpack.c.bf16 %v664_v9, %v660_v8  ;;  %v662_v12 = vld [vmem:[%s4905_s27 + $0x10] sm:$0xff]  ;;  %v669_v14 = vld [vmem:[%s4905_s27 + $0x48] sm:$0xff]  ;;  %v671_v17 = vld [vmem:[%s4905_s27 + $0x58] sm:$0xff] }
  0x18   : > { %v666_v13 = vld [vmem:[%s4905_s27 + $0x30] sm:$0xff]  ;;  %v673_v16 = vld [vmem:[%s4905_s27 + $0x68] sm:$0xff]  ;;  %v675_v18 = vld [vmem:[%s4905_s27 + $0x78] sm:$0xff] }
  0x19   : > { %695 = vmatprep.subr.bf16.mxu0 %v677_v6  ;;  %v678_v15 = vpack.c.bf16 %v666_v13, %v662_v12  ;;  %736 = vmatprep.subr.bf16.mxu1 %v679_v10  ;;  %v681_v20 = vpack.c.bf16 %v673_v16, %v669_v14  ;;  %v668_v21 = vld [vmem:[%s4905_s27 + $0x40] sm:$0xff]  ;;  %v670_v23 = vld [vmem:[%s4905_s27 + $0x50] sm:$0xff]  ;;  %v683_v24 = vpack.c.bf16 %v675_v18, %v671_v17 }
  0x1a   : > { %696 = vmatpush1.bf16.msra.mxu0 %v676_v11  ;;  %v672_v22 = vld [vmem:[%s4905_s27 + $0x60] sm:$0xff]  ;;  %v674_v25 = vld [vmem:[%s4905_s27 + $0x70] sm:$0xff] }
  0x1b   : > { %737 = vmatpush1.bf16.msra.mxu1 %v678_v15  ;;  %697 = vmatprep.subr.bf16.mxu0 %v681_v20  ;;  %v680_v26 = vpack.c.bf16 %v672_v22, %v668_v21  ;;  %v682_v27 = vpack.c.bf16 %v674_v25, %v670_v23 }
  0x1c   : > { %738 = vmatprep.subr.bf16.mxu1 %v683_v24 }
  0x1e   : > { %698 = vmatpush1.bf16.msra.mxu0 %v680_v26 }
  0x1f   : > { %739 = vmatpush1.bf16.msra.mxu1 %v682_v27  ;;  %820 = vmatprep.subr.bf16.mxu0 %v677_v6 }
  0x20   : > { %860 = vmatprep.subr.bf16.mxu1 %v679_v10 }
  0x21   : > { %4219 = vmatmul.mubr.msk.bf16.vlgmr.msra.gmra.mrb[0].mxu0 %vm691_vm0, %v690_v28 }
  0x22   : > { %4220 = vmatmul.mubr.msk.bf16.vlgmr.msra.gmra.mrb[0].mxu1 %vm691_vm0, %v690_v28 }
  0x27   : > { %821 = vmatpush1.bf16.xpose.msra.mxu0 %v676_v11 }
  0x28   : > { %861 = vmatpush1.bf16.xpose.msra.mxu1 %v678_v15  ;;  %822 = vmatprep.subr.bf16.mxu0 %v681_v20 }
  0x29   : > { %862 = vmatprep.subr.bf16.mxu1 %v683_v24 }
  0x2f   : > { %823 = vmatpush1.bf16.xpose.msra.mxu0 %v680_v26 }
  0x30   : > { %863 = vmatpush1.bf16.xpose.msra.mxu1 %v682_v27 }
  0x90   : > { %v687_v29 = vpop.permute.xlu0 %686 }
  0xf4   : > { %v729_v30 = vpop.f32.mrb[0].mxu0 }
  0xf5   : > { %v730_v31 = vadd.f32 %v729_v30, %v687_v29  ;;  %v770_v32 = vpop.f32.mrb[0].mxu1  ;;  %v731_v33 = vpop.f32.mrb[1].mxu0 }
  0xf6   : > { %v771_v34 = vadd.f32 %v770_v32, %v687_v29  ;;  %v732_v35 = vadd.f32 %v731_v33, %v687_v29  ;;  %v772_v36 = vpop.f32.mrb[1].mxu1  ;;  %v733_v37 = vpop.f32.mrb[2].mxu0 }
  0xf7   : > { %v773_v38 = vadd.f32 %v772_v36, %v687_v29  ;;  %v774_v39 = vpop.f32.mrb[2].mxu1  ;;  %v734_v40 = vpop.f32.mrb[3].mxu0  ;;  %v778_v41 = vsel %vm777_vm1, %v730_v31, -inf  ;;  %v4552_v36 = vld [vmem:[%s6308_s4 + $0xc] ss:$24 sps:$4 sm:$0xff]  }
  0xf8   : > { %v775_v42 = vpop.f32.mrb[3].mxu1  ;;  %v799_v43 = vsel %vm777_vm1, %v771_v34, -inf  ;;  %v779_v44 = vsel %vm777_vm1, %v732_v35, -inf  ;;  %v4547_v37 = vld [vmem:[%s6308_s4] ss:$24 sps:$4 sm:$0xff]   ;;  %1033 = vmatprep.subr.bf16.mxu1 %v4552_v36 }
  0xf9   : > { %v800_v45 = vsel %vm777_vm1, %v773_v38, -inf  ;;  %v780_v46 = vmax.f32 %v778_v41, %v779_v44  ;;  %v4555_v39 = vld [vmem:[%s6308_s4 + $0x34] ss:$24 sps:$4 sm:$0xff]   ;;  %v4553_v41 = vld [vmem:[%s6308_s4 + $0x30] ss:$24 sps:$4 sm:$0xff]  }
  0xfa   : > { %v801_v47 = vmax.f32 %v799_v43, %v800_v45  ;;  %v4558_v40 = vld [vmem:[%s6308_s4 + $0x3c] ss:$24 sps:$4 sm:$0xff]   ;;  %v4556_v42 = vld [vmem:[%s6308_s4 + $0x38] ss:$24 sps:$4 sm:$0xff]  }
  0xfb   : > { %781 = vmax.xlane.f32.xlu1 %v780_v46  ;;  %v4561_v43 = vld [vmem:[%s6308_s4 + $0x14] ss:$24 sps:$4 sm:$0xff]   ;;  %v918_v46 = vlaneseq }
  0xfc   : > { %802 = vmax.xlane.f32.xlu0 %v801_v47 }
 0x188   : > { %v782_v48 = vpop.xlane.xlu1 %781 }
 0x189   : > { %v803_v49 = vpop.xlane.xlu0 %802  ;;  %v783_v50 = vsub.f32 %v730_v31, %v782_v48  ;;  %v784_v51 = vsub.f32 %v732_v35, %v782_v48  ;;  %v4981_v48 = vshrl.u32 %v918_v46, 7 }
 0x18a   : > { %v804_v52 = vsub.f32 %v771_v34, %v803_v49  ;;  %v805_v53 = vsub.f32 %v773_v38, %v803_v49  ;;  %v4550_v38 = vld [vmem:[%s6308_s4 + $0x8] ss:$24 sps:$4 sm:$0xff]  }
 0x18b   : > { %v785_v54 = vmul.f32 1.442695, %v783_v50  ;;  %v787_v57 = vmul.f32 1.442695, %v784_v51  ;;  %v920_v49 = vsub.s32 0, %v4981_v48  ;;  %v4987_v50 = vld [vmem:[%s6305_s1] sm:$0xff] }
 0x18c   : > { %v806_v55 = vmul.f32 1.442695, %v804_v52  ;;  %v808_v56 = vmul.f32 1.442695, %v805_v53  ;;  %v925_v51 = vsub.s32 1, %v4981_v48 }
 0x18d   : > { %4596 = vpow2.f32 %v785_v54  ;;  %v921_v52 = vrot.slane %v4987_v50, %v920_v49 }
 0x18e   : > { %4598 = vpow2.f32 %v806_v55  ;;  %v926_v55 = vrot.slane %v4987_v50, %v925_v51 }
 0x18f   : > { %4600 = vpow2.f32 %v808_v56 }
 0x190   : > { %4602 = vpow2.f32 %v787_v57 }
 0x197   : > { %v4597_v58 = vpop.eup %4596 }
 0x198   : > { %v4599_v59 = vpop.eup %4598  ;;  %v789_v3 = vsel %vm777_vm1, %v4597_v58, 0.0 }
 0x199   : > { %v4601_v60 = vpop.eup %4600  ;;  %v810_v61 = vsel %vm777_vm1, %v4599_v59, 0.0 }
 0x19a   : > { %v4603_v62 = vpop.eup %4602  ;;  %v811_v63 = vsel %vm777_vm1, %v4601_v60, 0.0 }
 0x19b   : > { %v812_v2 = vadd.f32 %v811_v63, %v810_v61  ;;  %v790_v4 = vsel %vm777_vm1, %v4603_v62, 0.0  ;;  %v4562_v61 = vld [vmem:[%s6308_s4 + $0x40] ss:$24 sps:$4 sm:$0xff]  }
 0x19c   : > { %v791_v5 = vadd.f32 %v790_v4, %v789_v3 }
 0x19d   : > { %813 = vadd.xlane.f32.xlu1 %v812_v2 }
 0x1a1   : > { %792 = vadd.xlane.f32.xlu1 %v791_v5 }
 0x22a   : > { %v814_v6 = vpop.xlane.xlu1 %813 }
 0x22b   : > { %4604 = vrcp.f32 %v814_v6 }
 0x22e   : > { %v793_v7 = vpop.xlane.xlu1 %792 }
 0x22f   : > { %4606 = vrcp.f32 %v793_v7 }
 0x235   : > { %v4605_v8 = vpop.eup %4604 }
 0x236   : > { %v817_v9 = vmul.f32 %v4605_v8, %v4601_v60  ;;  %v816_v10 = vmul.f32 %v4605_v8, %v4599_v59  ;;  %v4564_v60 = vld [vmem:[%s6308_s4 + $0x44] ss:$24 sps:$4 sm:$0xff]  }
 0x238   : > { %v819_v11 = vpack.c.bf16 %v817_v9, %v817_v9  ;;  %v818_v12 = vpack.c.bf16 %v816_v10, %v816_v10 }
 0x239   : > { %v4607_v13 = vpop.eup %4606 }
 0x23a   : > { %892 = vmatprep.mubr.bf16.mxu1 %v819_v11  ;;  %v796_v14 = vmul.f32 %v4607_v13, %v4603_v62  ;;  %v795_v15 = vmul.f32 %v4607_v13, %v4597_v58  ;;  %v4559_v58 = vld [vmem:[%s6308_s4 + $0x10] ss:$24 sps:$4 sm:$0xff]   ;;  %v4796_v62 = vmov 0.0  }
 0x23b   : > { %893 = vmatmul.mubr.bf16.vlgmr.msra.gmra.mrb[4].mxu1 %v818_v12 }
 0x23c   : > { %v798_v16 = vpack.c.bf16 %v796_v14, %v796_v14  ;;  %v797_v17 = vpack.c.bf16 %v795_v15, %v795_v15  ;;  %1065 = vmatprep.mubr.bf16.mxu1 %v6321_v0  ;;  %1034 = vmatpush1.bf16.msra.mxu1 %v4550_v38 }
 0x23d   : > { %1035 = vmatprep.subr.bf16.mxu1 %v4558_v40 }
 0x23e   : > { %852 = vmatprep.mubr.bf16.mxu0 %v798_v16 }
 0x23f   : > { %853 = vmatmul.mubr.bf16.vlgmr.msra.gmra.mrb[4].mxu0 %v797_v17 }
 0x240   : > { %1024 = vmatprep.mubr.bf16.mxu0 %v6321_v0  ;;  %1036 = vmatpush1.bf16.msra.mxu1 %v4556_v42 }
 0x241   : > { %4378 = vmatprep.subr.bf16.mxu1 %v4796_v62 }
 0x30e   : > { %v894_v18 = vpop.f32.mrb[4].mxu1 }
 0x30f   : > { %v895_v19 = vadd.f32 %v894_v18, %v4910_v1  ;;  %v896_v20 = vpop.f32.mrb[5].mxu1 }
 0x310   : > { %v897_v21 = vpop.f32.mrb[6].mxu1 }
 0x311   : > { %v898_v22 = vpop.f32.mrb[7].mxu1  ;;  %v901_v24 = vrot.slane %v895_v19, 4 }
 0x312   : > { %v854_v23 = vpop.f32.mrb[4].mxu0 }
 0x313   : > { %v855_v25 = vadd.f32 %v854_v23, %v4910_v1  ;;  %v856_v26 = vpop.f32.mrb[5].mxu0  ;;  %v4549_v1 = vld [vmem:[%s6308_s4 + $0x4] ss:$24 sps:$4 sm:$0xff]  }
 0x314   : > { %v857_v27 = vpop.f32.mrb[6].mxu0  ;;  %992 = vmatprep.subr.bf16.mxu0 %v4549_v1 }
 0x315   : > { %v858_v28 = vpop.f32.mrb[7].mxu0  ;;  %v4948_v29 = vsel %vm777_vm1, %v855_v25, %v901_v24  ;;  %993 = vmatpush1.bf16.msra.mxu0 %v4547_v37 }
 0x316   : > { %v904_v30 = vsel %vm691_vm0, %v4948_v29, 0.0  ;;  %994 = vmatprep.subr.bf16.mxu0 %v4555_v39 }
 0x317   : > { %905 = vadd.xlane.f32.xlu1 %v904_v30 }
 0x319   : > { %995 = vmatpush1.bf16.msra.mxu0 %v4553_v41 }
 0x31a   : > { %1074 = vmatprep.subr.bf16.mxu0 %v4561_v43 }
 0x3a4   : > { %v906_v31 = vpop.xlane.xlu1 %905 }
 0x3a5   : > { %v908_v32 = vmul.f32 0.03125, %v906_v31 }
 0x3a7   : > { %v909_v33 = vsub.f32 %v4948_v29, %v908_v32 }
 0x3a9   : > { %v910_v34 = vmul.f32 %v909_v33, %v909_v33 }
 0x3ab   : > { %v911_v35 = vsel %vm691_vm0, %v910_v34, 0.0 }
 0x3ac   : > { %912 = vadd.xlane.f32.xlu1 %v911_v35 }
 0x439   : > { %v913_v44 = vpop.xlane.xlu1 %912 }
 0x43a   : > { %v914_v45 = vmul.f32 0.03125, %v913_v44 }
 0x43c   : > { %v915_v47 = vadd.f32 1e-05, %v914_v45 }
 0x43e   : > { %4608 = vrsqrt.f32 %v915_v47 }
 0x448   : > { %v4609_v53 = vpop.eup %4608 }
 0x449   : > { %v917_v54 = vmul.f32 %v4609_v53, %v909_v33 }
 0x44b   : > { %v922_v56 = vmul.f32 %v921_v52, %v917_v54 }
 0x44d   : > { %v927_v57 = vadd.f32 %v926_v55, %v922_v56 }
 0x44f   : > { %v928_v59 = vpack.c.bf16 %v927_v57, %v927_v57 }
 0x451   : > { %4233 = vmatmul.mubr.msk.bf16.vlgmr.msra.gmra.mrb[8].mxu0 %vm691_vm0, %v928_v59  ;;  %4234 = vmatmul.mubr.msk.bf16.vlgmr.msra.gmra.mrb[8].mxu1 %vm691_vm0, %v928_v59 }
 0x452   : > { %1075 = vmatpush1.bf16.msra.mxu0 %v4559_v58  ;;  %1106 = vmatprep.mubr.bf16.mxu0 %v6321_v0 }
 0x453   : > { %1076 = vmatprep.subr.bf16.mxu0 %v4564_v60  ;;  %4380 = vmatprep.mubr.msk.bf16.mxu1 %vm4797_vm2, %v4796_v62 }
 0x456   : > { %1077 = vmatpush1.bf16.msra.mxu0 %v4562_v61 }
 0x457   : > { %4384 = vmatprep.subr.bf16.mxu0 %v4796_v62 }
 0x459   : > { %4235 = vmatmul.mubr.msk.bf16.vlgmr.msra.gmra.mrb[12].mxu0 %vm691_vm0, %v928_v59 }
 0x45a   : > { %4386 = vmatprep.mubr.msk.bf16.mxu0 %vm4797_vm2, %v4796_v62 }
 0x524   : > { %v1026_v63 = vpop.f32.mrb[8].mxu0  ;;  %v1067_v2 = vpop.f32.mrb[8].mxu1 }
 0x525   : > { %v1115_v3 = vmul.f32 0.17677669, %v1026_v63  ;;  %v1119_v4 = vpack.c.bf16 %v1067_v2, %v1067_v2  ;;  %v1028_v5 = vpop.f32.mrb[9].mxu0  ;;  %v1069_v6 = vpop.f32.mrb[9].mxu1 }
 0x526   : > { %v1116_v7 = vmul.f32 0.17677669, %v1028_v5  ;;  %v1030_v8 = vpop.f32.mrb[10].mxu0  ;;  %v1071_v9 = vpop.f32.mrb[10].mxu1  ;;  %v1120_v15 = vpack.c.bf16 %v1069_v6, %v1069_v6 }
 0x527   : > { %v1117_v10 = vpack.c.bf16 %v1115_v3, %v1115_v3  ;;  %1235 = vrot.lane.b32.xlu1 %v1119_v4, %s4798_s19  ;;  %v1031_v11 = vpop.f32.mrb[11].mxu0  ;;  %v1072_v12 = vpop.f32.mrb[11].mxu1  ;;  %v1128_v13 = vsel %vm1123_vm3, %v1119_v4, 0  ;;  %v1572_v23 = vrot.slane %v1119_v4, 2 }
 0x528   : > { %v5013_v14 = vpack.c.bf16 %v1116_v7, %v1116_v7  ;;  %4379 = vmatpush3.bf16.xpose.msra.mxu1 %v1128_v13  ;;  %v1789_v25 = vrot.slane %v1120_v15, 2  ;;  %v1348_v30 = vsel %vm1123_vm3, %v1120_v15, 0 }
 0x529   : > { %1232 = vrot.lane.b32.xlu0 %v1117_v10, %s4798_s19  ;;  %4390 = vmatprep.subr.bf16.mxu1 %v4796_v62  ;;  %v1571_v24 = vrot.slane %v1117_v10, 2  ;;  %v1577_v34 = vsel %vm1123_vm3, %v1572_v23, 0 }
 0x52a   : > { %v1788_v16 = vrot.slane %v5013_v14, 2  ;;  %v1794_v37 = vsel %vm1123_vm3, %v1789_v25, 0 }
 0x52b   : > { %1452 = vrot.lane.b32.xlu1 %v1120_v15, %s4798_s19 }
 0x52c   : > { %v1108_v17 = vpop.f32.mrb[12].mxu0 }
 0x52d   : > { %v5019_v18 = vpack.c.bf16 %v1108_v17, %v1108_v17  ;;  %1895 = vrot.lane.b32.xlu0 %v1788_v16, %s4798_s19  ;;  %v5022_v19 = vpop.f32.mrb[13].mxu0 }
 0x52e   : > { %v1112_v20 = vpop.f32.mrb[14].mxu0 }
 0x52f   : > { %4381 = vmatmul.mubr.msk.bf16.vlgmr.msra.gmra.mrb[12].mxu1 %vm1123_vm3, %v1117_v10  ;;  %1449 = vrot.lane.b32.xlu1 %v5013_v14, %s4798_s19  ;;  %v1113_v21 = vpop.f32.mrb[15].mxu0  ;;  %v1189_v22 = vsel %vm1187_vm4, %v5019_v18, 0 }
 0x530   : > { %4385 = vmatpush3.bf16.msra.mxu0 %v1189_v22  ;;  %4392 = vmatprep.mubr.msk.bf16.mxu1 %vm4797_vm2, %v4796_v62 }
 0x531   : > { %4396 = vmatprep.subr.bf16.mxu0 %v4796_v62 }
 0x533   : > { %1680 = vrot.lane.b32.xlu1 %v1572_v23, %s4798_s19 }
 0x537   : > { %1678 = vrot.lane.b32.xlu1 %v1571_v24, %s4798_s19 }
 0x53b   : > { %1897 = vrot.lane.b32.xlu1 %v1789_v25, %s4798_s19 }
 0x599   : > { %v1236_v26 = vpop.permute.xlu1 %1235 }
 0x59a   : > { %v1241_v27 = vsel %vm1123_vm3, %v1236_v26, 0 }
 0x59b   : > { %4391 = vmatpush3.bf16.xpose.msra.mxu1 %v1241_v27  ;;  %v1233_v28 = vpop.permute.xlu0 %1232 }
 0x59c   : > { %4402 = vmatprep.subr.bf16.mxu1 %v4796_v62 }
 0x59d   : > { %v1453_v31 = vpop.permute.xlu1 %1452 }
 0x59e   : > { %v1458_v32 = vsel %vm1123_vm3, %v1453_v31, 0 }
 0x59f   : > { %v1896_v40 = vpop.permute.xlu0 %1895 }
 0x5a1   : > { %v1450_v33 = vpop.permute.xlu1 %1449 }
 0x5a2   : > { %4393 = vmatmul.mubr.msk.bf16.vlgmr.msra.gmra.mrb[16].mxu1 %vm1123_vm3, %v1233_v28 }
 0x5a3   : > { %4403 = vmatpush3.bf16.xpose.msra.mxu1 %v1348_v30  ;;  %4404 = vmatprep.mubr.msk.bf16.mxu1 %vm4797_vm2, %v4796_v62 }
 0x5a4   : > { %4414 = vmatprep.subr.bf16.mxu1 %v4796_v62 }
 0x5a5   : > { %v1681_v35 = vpop.permute.xlu1 %1680 }
 0x5a6   : > { %v1686_v1 = vsel %vm1123_vm3, %v1681_v35, 0 }
 0x5a9   : > { %v1679_v36 = vpop.permute.xlu1 %1678 }
 0x5aa   : > { %4405 = vmatmul.mubr.msk.bf16.vlgmr.msra.gmra.mrb[20].mxu1 %vm1123_vm3, %v5013_v14 }
 0x5ab   : > { %4415 = vmatpush3.bf16.xpose.msra.mxu1 %v1458_v32  ;;  %4416 = vmatprep.mubr.msk.bf16.mxu1 %vm4797_vm2, %v4796_v62 }
 0x5ac   : > { %4426 = vmatprep.subr.bf16.mxu1 %v4796_v62 }
 0x5ad   : > { %v1898_v38 = vpop.permute.xlu1 %1897 }
 0x5ae   : > { %v1903_v39 = vsel %vm1123_vm3, %v1898_v38, 0 }
 0x5b2   : > { %4417 = vmatmul.mubr.msk.bf16.vlgmr.msra.gmra.mrb[24].mxu1 %vm1123_vm3, %v1450_v33 }
 0x5b3   : > { %4427 = vmatpush3.bf16.xpose.msra.mxu1 %v1577_v34  ;;  %4428 = vmatprep.mubr.msk.bf16.mxu1 %vm4797_vm2, %v4796_v62 }
 0x5b4   : > { %4438 = vmatprep.subr.bf16.mxu1 %v4796_v62 }
 0x5ba   : > { %4429 = vmatmul.mubr.msk.bf16.vlgmr.msra.gmra.mrb[28].mxu1 %vm1123_vm3, %v1571_v24 }
 0x5bb   : > { %4439 = vmatpush3.bf16.xpose.msra.mxu1 %v1686_v1  ;;  %4440 = vmatprep.mubr.msk.bf16.mxu1 %vm4797_vm2, %v4796_v62 }
 0x5bc   : > { %4450 = vmatprep.subr.bf16.mxu1 %v4796_v62 }
 0x5c2   : > { %4441 = vmatmul.mubr.msk.bf16.vlgmr.msra.gmra.mrb[32].mxu1 %vm1123_vm3, %v1679_v36 }
 0x5c3   : > { %4451 = vmatpush3.bf16.xpose.msra.mxu1 %v1794_v37  ;;  %4452 = vmatprep.mubr.msk.bf16.mxu1 %vm4797_vm2, %v4796_v62 }
 0x5c4   : > { %4462 = vmatprep.subr.bf16.mxu1 %v4796_v62 }
 0x5ca   : > { %4453 = vmatmul.mubr.msk.bf16.vlgmr.msra.gmra.mrb[36].mxu1 %vm1123_vm3, %v1788_v16 }
 0x5cb   : > { %4463 = vmatpush3.bf16.xpose.msra.mxu1 %v1903_v39  ;;  %4464 = vmatprep.mubr.msk.bf16.mxu1 %vm4797_vm2, %v4796_v62 }
 0x5d2   : > { %4465 = vmatmul.mubr.msk.bf16.vlgmr.msra.gmra.mrb[40].mxu1 %vm1123_vm3, %v1896_v40 }
 0x602   : > { %v1164_v41 = vpop.f32.mrb[12].mxu1 }
 0x603   : > { %v4382_v42 = vpop.f32.mrb[13].mxu1  ;;  %v1171_v43 = vsel %vm1170_vm5, %v1164_v41, -inf }
 0x604   : > { %v1167_v44 = vpop.f32.mrb[14].mxu1  ;;  %1172 = vmax.xlane.f32.xlu1 %v1171_v43 }
 0x605   : > { %v4383_v45 = vpop.f32.mrb[15].mxu1 }
 0x675   : > { %v1277_v46 = vpop.f32.mrb[16].mxu1 }
 0x676   : > { %v4394_v47 = vpop.f32.mrb[17].mxu1  ;;  %v1283_v49 = vsel %vm1170_vm5, %v1277_v46, -inf }
 0x677   : > { %v1280_v51 = vpop.f32.mrb[18].mxu1  ;;  %1284 = vmax.xlane.f32.xlu0 %v1283_v49  ;;  %v5094_v47 = vpack.c.bf16 %v5022_v19, %v5022_v19 }
 0x678   : > { %v4395_v52 = vpop.f32.mrb[19].mxu1 }
 0x67d   : > { %v1384_v53 = vpop.f32.mrb[20].mxu1 }
 0x67e   : > { %v4406_v54 = vpop.f32.mrb[21].mxu1  ;;  %v1390_v55 = vsel %vm1170_vm5, %v1384_v53, -inf }
 0x67f   : > { %1391 = vmax.xlane.f32.xlu0 %v1390_v55  ;;  %v1387_v56 = vpop.f32.mrb[22].mxu1 }
 0x680   : > { %v4407_v57 = vpop.f32.mrb[23].mxu1 }
 0x685   : > { %v1494_v58 = vpop.f32.mrb[24].mxu1 }
 0x686   : > { %v4418_v59 = vpop.f32.mrb[25].mxu1  ;;  %v1500_v60 = vsel %vm1170_vm5, %v1494_v58, -inf }
 0x687   : > { %1501 = vmax.xlane.f32.xlu1 %v1500_v60  ;;  %v1497_v61 = vpop.f32.mrb[26].mxu1 }
 0x688   : > { %v4419_v63 = vpop.f32.mrb[27].mxu1 }
 0x68d   : > { %v5072_v2 = vpop.f32.mrb[28].mxu1 }
 0x68e   : > { %v4430_v3 = vpop.f32.mrb[29].mxu1  ;;  %v1619_v4 = vsel %vm1170_vm5, %v5072_v2, -inf }
 0x68f   : > { %1620 = vmax.xlane.f32.xlu0 %v1619_v4  ;;  %v1616_v5 = vpop.f32.mrb[30].mxu1 }
 0x690   : > { %v4431_v6 = vpop.f32.mrb[31].mxu1 }
 0x691   : > { %v1173_v7 = vpop.xlane.xlu1 %1172 }
 0x692   : > { %v1174_v8 = vsub.f32 %v1164_v41, %v1173_v7 }
 0x694   : > { %v1175_v9 = vmul.f32 1.442695, %v1174_v8 }
 0x695   : > { %v5076_v10 = vpop.f32.mrb[32].mxu1 }
 0x696   : > { %4610 = vpow2.f32 %v1175_v9  ;;  %v4442_v11 = vpop.f32.mrb[33].mxu1  ;;  %v1728_v12 = vsel %vm1170_vm5, %v5076_v10, -inf  ;;  %v1631_v9 = vrot.slane %v5019_v18, 2 }
 0x697   : > { %1729 = vmax.xlane.f32.xlu1 %v1728_v12  ;;  %v1725_v13 = vpop.f32.mrb[34].mxu1 }
 0x698   : > { %v4443_v14 = vpop.f32.mrb[35].mxu1 }
 0x69d   : > { %v1830_v15 = vpop.f32.mrb[36].mxu1 }
 0x69e   : > { %v4454_v16 = vpop.f32.mrb[37].mxu1  ;;  %v1836_v17 = vsel %vm1170_vm5, %v1830_v15, -inf }
 0x69f   : > { %1837 = vmax.xlane.f32.xlu0 %v1836_v17  ;;  %v1833_v20 = vpop.f32.mrb[38].mxu1 }
 0x6a0   : > { %v4611_v21 = vpop.eup %4610  ;;  %v4455_v22 = vpop.f32.mrb[39].mxu1 }
 0x6a1   : > { %v1177_v23 = vsel %vm1170_vm5, %v4611_v21, 0.0 }
 0x6a3   : > { %1178 = vadd.xlane.f32.xlu0 %v1177_v23 }
 0x6a5   : > { %v1939_v24 = vpop.f32.mrb[40].mxu1 }
 0x6a6   : > { %v4466_v25 = vpop.f32.mrb[41].mxu1  ;;  %v1945_v26 = vsel %vm1170_vm5, %v1939_v24, -inf }
 0x6a7   : > { %1946 = vmax.xlane.f32.xlu1 %v1945_v26  ;;  %v1942_v27 = vpop.f32.mrb[42].mxu1 }
 0x6a8   : > { %v4467_v28 = vpop.f32.mrb[43].mxu1 }
 0x704   : > { %v1285_v30 = vpop.xlane.xlu0 %1284 }
 0x705   : > { %v1286_v31 = vsub.f32 %v1277_v46, %v1285_v30  ;;  %v1636_v30 = vsel %vm1187_vm4, %v1631_v9, 0 }
 0x707   : > { %v1287_v32 = vmul.f32 1.442695, %v1286_v31 }
 0x709   : > { %4612 = vpow2.f32 %v1287_v32 }
 0x70c   : > { %v1392_v33 = vpop.xlane.xlu0 %1391 }
 0x70d   : > { %v1393_v34 = vsub.f32 %v1384_v53, %v1392_v33 }
 0x70f   : > { %v1394_v35 = vmul.f32 1.442695, %v1393_v34 }
 0x711   : > { %4614 = vpow2.f32 %v1394_v35 }
 0x713   : > { %v4613_v1 = vpop.eup %4612 }
 0x714   : > { %v1502_v36 = vpop.xlane.xlu1 %1501  ;;  %v1289_v37 = vsel %vm1170_vm5, %v4613_v1, 0.0 }
 0x715   : > { %v1503_v38 = vsub.f32 %v1494_v58, %v1502_v36  ;;  %1290 = vadd.xlane.f32.xlu1 %v1289_v37 }
 0x717   : > { %v1504_v39 = vmul.f32 1.442695, %v1503_v38 }
 0x719   : > { %4616 = vpow2.f32 %v1504_v39 }
 0x71b   : > { %v5084_v40 = vpop.eup %4614 }
 0x71c   : > { %v1396_v41 = vsel %vm1170_vm5, %v5084_v40, 0.0  ;;  %v1621_v44 = vpop.xlane.xlu0 %1620 }
 0x71d   : > { %1397 = vadd.xlane.f32.xlu0 %v1396_v41  ;;  %v1622_v51 = vsub.f32 %v5072_v2, %v1621_v44 }
 0x71f   : > { %v1623_v55 = vmul.f32 1.442695, %v1622_v51 }
 0x723   : > { %v5088_v42 = vpop.eup %4616 }
 0x724   : > { %v1506_v43 = vsel %vm1170_vm5, %v5088_v42, 0.0  ;;  %v1730_v52 = vpop.xlane.xlu1 %1729 }
 0x725   : > { %1507 = vadd.xlane.f32.xlu1 %v1506_v43  ;;  %v1731_v56 = vsub.f32 %v5076_v10, %v1730_v52  ;;  %v1848_v10 = vrot.slane %v5094_v47, 2 }
 0x727   : > { %v1732_v58 = vmul.f32 1.442695, %v1731_v56  ;;  %v1853_v43 = vsel %vm1187_vm4, %v1848_v10, 0 }
 0x72c   : > { %v1838_v45 = vpop.xlane.xlu0 %1837 }
 0x72d   : > { %v1839_v19 = vsub.f32 %v1830_v15, %v1838_v45 }
 0x72f   : > { %v1840_v60 = vmul.f32 1.442695, %v1839_v19  ;;  %v4566_v19 = vld [vmem:[%s6309_s5] sm:$0xff]  }
 0x730   : > { %v1179_v46 = vpop.xlane.xlu0 %1178 }
 0x731   : > { %4618 = vrcp.f32 %v1179_v46 }
 0x732   : > { %4620 = vpow2.f32 %v1623_v55 }
 0x733   : > { %1513 = vrot.lane.b32.xlu0 %v5094_v47, %s4798_s19  ;;  %4622 = vpow2.f32 %v1732_v58  ;;  %v4567_v58 = vld [vmem:[%s6309_s5 + $0x48] sm:$0xff]  }
 0x734   : > { %v1947_v57 = vpop.xlane.xlu1 %1946  ;;  %4624 = vpow2.f32 %v1840_v60  ;;  %v4569_v60 = vld [vmem:[%s6309_s5 + $0x50] sm:$0xff]  }
 0x735   : > { %v1948_v59 = vsub.f32 %v1939_v24, %v1947_v57  ;;  %v4565_v57 = vld [vmem:[%s6309_s5 + $0x40] sm:$0xff]  }
 0x736   : > { %1296 = vrot.lane.b32.xlu1 %v5019_v18, %s4798_s19  ;;  %4344 = vmatprep.subr.bf16.mxu1 %v4565_v57 }
 0x737   : > { %v1949_v61 = vmul.f32 1.442695, %v1948_v59  ;;  %4345 = vmatpush3.bf16.msra.mxu1 %v4566_v19  ;;  %v4568_v59 = vld [vmem:[%s6309_s5 + $0x8] sm:$0xff]  }
 0x738   : > { %4346 = vmatprep.subr.bf16.mxu1 %v4567_v58 }
 0x739   : > { %4626 = vpow2.f32 %v1949_v61  ;;  %v4570_v61 = vld [vmem:[%s6309_s5 + $0x10] sm:$0xff]  }
 0x73b   : > { %v4619_v49 = vpop.eup %4618  ;;  %4347 = vmatpush3.bf16.msra.mxu1 %v4568_v59 }
 0x73c   : > { %v1181_v53 = vmul.f32 %v4619_v49, %v4611_v21  ;;  %v4621_v63 = vpop.eup %4620  ;;  %v1406_v21 = vsel %vm1187_vm4, %v5094_v47, 0  ;;  %4348 = vmatprep.subr.bf16.mxu1 %v4569_v60  ;;  %v2164_v60 = vsub.s32 4, %v4981_v48 }
 0x73d   : > { %v1625_v2 = vsel %vm1170_vm5, %v4621_v63, 0.0  ;;  %v5106_v3 = vpop.eup %4622 }
 0x73e   : > { %v1182_v54 = vpack.c.bf16 %v1181_v53, %v1181_v53  ;;  %v5108_v4 = vpop.eup %4624  ;;  %v1734_v5 = vsel %vm1170_vm5, %v5106_v3, 0.0 }
 0x73f   : > { %v1842_v8 = vsel %vm1170_vm5, %v5108_v4, 0.0  ;;  %4349 = vmatpush3.bf16.msra.mxu1 %v4570_v61 }
 0x740   : > { %4387 = vmatmul.mubr.msk.bf16.vlgmr.msra.gmra.mrb[16].mxu0 %vm1183_vm6, %v1182_v54 }
 0x741   : > { %4398 = vmatprep.mubr.msk.bf16.mxu0 %vm4797_vm2, %v4796_v62 }
 0x743   : > { %v5112_v6 = vpop.eup %4626 }
 0x744   : > { %v1951_v7 = vsel %vm1170_vm5, %v5112_v6, 0.0 }
 0x752   : > { %1626 = vadd.xlane.f32.xlu0 %v1625_v2  ;;  %v4572_v2 = vld [vmem:[%s6309_s5 + $0x18] sm:$0xff]  }
 0x756   : > { %1735 = vadd.xlane.f32.xlu0 %v1734_v5  ;;  %v4575_v5 = vld [vmem:[%s6309_s5 + $0x68] sm:$0xff]  }
 0x75a   : > { %1952 = vadd.xlane.f32.xlu1 %v1951_v7  ;;  %1843 = vadd.xlane.f32.xlu0 %v1842_v8 }
 0x770   : > { %1740 = vrot.lane.b32.xlu0 %v1631_v9, %s4798_s19 }
 0x774   : > { %1957 = vrot.lane.b32.xlu0 %v1848_v10, %s4798_s19 }
 0x7a2   : > { %v1291_v11 = vpop.xlane.xlu1 %1290 }
 0x7a3   : > { %4628 = vrcp.f32 %v1291_v11 }
 0x7aa   : > { %v1398_v12 = vpop.xlane.xlu0 %1397 }
 0x7ab   : > { %4630 = vrcp.f32 %v1398_v12 }
 0x7ad   : > { %v4629_v13 = vpop.eup %4628 }
 0x7ae   : > { %v1293_v15 = vmul.f32 %v4629_v13, %v4613_v1  ;;  %v1514_v23 = vpop.permute.xlu0 %1513 }
 0x7af   : > { %v1519_v26 = vsel %vm1187_vm4, %v1514_v23, 0 }
 0x7b0   : > { %v1294_v20 = vpack.c.bf16 %v1293_v15, %v1293_v15 }
 0x7b2   : > { %v1508_v14 = vpop.xlane.xlu1 %1507 }
 0x7b3   : > { %4632 = vrcp.f32 %v1508_v14 }
 0x7b5   : > { %v4631_v18 = vpop.eup %4630 }
 0x7b6   : > { %v1297_v16 = vpop.permute.xlu1 %1296  ;;  %v1400_v22 = vmul.f32 %v4631_v18, %v5084_v40 }
 0x7b7   : > { %v1302_v17 = vsel %vm1187_vm4, %v1297_v16, 0 }
 0x7b8   : > { %4397 = vmatpush3.bf16.msra.mxu0 %v1302_v17  ;;  %v1401_v24 = vpack.c.bf16 %v1400_v22, %v1400_v22 }
 0x7b9   : > { %4408 = vmatprep.subr.bf16.mxu0 %v4796_v62 }
 0x7bb   : > { %4399 = vmatmul.mubr.msk.bf16.vlgmr.msra.gmra.mrb[20].mxu0 %vm1183_vm6, %v1294_v20 }
 0x7bc   : > { %4409 = vmatpush3.bf16.msra.mxu0 %v1406_v21  ;;  %4410 = vmatprep.mubr.msk.bf16.mxu0 %vm4797_vm2, %v4796_v62 }
 0x7bd   : > { %4420 = vmatprep.subr.bf16.mxu0 %v4796_v62  ;;  %v4633_v25 = vpop.eup %4632 }
 0x7be   : > { %v1510_v27 = vmul.f32 %v4633_v25, %v5088_v42 }
 0x7c0   : > { %v1511_v28 = vpack.c.bf16 %v1510_v27, %v1510_v27 }
 0x7c3   : > { %4411 = vmatmul.mubr.msk.bf16.vlgmr.msra.gmra.mrb[24].mxu0 %vm1183_vm6, %v1401_v24 }
 0x7c4   : > { %4421 = vmatpush3.bf16.msra.mxu0 %v1519_v26  ;;  %4422 = vmatprep.mubr.msk.bf16.mxu0 %vm4797_vm2, %v4796_v62 }
 0x7c5   : > { %4432 = vmatprep.subr.bf16.mxu0 %v4796_v62 }
 0x7cb   : > { %4423 = vmatmul.mubr.msk.bf16.vlgmr.msra.gmra.mrb[28].mxu0 %vm1183_vm6, %v1511_v28  ;;  %v4576_v28 = vld [vmem:[%s6309_s5 + $0x28] sm:$0xff]  }
 0x7cc   : > { %4433 = vmatpush3.bf16.msra.mxu0 %v1636_v30  ;;  %4434 = vmatprep.mubr.msk.bf16.mxu0 %vm4797_vm2, %v4796_v62 }
 0x7cd   : > { %4444 = vmatprep.subr.bf16.mxu0 %v4796_v62 }
 0x7df   : > { %v1627_v31 = vpop.xlane.xlu0 %1626 }
 0x7e0   : > { %4634 = vrcp.f32 %v1627_v31  ;;  %v4577_v31 = vld [vmem:[%s6309_s5 + $0x70] sm:$0xff]  }
 0x7e3   : > { %v1736_v32 = vpop.xlane.xlu0 %1735 }
 0x7e4   : > { %4636 = vrcp.f32 %v1736_v32 }
 0x7e7   : > { %v1844_v33 = vpop.xlane.xlu0 %1843  ;;  %v1953_v40 = vpop.xlane.xlu1 %1952 }
 0x7e8   : > { %4638 = vrcp.f32 %v1844_v33  ;;  %v4578_v33 = vld [vmem:[%s6309_s5 + $0x30] sm:$0xff]  }
 0x7e9   : > { %4640 = vrcp.f32 %v1953_v40 }
 0x7ea   : > { %v4635_v34 = vpop.eup %4634 }
 0x7eb   : > { %v1629_v35 = vmul.f32 %v4635_v34, %v4621_v63  ;;  %v1741_v1 = vpop.permute.xlu0 %1740  ;;  %v4571_v63 = vld [vmem:[%s6309_s5 + $0x58] sm:$0xff]  }
 0x7ec   : > { %v1746_v38 = vsel %vm1187_vm4, %v1741_v1, 0  ;;  %4350 = vmatprep.subr.bf16.mxu1 %v4571_v63  ;;  %v4579_v1 = vld [vmem:[%s6309_s5 + $0x78] sm:$0xff]  }
 0x7ed   : > { %v1630_v36 = vpack.c.bf16 %v1629_v35, %v1629_v35  ;;  %4351 = vmatpush3.bf16.msra.mxu1 %v4572_v2 }
 0x7ee   : > { %v4637_v37 = vpop.eup %4636 }
 0x7ef   : > { %4435 = vmatmul.mubr.msk.bf16.vlgmr.msra.gmra.mrb[32].mxu0 %vm1183_vm6, %v1630_v36  ;;  %v1738_v39 = vmul.f32 %v4637_v37, %v5106_v3  ;;  %v1958_v45 = vpop.permute.xlu0 %1957  ;;  %v4573_v3 = vld [vmem:[%s6309_s5 + $0x60] sm:$0xff]   ;;  %v4580_v36 = vld [vmem:[%s6309_s5 + $0x38] sm:$0xff]  }
 0x7f0   : > { %4445 = vmatpush3.bf16.msra.mxu0 %v1746_v38  ;;  %4446 = vmatprep.mubr.msk.bf16.mxu0 %vm4797_vm2, %v4796_v62  ;;  %v1963_v49 = vsel %vm1187_vm4, %v1958_v45, 0 }
 0x7f1   : > { %4456 = vmatprep.subr.bf16.mxu0 %v4796_v62  ;;  %v1739_v41 = vpack.c.bf16 %v1738_v39, %v1738_v39  ;;  %4352 = vmatprep.subr.bf16.mxu1 %v4573_v3  ;;  %v2165_v3 = vrot.slane %v4987_v50, %v2164_v60 }
 0x7f2   : > { %v4639_v42 = vpop.eup %4638 }
 0x7f3   : > { %v1846_v44 = vmul.f32 %v4639_v42, %v5108_v4  ;;  %v4641_v47 = vpop.eup %4640  ;;  %v4574_v4 = vld [vmem:[%s6309_s5 + $0x20] sm:$0xff]  }
 0x7f4   : > { %v1955_v51 = vmul.f32 %v4641_v47, %v5112_v6  ;;  %4353 = vmatpush3.bf16.msra.mxu1 %v4574_v4 }
 0x7f5   : > { %v1847_v46 = vpack.c.bf16 %v1846_v44, %v1846_v44  ;;  %4354 = vmatprep.subr.bf16.mxu1 %v4575_v5 }
 0x7f6   : > { %v1956_v52 = vpack.c.bf16 %v1955_v51, %v1955_v51 }
 0x7f7   : > { %4447 = vmatmul.mubr.msk.bf16.vlgmr.msra.gmra.mrb[36].mxu0 %vm1183_vm6, %v1739_v41 }
 0x7f8   : > { %4457 = vmatpush3.bf16.msra.mxu0 %v1853_v43  ;;  %4458 = vmatprep.mubr.msk.bf16.mxu0 %vm4797_vm2, %v4796_v62 }
 0x7f9   : > { %4468 = vmatprep.subr.bf16.mxu0 %v4796_v62  ;;  %4355 = vmatpush3.bf16.msra.mxu1 %v4576_v28 }
 0x7fa   : > { %4356 = vmatprep.subr.bf16.mxu1 %v4577_v31  ;;  %v4583_v31 = vld [vmem:[%s6311_s7] sm:$0xff]  }
 0x7fd   : > { %4357 = vmatpush3.bf16.msra.mxu1 %v4578_v33  ;;  %v4585_v33 = vld [vmem:[%s6311_s7 + $0x10] sm:$0xff]  }
 0x7fe   : > { %4358 = vmatprep.subr.bf16.mxu1 %v4579_v1  ;;  %v604_v1 = vld [vmem:[%s6313_s9 + $0x20] sm:$0xff] }
 0x7ff   : > { %4459 = vmatmul.mubr.msk.bf16.vlgmr.msra.gmra.mrb[40].mxu0 %vm1183_vm6, %v1847_v46 }
 0x800   : > { %4469 = vmatpush3.bf16.msra.mxu0 %v1963_v49  ;;  %4470 = vmatprep.mubr.msk.bf16.mxu0 %vm4797_vm2, %v4796_v62 }
 0x801   : > { %4474 = vmatprep.subr.bf16.mxu0 %v4796_v62  ;;  %4359 = vmatpush3.bf16.msra.mxu1 %v4580_v36  ;;  %v4268_v36 = vld [vmem:[%s6307_s3] ss:$0 sm:$0xff] }
 0x807   : > { %4471 = vmatmul.mubr.msk.bf16.vlgmr.msra.gmra.mrb[44].mxu0 %vm1183_vm6, %v1956_v52 }
 0x808   : > { %4478 = vmatprep.mubr.msk.bf16.mxu0 %vm4797_vm2, %v4796_v62 }
 0x813   : > { %v5163_v53 = vpop.f32.mrb[16].mxu0 }
 0x814   : > { %v4388_v54 = vpop.f32.mrb[17].mxu0 }
 0x815   : > { %v1228_v55 = vpop.f32.mrb[18].mxu0 }
 0x816   : > { %v4389_v56 = vpop.f32.mrb[19].mxu0 }
 0x88e   : > { %v1338_v6 = vpop.f32.mrb[20].mxu0 }
 0x88f   : > { %v4400_v7 = vpop.f32.mrb[21].mxu0 }
 0x890   : > { %v1341_v8 = vpop.f32.mrb[22].mxu0 }
 0x891   : > { %v4401_v9 = vpop.f32.mrb[23].mxu0  ;;  %v601_v8 = vld [vmem:[%s6313_s9 + $0x8] sm:$0xff] }
 0x892   : > { %v603_v9 = vld [vmem:[%s6313_s9 + $0x18] sm:$0xff] }
 0x896   : > { %v1442_v10 = vpop.f32.mrb[24].mxu0 }
 0x897   : > { %v4412_v11 = vpop.f32.mrb[25].mxu0 }
 0x898   : > { %v1445_v12 = vpop.f32.mrb[26].mxu0 }
 0x899   : > { %v4413_v13 = vpop.f32.mrb[27].mxu0 }
 0x89e   : > { %v1555_v14 = vpop.f32.mrb[28].mxu0 }
 0x89f   : > { %v4527_v15 = vpack.i.bf16 %v1338_v6, %v1555_v14  ;;  %v4424_v16 = vpop.f32.mrb[29].mxu0 }
 0x8a0   : > { %v1558_v17 = vpop.f32.mrb[30].mxu0  ;;  %v4582_v16 = vld [vmem:[%s6310_s6 + $0x8] sm:$0xff]  }
 0x8a1   : > { %v4425_v20 = vpop.f32.mrb[31].mxu0 }
 0x8c2   : > { %v1672_v18 = vpop.f32.mrb[32].mxu0 }
 0x8c3   : > { %v4436_v21 = vpop.f32.mrb[33].mxu0 }
 0x8c4   : > { %v1675_v22 = vpop.f32.mrb[34].mxu0  ;;  %v2182_v21 = vsub.s32 2, %v4981_v48 }
 0x8c5   : > { %v4437_v23 = vpop.f32.mrb[35].mxu0  ;;  %v2187_v22 = vsub.s32 3, %v4981_v48 }
 0x8c6   : > { %v2183_v23 = vrot.slane %v4987_v50, %v2182_v21 }
 0x8ca   : > { %v1782_v24 = vpop.f32.mrb[36].mxu0 }
 0x8cb   : > { %v4448_v25 = vpop.f32.mrb[37].mxu0 }
 0x8cc   : > { %v1785_v26 = vpop.f32.mrb[38].mxu0 }
 0x8cd   : > { %v4449_v27 = vpop.f32.mrb[39].mxu0  ;;  %v2188_v26 = vrot.slane %v4987_v50, %v2187_v22  ;;  %v4775_v22 = vld [vmem:[%s4905_s27 + $0x30] sm:$0xff] }
 0x8d2   : > { %v1889_v30 = vpop.f32.mrb[40].mxu0 }
 0x8d3   : > { %v4460_v32 = vpop.f32.mrb[41].mxu0 }
 0x8d4   : > { %v1892_v34 = vpop.f32.mrb[42].mxu0  ;;  %v4584_v32 = vld [vmem:[%s6311_s7 + $0x8] sm:$0xff]  }
 0x8d5   : > { %v4461_v35 = vpop.f32.mrb[43].mxu0  ;;  %v4586_v34 = vld [vmem:[%s6311_s7 + $0x18] sm:$0xff]  }
 0x8d6   : > { %v600_v35 = vld [vmem:[%s6313_s9] sm:$0xff] }
 0x8da   : > { %v1999_v37 = vpop.f32.mrb[44].mxu0 }
 0x8db   : > { %v4522_v38 = vpack.i.bf16 %v1782_v24, %v1999_v37  ;;  %v4472_v39 = vpop.f32.mrb[45].mxu0 }
 0x8dc   : > { %v2002_v40 = vpop.f32.mrb[46].mxu0 }
 0x8dd   : > { %4523 = vrot.lane.b32.xlu0 %v4522_v38, %s4798_s19  ;;  %v4473_v41 = vpop.f32.mrb[47].mxu0 }
 0x8e1   : > { %4528 = vrot.lane.b32.xlu0 %v4527_v15, %s4798_s19  ;;  %v4581_v15 = vld [vmem:[%s6310_s6] sm:$0xff]  }
 0x8e2   : > { %4475 = vmatpush3.bf16.msra.mxu0 %v4581_v15 }
 0x8e3   : > { %4476 = vmatprep.subr.bf16.mxu0 %v4796_v62 }
 0x8e6   : > { %4477 = vmatpush3.bf16.msra.mxu0 %v4582_v16  ;;  %v4773_v16 = vld [vmem:[%s4905_s27 + $0x28] sm:$0xff] }
 0x8e7   : > { %4482 = vmatprep.subr.bf16.mxu0 %v4796_v62 }
 0x94f   : > { %v4524_v42 = vpop.permute.xlu0 %4523 }
 0x950   : > { %v4526_v43 = vunpack.i.h.bf16 %v4524_v42  ;;  %v4525_v44 = vunpack.i.l.bf16 %v4524_v42 }
 0x952   : > { %v2013_v45 = vsel %vm1123_vm3, %v1672_v18, %v4526_v43  ;;  %v2014_v46 = vsel %vm1123_vm3, %v1889_v30, %v4525_v44 }
 0x953   : > { %v4529_v47 = vpop.permute.xlu0 %4528  ;;  %v2017_v52 = vrot.slane %v2013_v45, 4  ;;  %v2018_v54 = vrot.slane %v2014_v46, 4 }
 0x954   : > { %v4531_v49 = vunpack.i.h.bf16 %v4529_v47  ;;  %v4530_v51 = vunpack.i.l.bf16 %v4529_v47 }
 0x956   : > { %v1569_v55 = vsel %vm1123_vm3, %v5163_v53, %v4531_v49  ;;  %v1570_v56 = vsel %vm1123_vm3, %v1442_v10, %v4530_v51 }
 0x957   : > { %v2022_v57 = vsel %vm777_vm1, %v1570_v56, %v2018_v54  ;;  %v2021_v19 = vsel %vm777_vm1, %v1569_v55, %v2017_v52  ;;  %v2332_v55 = vsub.s32 5, %v4981_v48 }
 0x958   : > { %v2024_v58 = vpack.c.bf16 %v2022_v57, %v2022_v57  ;;  %v2023_v59 = vpack.c.bf16 %v2021_v19, %v2021_v19 }
 0x959   : > { %v2333_v56 = vrot.slane %v4987_v50, %v2332_v55  ;;  %v605_v50 = vld [vmem:[%s6313_s9 + $0x28] sm:$0xff] }
 0x95a   : > { %2153 = vmatprep.mubr.bf16.mxu1 %v2024_v58 }
 0x95b   : > { %2154 = vmatmul.mubr.bf16.vlgmr.msra.gmra.mrb[44].mxu1 %v2023_v59 }
 0x95c   : > { %2685 = vmatprep.mubr.bf16.mxu1 %v6321_v0 }
 0xa2e   : > { %v4360_v61 = vpop.f32.mrb[44].mxu1 }
 0xa2f   : > { %v4361_v63 = vpop.f32.mrb[45].mxu1 }
 0xa30   : > { %v4362_v2 = vadd.f32 %v4361_v63, %v4360_v61  ;;  %v4363_v53 = vpop.f32.mrb[46].mxu1 }
 0xa31   : > { %v4364_v4 = vpop.f32.mrb[47].mxu1  ;;  %v584_v53 = vld [vmem:[%s6312_s8] sm:$0xff] }
 0xa32   : > { %v2161_v5 = vadd.f32 %v4362_v2, %v4948_v29  ;;  %v607_v29 = vld [vmem:[%s6313_s9 + $0x38] sm:$0xff]  ;;  %v588_v4 = vld [vmem:[%s6312_s8 + $0x20] sm:$0xff] }
 0xa34   : > { %v5226_v6 = vadd.f32 %v2165_v3, %v2161_v5  ;;  %v602_v3 = vld [vmem:[%s6313_s9 + $0x10] sm:$0xff]  ;;  %v585_v5 = vld [vmem:[%s6312_s8 + $0x8] sm:$0xff] }
 0xa36   : > { %v2167_v7 = vsel %vm691_vm0, %v5226_v6, 0.0 }
 0xa37   : > { %2168 = vadd.xlane.f32.xlu0 %v2167_v7  ;;  %v586_v7 = vld [vmem:[%s6312_s8 + $0x10] sm:$0xff] }
 0xa4d   : > { %2494 = vperm.xlu0 %4521, %v601_v8   ;;  %v590_v8 = vld [vmem:[%s6312_s8 + $0x30] sm:$0xff] }
 0xa51   : > { %2504 = vperm.xlu0 %4521, %v603_v9   ;;  %v587_v9 = vld [vmem:[%s6312_s8 + $0x18] sm:$0xff] }
 0xa55   : > { %2540 = vperm.xlu0 %4521, %v607_v29   ;;  %v591_v29 = vld [vmem:[%s6312_s8 + $0x38] sm:$0xff] }
 0xac4   : > { %v2169_v10 = vpop.xlane.xlu0 %2168 }
 0xac5   : > { %v2170_v11 = vmul.f32 0.03125, %v2169_v10  ;;  %v4770_v10 = vld [vmem:[%s4905_s27] sm:$0xff] }
 0xac7   : > { %v2171_v12 = vsub.f32 %v5226_v6, %v2170_v11  ;;  %v5322_v11 = vadd.f32 %v4770_v10, %v584_v53 }
 0xac9   : > { %v2172_v13 = vmul.f32 %v2171_v12, %v2171_v12 }
 0xacb   : > { %v2173_v14 = vsel %vm691_vm0, %v2172_v13, 0.0 }
 0xacc   : > { %2174 = vadd.xlane.f32.xlu1 %v2173_v14  ;;  %v4772_v14 = vld [vmem:[%s4905_s27 + $0x8] sm:$0xff] }
 0xacd   : > { %v5328_v15 = vadd.f32 %v4772_v14, %v585_v5 }
 0xadd   : > { %2489 = vperm.xlu1 %4532, %v600_v35  }
 0xae1   : > { %2525 = vperm.xlu1 %4532, %v604_v1   ;;  %v4779_v1 = vld [vmem:[%s4905_s27 + $0x48] sm:$0xff] }
 0xb59   : > { %v2175_v17 = vpop.xlane.xlu1 %2174 }
 0xb5a   : > { %v2176_v20 = vmul.f32 0.03125, %v2175_v17 }
 0xb5c   : > { %v2177_v18 = vadd.f32 1e-05, %v2176_v20  ;;  %v592_v20 = vld [vmem:[%s6312_s8 + $0x40] sm:$0xff] }
 0xb5e   : > { %4642 = vrsqrt.f32 %v2177_v18  ;;  %v4774_v18 = vld [vmem:[%s4905_s27 + $0x10] sm:$0xff] }
 0xb5f   : > { %v5337_v21 = vadd.f32 %v4774_v18, %v586_v7 }
 0xb68   : > { %v4643_v24 = vpop.eup %4642 }
 0xb69   : > { %v2179_v25 = vmul.f32 %v4643_v24, %v2171_v12  ;;  %v4771_v12 = vld [vmem:[%s4905_s27 + $0x20] sm:$0xff]  ;;  %v593_v24 = vld [vmem:[%s6312_s8 + $0x48] sm:$0xff] }
 0xb6a   : > { %v5325_v13 = vadd.f32 %v4771_v12, %v588_v4 }
 0xb6b   : > { %v2184_v27 = vmul.f32 %v2183_v23, %v2179_v25  ;;  %v5340_v23 = vadd.f32 %v4775_v22, %v590_v8  ;;  %v4776_v25 = vld [vmem:[%s4905_s27 + $0x18] sm:$0xff] }
 0xb6d   : > { %v2189_v28 = vadd.f32 %v2188_v26, %v2184_v27  ;;  %v5346_v26 = vadd.f32 %v4776_v25, %v587_v9  ;;  %v4777_v27 = vld [vmem:[%s4905_s27 + $0x38] sm:$0xff] }
 0xb6f   : > { %v2190_v30 = vpack.c.bf16 %v2189_v28, %v2189_v28  ;;  %v5349_v28 = vadd.f32 %v4777_v27, %v591_v29 }
 0xb71   : > { %4479 = vmatmul.mubr.msk.bf16.vlgmr.msra.gmra.mrb[48].mxu0 %vm691_vm0, %v2190_v30  ;;  %v594_v30 = vld [vmem:[%s6312_s8 + $0x50] sm:$0xff] }
 0xb72   : > { %4490 = vmatprep.mubr.msk.bf16.mxu0 %vm4797_vm2, %v4796_v62  ;;  %4483 = vmatpush3.bf16.msra.mxu0 %v4583_v31  ;;  %v2351_v31 = vadd.f32 %v5325_v13, %v5322_v11 }
 0xb73   : > { %4484 = vmatprep.subr.bf16.mxu0 %v4796_v62 }
 0xb76   : > { %4485 = vmatpush3.bf16.msra.mxu0 %v4584_v32  ;;  %v595_v32 = vld [vmem:[%s6312_s8 + $0x58] sm:$0xff] }
 0xb77   : > { %4486 = vmatprep.subr.bf16.mxu0 %v4796_v62 }
 0xb7a   : > { %4487 = vmatpush3.bf16.msra.mxu0 %v4585_v33  ;;  %v4778_v33 = vld [vmem:[%s4905_s27 + $0x40] sm:$0xff] }
 0xb7b   : > { %4488 = vmatprep.subr.bf16.mxu0 %v4796_v62 }
 0xb7e   : > { %4489 = vmatpush3.bf16.msra.mxu0 %v4586_v34  ;;  %v5360_v34 = vadd.f32 %v4778_v33, %v592_v20 }
 0xc44   : > { %v2246_v37 = vpop.f32.mrb[48].mxu0 }
 0xc45   : > { %v2247_v38 = vadd.f32 %v4268_v36, %v2246_v37  ;;  %v4480_v39 = vpop.f32.mrb[49].mxu0  ;;  %v5365_v36 = vadd.f32 %v4779_v1, %v593_v24  ;;  %v596_v37 = vld [vmem:[%s6312_s8 + $0x60] sm:$0xff] }
 0xc46   : > { %v2249_v40 = vpop.f32.mrb[50].mxu0  ;;  %v597_v39 = vld [vmem:[%s6312_s8 + $0x68] sm:$0xff] }
 0xc47   : > { %v2253_v41 = vmul.f32 0.044715, %v2247_v38  ;;  %v4481_v42 = vpop.f32.mrb[51].mxu0  ;;  %v2252_v49 = vmul.f32 0.5, %v2247_v38  ;;  %v4780_v40 = vld [vmem:[%s4905_s27 + $0x50] sm:$0xff] }
 0xc48   : > { %v2378_v42 = vadd.f32 %v5349_v28, %v5346_v26 }
 0xc49   : > { %v2254_v43 = vmul.f32 %v2253_v41, %v2247_v38  ;;  %v5376_v41 = vadd.f32 %v4780_v40, %v594_v30 }
 0xc4b   : > { %v2255_v44 = vmul.f32 %v2254_v43, %v2247_v38  ;;  %v4781_v43 = vld [vmem:[%s4905_s27 + $0x58] sm:$0xff] }
 0xc4d   : > { %v2256_v45 = vadd.f32 %v2255_v44, %v2247_v38  ;;  %v2369_v38 = vadd.f32 %v5340_v23, %v5337_v21  ;;  %v5381_v44 = vadd.f32 %v4781_v43, %v595_v32 }
 0xc4f   : > { %v2257_v46 = vmul.f32 0.7978846, %v2256_v45  ;;  %v598_v45 = vld [vmem:[%s6312_s8 + $0x70] sm:$0xff] }
 0xc51   : > { %4644 = vtanh.f32 %v2257_v46  ;;  %v599_v46 = vld [vmem:[%s6312_s8 + $0x78] sm:$0xff] }
 0xc5b   : > { %v4645_v47 = vpop.eup %4644 }
 0xc5c   : > { %v2259_v51 = vadd.f32 1.0, %v4645_v47  ;;  %v4782_v47 = vld [vmem:[%s4905_s27 + $0x60] sm:$0xff] }
 0xc5e   : > { %v2260_v52 = vmul.f32 %v2259_v51, %v2252_v49  ;;  %v5390_v49 = vadd.f32 %v4782_v47, %v596_v37  ;;  %v2352_v51 = vadd.f32 %v2351_v31, %v5360_v34 }
 0xc60   : > { %v2261_v54 = vpack.c.bf16 %v2260_v52, %v2260_v52  ;;  %v4783_v52 = vld [vmem:[%s4905_s27 + $0x68] sm:$0xff] }
 0xc62   : > { %4491 = vmatmul.mubr.msk.bf16.vlgmr.msra.gmra.mrb[52].mxu0 %vm1123_vm3, %v2261_v54  ;;  %v5394_v54 = vadd.f32 %v4783_v52, %v597_v39 }
 0xc63   : > { %2644 = vmatprep.mubr.bf16.mxu0 %v6321_v0 }
 0xd35   : > { %v2323_v57 = vpop.f32.mrb[52].mxu0 }
 0xd36   : > { %v2329_v19 = vadd.f32 %v2323_v57, %v5226_v6  ;;  %v4492_v58 = vpop.f32.mrb[53].mxu0  ;;  %v589_v6 = vld [vmem:[%s6312_s8 + $0x28] sm:$0xff] }
 0xd37   : > { %v2326_v59 = vpop.f32.mrb[54].mxu0  ;;  %v5331_v17 = vadd.f32 %v4773_v16, %v589_v6  ;;  %v4785_v58 = vld [vmem:[%s4905_s27 + $0x78] sm:$0xff] }
 0xd38   : > { %v5285_v60 = vadd.f32 %v2333_v56, %v2329_v19  ;;  %v4493_v61 = vpop.f32.mrb[55].mxu0  ;;  %v4784_v56 = vld [vmem:[%s4905_s27 + $0x70] sm:$0xff]  ;;  %v2370_v19 = vadd.f32 %v2369_v38, %v5376_v41  ;;  %v5402_v59 = vadd.f32 %v4785_v58, %v599_v46 }
 0xd39   : > { %v2360_v35 = vadd.f32 %v5331_v17, %v5328_v15  ;;  %v5398_v57 = vadd.f32 %v4784_v56, %v598_v45  ;;  %v2379_v61 = vadd.f32 %v2378_v42, %v5381_v44 }
 0xd3a   : > { %v2593_v63 = vsel %vm2592_vm7, %v5285_v60, 0.0  ;;  %v2568_v2 = vsel %vm2567_vm8, %v5285_v60, 0.0 }
 0xd3b   : > { %2594 = vadd.xlane.f32.xlu1 %v2593_v63  ;;  %v2361_v55 = vadd.f32 %v2360_v35, %v5365_v36  ;;  %v2353_v63 = vadd.f32 %v2352_v51, %v5390_v49 }
 0xd3d   : > { %v2354_v53 = vrot.slane %v2353_v63, 4 }
 0xd3f   : > { %2569 = vadd.xlane.f32.xlu1 %v2568_v2  ;;  %v2362_v2 = vadd.f32 %v2361_v55, %v5394_v54  ;;  %v2355_v7 = vadd.f32 %v2354_v53, %v2353_v63 }
 0xd41   : > { %v2363_v4 = vrot.slane %v2362_v2, 4  ;;  %v2356_v10 = vrot.slane %v2355_v7, 2 }
 0xd43   : > { %v2364_v8 = vadd.f32 %v2363_v4, %v2362_v2  ;;  %v2357_v20 = vadd.f32 %v2356_v10, %v2355_v7 }
 0xd45   : > { %v2365_v12 = vrot.slane %v2364_v8, 2  ;;  %v2358_v25 = vrot.slane %v2357_v20, 1 }
 0xd47   : > { %v2366_v18 = vadd.f32 %v2365_v12, %v2364_v8  ;;  %v2359_v32 = vadd.f32 %v2358_v25, %v2357_v20 }
 0xd49   : > { %v2367_v27 = vrot.slane %v2366_v18, 1  ;;  %v2387_v37 = vmul.f32 0.03125, %v2359_v32 }
 0xd4b   : > { %v2368_v33 = vadd.f32 %v2367_v27, %v2366_v18  ;;  %v5410_v42 = vsub.f32 %v5322_v11, %v2387_v37  ;;  %v5413_v43 = vsub.f32 %v5325_v13, %v2387_v37  ;;  %v5434_v56 = vsub.f32 %v5360_v34, %v2387_v37 }
 0xd4c   : > { %v5462_v7 = vsub.f32 %v5390_v49, %v2387_v37 }
 0xd4d   : > { %v2388_v38 = vmul.f32 0.03125, %v2368_v33  ;;  %v2411_v58 = vmul.f32 %v5413_v43, %v5413_v43  ;;  %v2415_v8 = vmul.f32 %v5434_v56, %v5434_v56 }
 0xd4e   : > { %v2419_v25 = vmul.f32 %v5462_v7, %v5462_v7 }
 0xd4f   : > { %v5416_v45 = vsub.f32 %v5328_v15, %v2388_v38  ;;  %v5419_v46 = vsub.f32 %v5331_v17, %v2388_v38 }
 0xd50   : > { %2530 = vperm.xlu1 %4532, %v605_v50   ;;  %v2371_v50 = vadd.f32 %v2370_v19, %v5398_v57  ;;  %v2407_v19 = vmul.f32 %v5410_v42, %v5410_v42 }
 0xd51   : > { %v2408_v63 = vmul.f32 %v5416_v45, %v5416_v45  ;;  %v2412_v2 = vmul.f32 %v5419_v46, %v5419_v46 }
 0xd52   : > { %v2372_v5 = vrot.slane %v2371_v50, 4 }
 0xd53   : > { %v2432_v12 = vadd.f32 %v2412_v2, %v2408_v63 }
 0xd54   : > { %2499 = vperm.xlu1 %4532, %v602_v3   ;;  %v2380_v3 = vadd.f32 %v2379_v61, %v5402_v59  ;;  %v2373_v9 = vadd.f32 %v2372_v5, %v2371_v50  ;;  %v5441_v61 = vsub.f32 %v5365_v36, %v2388_v38 }
 0xd56   : > { %v2381_v6 = vrot.slane %v2380_v3, 4  ;;  %v2374_v14 = vrot.slane %v2373_v9, 2  ;;  %v2416_v10 = vmul.f32 %v5441_v61, %v5441_v61 }
 0xd58   : > { %v2382_v29 = vadd.f32 %v2381_v6, %v2380_v3  ;;  %v2375_v22 = vadd.f32 %v2374_v14, %v2373_v9  ;;  %v2423_v9 = vadd.f32 %v2411_v58, %v2407_v19 }
 0xd5a   : > { %v2383_v16 = vrot.slane %v2382_v29, 2  ;;  %v2376_v30 = vrot.slane %v2375_v22, 1  ;;  %v2424_v27 = vadd.f32 %v2423_v9, %v2415_v8 }
 0xd5c   : > { %v2384_v24 = vadd.f32 %v2383_v16, %v2382_v29  ;;  %v2377_v35 = vadd.f32 %v2376_v30, %v2375_v22  ;;  %v5467_v29 = vsub.f32 %v5394_v54, %v2388_v38  ;;  %v2425_v37 = vadd.f32 %v2424_v27, %v2419_v25 }
 0xd5e   : > { %v2385_v31 = vrot.slane %v2384_v24, 1  ;;  %v2389_v39 = vmul.f32 0.03125, %v2377_v35  ;;  %v2420_v30 = vmul.f32 %v5467_v29, %v5467_v29  ;;  %v2426_v19 = vrot.slane %v2425_v37, 4 }
 0xd60   : > { %v2386_v1 = vadd.f32 %v2385_v31, %v2384_v24  ;;  %v5422_v47 = vsub.f32 %v5337_v21, %v2389_v39  ;;  %v5425_v51 = vsub.f32 %v5340_v23, %v2389_v39  ;;  %v5448_v50 = vsub.f32 %v5376_v41, %v2389_v39 }
 0xd61   : > { %v5472_v14 = vsub.f32 %v5398_v57, %v2389_v39  ;;  %v2433_v31 = vadd.f32 %v2432_v12, %v2416_v10 }
 0xd62   : > { %v2390_v40 = vmul.f32 0.03125, %v2386_v1  ;;  %v2409_v3 = vmul.f32 %v5422_v47, %v5422_v47  ;;  %v2413_v53 = vmul.f32 %v5425_v51, %v5425_v51  ;;  %v2417_v16 = vmul.f32 %v5448_v50, %v5448_v50 }
 0xd63   : > { %v2421_v32 = vmul.f32 %v5472_v14, %v5472_v14  ;;  %v2434_v38 = vadd.f32 %v2433_v31, %v2420_v30 }
 0xd64   : > { %v5428_v52 = vsub.f32 %v5346_v26, %v2390_v40  ;;  %v5431_v55 = vsub.f32 %v5349_v28, %v2390_v40  ;;  %v5455_v4 = vsub.f32 %v5381_v44, %v2390_v40  ;;  %v2441_v20 = vadd.f32 %v2413_v53, %v2409_v3 }
 0xd65   : > { %v5477_v18 = vsub.f32 %v5402_v59, %v2390_v40  ;;  %v2435_v58 = vrot.slane %v2434_v38, 4  ;;  %v2427_v3 = vadd.f32 %v2426_v19, %v2425_v37 }
 0xd66   : > { %v2410_v5 = vmul.f32 %v5428_v52, %v5428_v52  ;;  %v2414_v6 = vmul.f32 %v5431_v55, %v5431_v55  ;;  %v2418_v22 = vmul.f32 %v5455_v4, %v5455_v4  ;;  %v2442_v33 = vadd.f32 %v2441_v20, %v2417_v16 }
 0xd67   : > { %v2422_v35 = vmul.f32 %v5477_v18, %v5477_v18  ;;  %v2436_v53 = vadd.f32 %v2435_v58, %v2434_v38  ;;  %v2428_v8 = vrot.slane %v2427_v3, 2 }
 0xd68   : > { %v2450_v24 = vadd.f32 %v2414_v6, %v2410_v5  ;;  %v2443_v39 = vadd.f32 %v2442_v33, %v2421_v32 }
 0xd69   : > { %v2437_v9 = vrot.slane %v2436_v53, 2  ;;  %v2429_v16 = vadd.f32 %v2428_v8, %v2427_v3 }
 0xd6a   : > { %v2451_v1 = vadd.f32 %v2450_v24, %v2418_v22  ;;  %v2444_v63 = vrot.slane %v2443_v39, 4 }
 0xd6b   : > { %v2438_v20 = vadd.f32 %v2437_v9, %v2436_v53  ;;  %v2430_v24 = vrot.slane %v2429_v16, 1 }
 0xd6c   : > { %v2452_v40 = vadd.f32 %v2451_v1, %v2422_v35  ;;  %v2445_v5 = vadd.f32 %v2444_v63, %v2443_v39 }
 0xd6d   : > { %v2439_v25 = vrot.slane %v2438_v20, 1  ;;  %v2431_v31 = vadd.f32 %v2430_v24, %v2429_v16 }
 0xd6e   : > { %v2453_v2 = vrot.slane %v2452_v40, 4  ;;  %v2446_v10 = vrot.slane %v2445_v5, 2 }
 0xd6f   : > { %v2440_v32 = vadd.f32 %v2439_v25, %v2438_v20  ;;  %v2459_v1 = vmul.f32 0.03125, %v2431_v31 }
 0xd70   : > { %v2454_v6 = vadd.f32 %v2453_v2, %v2452_v40  ;;  %v2447_v0 = vadd.f32 %v2446_v10, %v2445_v5  ;;  %v2490_v2 = vpop.permute.xlu1 %2489 }
 0xd71   : > { %v2460_v37 = vmul.f32 0.03125, %v2440_v32  ;;  %v2463_v40 = vadd.f32 1e-05, %v2459_v1 }
 0xd72   : > { %v2455_v12 = vrot.slane %v2454_v6, 2  ;;  %v2448_v27 = vrot.slane %v2447_v0, 1 }
 0xd73   : > { %v2464_v19 = vadd.f32 1e-05, %v2460_v37  ;;  %4646 = vrsqrt.f32 %v2463_v40 }
 0xd74   : > { %v2456_v22 = vadd.f32 %v2455_v12, %v2454_v6  ;;  %v2449_v33 = vadd.f32 %v2448_v27, %v2447_v0  ;;  %v2526_v53 = vpop.permute.xlu1 %2525 }
 0xd75   : > { %4648 = vrsqrt.f32 %v2464_v19 }
 0xd76   : > { %v2457_v30 = vrot.slane %v2456_v22, 1  ;;  %v2461_v38 = vmul.f32 0.03125, %v2449_v33 }
 0xd78   : > { %v2458_v35 = vadd.f32 %v2457_v30, %v2456_v22  ;;  %v2465_v58 = vadd.f32 1e-05, %v2461_v38 }
 0xd7a   : > { %v2462_v39 = vmul.f32 0.03125, %v2458_v35  ;;  %4650 = vrsqrt.f32 %v2465_v58 }
 0xd7c   : > { %v2466_v63 = vadd.f32 1e-05, %v2462_v39 }
 0xd7d   : > { %v5489_v3 = vpop.eup %4646 }
 0xd7e   : > { %4652 = vrsqrt.f32 %v2466_v63  ;;  %v2471_v8 = vmul.f32 %v5489_v3, %v5410_v42  ;;  %v2475_v22 = vmul.f32 %v5489_v3, %v5413_v43  ;;  %v2495_v42 = vpop.permute.xlu0 %2494 }
 0xd7f   : > { %v4649_v5 = vpop.eup %4648 }
 0xd80   : > { %v2472_v9 = vmul.f32 %v4649_v5, %v5416_v45  ;;  %v2476_v24 = vmul.f32 %v4649_v5, %v5419_v46  ;;  %v2511_v35 = vmul.f32 %v2495_v42, %v2475_v22 }
 0xd82   : > { %v2508_v30 = vmul.f32 %v2490_v2, %v2472_v9  ;;  %v2512_v46 = vmul.f32 %v2495_v42, %v2476_v24 }
 0xd84   : > { %v4651_v6 = vpop.eup %4650  ;;  %v2544_v39 = vadd.f32 %v2526_v53, %v2508_v30  ;;  %v2484_v30 = vmul.f32 %v4649_v5, %v5467_v29 }
 0xd85   : > { %v2473_v10 = vmul.f32 %v4651_v6, %v5422_v47  ;;  %v2477_v25 = vmul.f32 %v4651_v6, %v5425_v51  ;;  %v2507_v47 = vmul.f32 %v2490_v2, %v2471_v8 }
 0xd87   : > { %v2509_v31 = vmul.f32 %v2490_v2, %v2473_v10  ;;  %v2513_v1 = vmul.f32 %v2495_v42, %v2477_v25  ;;  %v2543_v38 = vadd.f32 %v2526_v53, %v2507_v47  ;;  %v2505_v25 = vpop.permute.xlu0 %2504 }
 0xd88   : > { %v5491_v0 = vpop.eup %4652 }
 0xd89   : > { %v2474_v12 = vmul.f32 %v5491_v0, %v5428_v52  ;;  %v2478_v27 = vmul.f32 %v5491_v0, %v5431_v55  ;;  %v2545_v40 = vadd.f32 %v2526_v53, %v2509_v31  ;;  %v2485_v31 = vmul.f32 %v4651_v6, %v5472_v14 }
 0xd8a   : > { %v2520_v14 = vmul.f32 %v2505_v25, %v2484_v30 }
 0xd8b   : > { %v2510_v52 = vmul.f32 %v2490_v2, %v2474_v12  ;;  %v2514_v51 = vmul.f32 %v2495_v42, %v2478_v27  ;;  %v2483_v42 = vmul.f32 %v5489_v3, %v5462_v7  ;;  %v2482_v7 = vmul.f32 %v5491_v0, %v5455_v4 }
 0xd8d   : > { %v2546_v19 = vadd.f32 %v2526_v53, %v2510_v52  ;;  %v606_v53 = vld [vmem:[%s6313_s9 + $0x30] sm:$0xff]  ;;  %v2486_v52 = vmul.f32 %v5491_v0, %v5477_v18 }
 0xdc8   : > { %v2595_v16 = vpop.xlane.xlu1 %2594 }
 0xdc9   : > { %v2596_v20 = vmul.f32 0.03125, %v2595_v16 }
 0xdcb   : > { %v5506_v45 = vsub.f32 %v5285_v60, %v2596_v20 }
 0xdcc   : > { %v2570_v32 = vpop.xlane.xlu1 %2569 }
 0xdcd   : > { %v2571_v33 = vmul.f32 0.03125, %v2570_v32  ;;  %v2598_v43 = vmul.f32 %v5506_v45, %v5506_v45 }
 0xdcf   : > { %v5511_v37 = vsub.f32 %v5285_v60, %v2571_v33  ;;  %v2599_v55 = vsel %vm2592_vm7, %v2598_v43, 0.0  ;;  %v2541_v33 = vpop.permute.xlu0 %2540  ;;  %v2479_v43 = vmul.f32 %v5489_v3, %v5434_v56 }
 0xdd0   : > { %2600 = vadd.xlane.f32.xlu1 %v2599_v55  ;;  %v2531_v58 = vpop.permute.xlu1 %2530  ;;  %v2521_v55 = vmul.f32 %v2505_v25, %v2485_v31  ;;  %v2556_v56 = vadd.f32 %v2541_v33, %v2520_v14 }
 0xdd1   : > { %v2547_v63 = vadd.f32 %v2531_v58, %v2511_v35  ;;  %v2548_v2 = vadd.f32 %v2531_v58, %v2512_v46  ;;  %v2549_v8 = vadd.f32 %v2531_v58, %v2513_v1  ;;  %v2550_v9 = vadd.f32 %v2531_v58, %v2514_v51 }
 0xdd2   : > { %v2573_v10 = vmul.f32 %v5511_v37, %v5511_v37  ;;  %v2480_v35 = vmul.f32 %v4649_v5, %v5441_v61  ;;  %v2481_v46 = vmul.f32 %v4651_v6, %v5448_v50  ;;  %v2519_v1 = vmul.f32 %v2505_v25, %v2483_v42 }
 0xdd3   : > { %v2560_v12 = vpack.c.bf16 %v2548_v2, %v2544_v39  ;;  %v2562_v16 = vpack.c.bf16 %v2550_v9, %v2546_v19  ;;  %v2559_v20 = vpack.c.bf16 %v2547_v63, %v2543_v38  ;;  %v2561_v60 = vpack.c.bf16 %v2549_v8, %v2545_v40 }
 0xdd4   : > { %v2574_v22 = vsel %vm2567_vm8, %v2573_v10, 0.0  ;;  %v2500_v24 = vpop.permute.xlu1 %2499  ;;  %v2522_v38 = vmul.f32 %v2505_v25, %v2486_v52  ;;  %v2555_v18 = vadd.f32 %v2541_v33, %v2519_v1  ;;  %v2557_v3 = vadd.f32 %v2541_v33, %v2521_v55 }
 0xdd5   : > { %2575 = vadd.xlane.f32.xlu1 %v2574_v22  ;;  %2612 = vmatprep.subr.bf16.mxu0 %v2560_v12  ;;  %v2515_v39 = vmul.f32 %v2500_v24, %v2479_v43  ;;  %v2516_v40 = vmul.f32 %v2500_v24, %v2480_v35  ;;  %v2517_v19 = vmul.f32 %v2500_v24, %v2481_v46  ;;  %v2583_v50 = vsub.s32 6, %v4981_v48  ;;  %v4587_v35 = vld [vmem:[%s6316_s12] sm:$0xff]  }
 0xdd6   : > { %2653 = vmatprep.subr.bf16.mxu1 %v2562_v16  ;;  %2613 = vmatpush1.bf16.msra.mxu0 %v2559_v20  ;;  %v2518_v61 = vmul.f32 %v2500_v24, %v2482_v7  ;;  %v2558_v63 = vadd.f32 %v2541_v33, %v2522_v38  ;;  %v2588_v12 = vsub.s32 7, %v4981_v48  ;;  %v4786_v20 = vld [vmem:[%s6305_s1] sm:$0xff] }
 0xdd7   : > { %2654 = vmatpush1.bf16.msra.mxu1 %v2561_v60  ;;  %v2584_v60 = vrot.slane %v4786_v20, %v2583_v50  ;;  %v4801_v50 = vmov 2  }
 0xdd8   : > { %v2589_v24 = vrot.slane %v4786_v20, %v2588_v12  ;;  %v612_v12 = vld [vmem:[%s6313_s9 + $0x60] sm:$0xff]  ;;  %v610_v20 = vld [vmem:[%s6313_s9 + $0x50] sm:$0xff] }
 0xde6   : > { %2535 = vperm.xlu1 %4532, %v606_v53   ;;  %v632_v53 = vld [vmem:[%s6315_s11] sm:$0xf] }
 0xe5d   : > { %v2601_v27 = vpop.xlane.xlu1 %2600 }
 0xe5e   : > { %v2602_v47 = vmul.f32 0.03125, %v2601_v27 }
 0xe60   : > { %v2603_v32 = vadd.f32 1e-05, %v2602_v47 }
 0xe62   : > { %4654 = vrsqrt.f32 %v2603_v32  ;;  %v2576_v29 = vpop.xlane.xlu1 %2575 }
 0xe63   : > { %v2577_v51 = vmul.f32 0.03125, %v2576_v29 }
 0xe65   : > { %v2578_v58 = vadd.f32 1e-05, %v2577_v51 }
 0xe66   : > { %v2536_v5 = vpop.permute.xlu1 %2535 }
 0xe67   : > { %4656 = vrsqrt.f32 %v2578_v58  ;;  %v2551_v6 = vadd.f32 %v2536_v5, %v2515_v39  ;;  %v2552_v4 = vadd.f32 %v2536_v5, %v2516_v40  ;;  %v2553_v0 = vadd.f32 %v2536_v5, %v2517_v19 }
 0xe68   : > { %v2554_v2 = vadd.f32 %v2536_v5, %v2518_v61  ;;  %v4800_v5 = vmov 3  }
 0xe69   : > { %v2564_v8 = vpack.c.bf16 %v2556_v56, %v2552_v4  ;;  %v2563_v9 = vpack.c.bf16 %v2555_v18, %v2551_v6  ;;  %v2565_v10 = vpack.c.bf16 %v2557_v3, %v2553_v0  ;;  %v4799_v3 = vmov 1   ;;  %v616_v6 = vld [vmem:[%s6313_s9 + $0x80] sm:$0xff]  ;;  %v618_v4 = vld [vmem:[%s6313_s9 + $0x90] sm:$0xff]  ;;  %v617_v0 = vld [vmem:[%s6313_s9 + $0x88] sm:$0xff] }
 0xe6a   : > { %v2566_v16 = vpack.c.bf16 %v2558_v63, %v2554_v2  ;;  %v609_v63 = vld [vmem:[%s6313_s9 + $0x48] sm:$0xff]  ;;  %v619_v2 = vld [vmem:[%s6313_s9 + $0x98] sm:$0xff] }
 0xe6b   : > { %2614 = vmatprep.subr.bf16.mxu0 %v2564_v8  ;;  %v613_v8 = vld [vmem:[%s6313_s9 + $0x68] sm:$0xff] }
 0xe6c   : > { %v4655_v22 = vpop.eup %4654  ;;  %2655 = vmatprep.subr.bf16.mxu1 %v2566_v16  ;;  %2615 = vmatpush1.bf16.msra.mxu0 %v2563_v9  ;;  %v608_v9 = vld [vmem:[%s6313_s9 + $0x40] sm:$0xff]  ;;  %v615_v16 = vld [vmem:[%s6313_s9 + $0x78] sm:$0xff] }
 0xe6d   : > { %2656 = vmatpush1.bf16.msra.mxu1 %v2565_v10  ;;  %v2605_v25 = vmul.f32 %v4655_v22, %v5506_v45  ;;  %4494 = vmatprep.subr.bf16.mxu0 %v4796_v62  ;;  %v611_v10 = vld [vmem:[%s6313_s9 + $0x58] sm:$0xff]  ;;  %v614_v22 = vld [vmem:[%s6313_s9 + $0x70] sm:$0xff] }
 0xe6e   : > { %4500 = vmatprep.subr.bf16.mxu1 %v4796_v62 }
 0xe6f   : > { %4277 = vmatmul.mubr.msk.bf16.vlgmr.msra.gmra.mrb[56].mxu0 %vm691_vm0, %v632_v53  ;;  %v2606_v48 = vmul.f32 %v2605_v25, %v2584_v60  ;;  %v629_v25 = vld [vmem:[%s6314_s10 + $0x28] sm:$0xff] }
 0xe70   : > { %4278 = vmatmul.mubr.msk.bf16.vlgmr.msra.gmra.mrb[48].mxu1 %vm691_vm0, %v632_v53  ;;  %4496 = vmatprep.mubr.msk.bf16.mxu0 %vm4797_vm2, %v4796_v62  ;;  %v627_v53 = vld [vmem:[%s6314_s10 + $0x18] sm:$0xff] }
 0xe71   : > { %v4657_v27 = vpop.eup %4656  ;;  %v2607_v42 = vadd.f32 %v2606_v48, %v2589_v24  ;;  %4502 = vmatprep.mubr.msk.bf16.mxu1 %vm4797_vm2, %v4796_v62  ;;  %v6347_v62 = vmov 0   ;;  %v626_v48 = vld [vmem:[%s6314_s10 + $0x10] sm:$0xff] }
 0xe72   : > { %v2580_v47 = vmul.f32 %v4657_v27, %v5511_v37  ;;  %v631_v27 = vld [vmem:[%s6314_s10 + $0x38] sm:$0xff] }
 0xe73   : > { %v2608_v45 = vpack.c.bf16 %v2607_v42, %v2607_v42  ;;  %v628_v42 = vld [vmem:[%s6314_s10 + $0x20] sm:$0xff] }
 0xe74   : > { %v2585_v30 = vmul.f32 %v2584_v60, %v2580_v47  ;;  %v625_v60 = vld [vmem:[%s6314_s10 + $0x8] sm:$0xff] }
 0xe75   : > { %v2751_v31 = vrot.slane %v2608_v45, 2  ;;  %v621_v47 = vld [vmem:[%s6313_s9 + $0xa8] sm:$0xff]  ;;  %v630_v45 = vld [vmem:[%s6314_s10 + $0x30] sm:$0xff] }
 0xe76   : > { %v2590_v52 = vadd.f32 %v2589_v24, %v2585_v30  ;;  %v624_v24 = vld [vmem:[%s6314_s10] sm:$0xff]  ;;  %v623_v30 = vld [vmem:[%s6313_s9 + $0xb8] sm:$0xff] }
 0xe77   : > { %v2753_v32 = vsel %vm691_vm0, %v2751_v31, 0  ;;  %v620_v31 = vld [vmem:[%s6313_s9 + $0xa0] sm:$0xff] }
 0xe78   : > { %4501 = vmatpush3.bf16.xpose.msra.mxu1 %v2753_v32  ;;  %v2591_v33 = vpack.c.bf16 %v2590_v52, %v2590_v52  ;;  %v622_v32 = vld [vmem:[%s6313_s9 + $0xb0] sm:$0xff] }
 0xe7a   : > { %v2707_v43 = vsel %vm691_vm0, %v2591_v33, 0 }
 0xe7b   : > { %4495 = vmatpush3.bf16.xpose.msra.mxu0 %v2707_v43 }
 0xe7f   : > { %4503 = vmatmul.mubr.msk.bf16.vlgmr.msra.gmra.mrb[52].mxu1 %vm691_vm0, %v4587_v35 }
 0xe80   : > { %3146 = vmatprep.mubr.bf16.mxu1 %v6347_v62 }
 0xe82   : > { %4497 = vmatmul.mubr.msk.bf16.vlgmr.msra.gmra.mrb[60].mxu0 %vm691_vm0, %v4587_v35 }
 0xe83   : > { %3093 = vmatprep.mubr.bf16.mxu0 %v6347_v62 }
 0xf42   : > { %v5559_v37 = vpop.f32.mrb[56].mxu0 }
 0xf43   : > { %v5561_v46 = vpop.f32.mrb[57].mxu0  ;;  %v5563_v1 = vpop.f32.mrb[48].mxu1  ;;  %v2694_v35 = vmul.f32 0.17677669, %v5559_v37 }
 0xf44   : > { %v2650_v7 = vpop.f32.mrb[58].mxu0  ;;  %v5565_v29 = vpop.f32.mrb[49].mxu1 }
 0xf45   : > { %v2651_v51 = vpop.f32.mrb[59].mxu0  ;;  %v2691_v14 = vpop.f32.mrb[50].mxu1  ;;  %v2695_v7 = vmul.f32 0.17677669, %v5561_v46 }
 0xf46   : > { %v2692_v55 = vpop.f32.mrb[51].mxu1 }
 0xf52   : > { %v2789_v38 = vpop.f32.mrb[52].mxu1 }
 0xf53   : > { %2803 = vperm.xlu0 %4521, %v2789_v38   ;;  %v4504_v18 = vpop.f32.mrb[53].mxu1 }
 0xf54   : > { %v2792_v39 = vpop.f32.mrb[54].mxu1 }
 0xf55   : > { %v2743_v40 = vpop.f32.mrb[60].mxu0  ;;  %v4505_v19 = vpop.f32.mrb[55].mxu1 }
 0xf56   : > { %2798 = vperm.xlu1 %4532, %v2743_v40   ;;  %v4498_v58 = vpop.f32.mrb[61].mxu0 }
 0xf57   : > { %v2746_v56 = vpop.f32.mrb[62].mxu0  ;;  %4535 = vset.pattern.permute.xlu0 %v4799_v3 }
 0xf58   : > { %v4499_v61 = vpop.f32.mrb[63].mxu0  ;;  %2819 = vperm.xlu0 %4535, %v2789_v38  }
 0xf5a   : > { %4533 = vset.pattern.permute.xlu1 %v4799_v3 }
 0xf5b   : > { %2815 = vperm.xlu1 %4533, %v2743_v40  }
 0xf5c   : > { %4536 = vset.pattern.permute.xlu0 %v4800_v5 }
 0xf5d   : > { %2855 = vperm.xlu0 %4536, %v2743_v40  }
 0xf5f   : > { %4534 = vset.pattern.permute.xlu1 %v4801_v50 }
 0xf60   : > { %2835 = vperm.xlu1 %4534, %v2743_v40  }
 0xf61   : > { %4540 = vset.pattern.permute.xlu0 %v4801_v50 }
 0xf62   : > { %2965 = vperm.xlu0 %4540, %v2746_v56  }
 0xf64   : > { %2839 = vperm.xlu1 %4534, %v2789_v38  }
 0xf66   : > { %4541 = vset.pattern.permute.xlu0 %v6347_v62 }
 0xf67   : > { %2897 = vperm.xlu0 %4541, %v2792_v39  }
 0xf68   : > { %4537 = vset.pattern.permute.xlu1 %v4800_v5 }
 0xf69   : > { %2859 = vperm.xlu1 %4537, %v2789_v38  }
 0xf6b   : > { %4544 = vset.pattern.permute.xlu0 %v4800_v5 }
 0xf6c   : > { %3005 = vperm.xlu0 %4544, %v2792_v39  }
 0xf6d   : > { %4538 = vset.pattern.permute.xlu1 %v6347_v62 }
 0xf6e   : > { %2892 = vperm.xlu1 %4538, %v2746_v56  }
 0xf70   : > { %4546 = vset.pattern.permute.xlu0 %v6347_v62 }
 0xf71   : > { %3195 = vperm.xlu0 %4546, %v618_v4  }
 0xf72   : > { %4539 = vset.pattern.permute.xlu1 %v4799_v3 }
 0xf73   : > { %2929 = vperm.xlu1 %4539, %v2746_v56  }
 0xf75   : > { %3362 = vperm.xlu0 %4546, %v609_v63  }
 0xf77   : > { %2933 = vperm.xlu1 %4539, %v2792_v39  }
 0xf79   : > { %3398 = vperm.xlu0 %4546, %v613_v8  }
 0xf7b   : > { %4542 = vset.pattern.permute.xlu1 %v4801_v50 }
 0xf7c   : > { %2969 = vperm.xlu1 %4542, %v2792_v39   ;;  %v2696_v39 = vmul.f32 0.17677669, %v5563_v1 }
 0xf7d   : > { %3372 = vperm.xlu0 %4546, %v611_v10  }
 0xf80   : > { %4543 = vset.pattern.permute.xlu1 %v4800_v5  ;;  %v2697_v5 = vmul.f32 0.17677669, %v5565_v29 }
 0xf81   : > { %3001 = vperm.xlu1 %4543, %v2746_v56   ;;  %3408 = vperm.xlu0 %4546, %v615_v16  }
 0xf85   : > { %4545 = vset.pattern.permute.xlu1 %v6347_v62  ;;  %3442 = vperm.xlu0 %4546, %v625_v60  }
 0xf86   : > { %3185 = vperm.xlu1 %4545, %v616_v6  }
 0xf89   : > { %3452 = vperm.xlu0 %4546, %v627_v53  }
 0xf8a   : > { %3190 = vperm.xlu1 %4545, %v617_v0  }
 0xf8d   : > { %3462 = vperm.xlu0 %4546, %v629_v25  }
 0xf8e   : > { %3200 = vperm.xlu1 %4545, %v619_v2  }
 0xf91   : > { %3472 = vperm.xlu0 %4546, %v631_v27  }
 0xf92   : > { %3357 = vperm.xlu1 %4545, %v608_v9  }
 0xf95   : > { %4102 = vperm.xlu0 %4546, %v621_v47  }
 0xf96   : > { %3393 = vperm.xlu1 %4545, %v612_v12  }
 0xf99   : > { %4112 = vperm.xlu0 %4546, %v623_v30  }
 0xf9a   : > { %3367 = vperm.xlu1 %4545, %v610_v20  }
 0xf9e   : > { %3403 = vperm.xlu1 %4545, %v614_v22  }
 0xfa2   : > { %3437 = vperm.xlu1 %4545, %v624_v24  }
 0xfa6   : > { %3447 = vperm.xlu1 %4545, %v626_v48  }
 0xfaa   : > { %3457 = vperm.xlu1 %4545, %v628_v42  }
 0xfae   : > { %3467 = vperm.xlu1 %4545, %v630_v45  }
 0xfb2   : > { %4097 = vperm.xlu1 %4545, %v620_v31  }
 0xfb6   : > { %4107 = vperm.xlu1 %4545, %v622_v32  }
 0xfd2   : > { %v2804_v52 = vpop.permute.xlu0 %2803 }
 0xfd3   : > { %v2812_v2 = vmul.f32 %v2804_v52, %v2696_v39  ;;  %v2813_v10 = vmul.f32 %v2804_v52, %v2697_v5 }
 0xfd5   : > { %v2799_v33 = vpop.permute.xlu1 %2798 }
 0xfd6   : > { %v2810_v38 = vmul.f32 %v2799_v33, %v2694_v35  ;;  %v2811_v18 = vmul.f32 %v2799_v33, %v2695_v7 }
 0xfd7   : > { %v2820_v43 = vpop.permute.xlu0 %2819 }
 0xfd8   : > { %v2828_v50 = vmul.f32 %v2820_v43, %v2696_v39  ;;  %v2829_v0 = vmul.f32 %v2820_v43, %v2697_v5 }
 0xfda   : > { %v2816_v51 = vpop.permute.xlu1 %2815  ;;  %v2832_v16 = vmax.f32 %v2812_v2, %v2828_v50  ;;  %v2833_v60 = vmax.f32 %v2813_v10, %v2829_v0 }
 0xfdb   : > { %v2826_v14 = vmul.f32 %v2816_v51, %v2694_v35  ;;  %v2827_v55 = vmul.f32 %v2816_v51, %v2695_v7 }
 0xfdc   : > { %v2856_v40 = vpop.permute.xlu0 %2855 }
 0xfdd   : > { %v2830_v58 = vmax.f32 %v2810_v38, %v2826_v14  ;;  %v2831_v56 = vmax.f32 %v2811_v18, %v2827_v55  ;;  %v5647_v6 = vmul.f32 %v2856_v40, %v2694_v35  ;;  %v5649_v37 = vmul.f32 %v2856_v40, %v2695_v7 }
 0xfdf   : > { %v2836_v19 = vpop.permute.xlu1 %2835 }
 0xfe0   : > { %v2846_v3 = vmul.f32 %v2836_v19, %v2694_v35  ;;  %v2847_v61 = vmul.f32 %v2836_v19, %v2695_v7 }
 0xfe2   : > { %v2850_v46 = vmax.f32 %v2830_v58, %v2846_v3  ;;  %v2851_v4 = vmax.f32 %v2831_v56, %v2847_v61 }
 0xfe3   : > { %v2840_v63 = vpop.permute.xlu1 %2839 }
 0xfe4   : > { %v2870_v1 = vmax.f32 %v2850_v46, %v5647_v6  ;;  %v2871_v8 = vmax.f32 %v2851_v4, %v5649_v37  ;;  %v2848_v9 = vmul.f32 %v2840_v63, %v2696_v39  ;;  %v2849_v12 = vmul.f32 %v2840_v63, %v2697_v5 }
 0xfe6   : > { %v2948_v20 = vsub.f32 %v2846_v3, %v2870_v1  ;;  %v2949_v29 = vsub.f32 %v2847_v61, %v2871_v8  ;;  %v2874_v22 = vsub.f32 %v2810_v38, %v2870_v1  ;;  %v2875_v53 = vsub.f32 %v2811_v18, %v2871_v8 }
 0xfe7   : > { %v2852_v25 = vmax.f32 %v2832_v16, %v2848_v9  ;;  %v2912_v27 = vsub.f32 %v2826_v14, %v2870_v1  ;;  %v2853_v47 = vmax.f32 %v2833_v60, %v2849_v12  ;;  %v2913_v52 = vsub.f32 %v2827_v55, %v2871_v8 }
 0xfe8   : > { %v2952_v24 = vmul.f32 1.442695, %v2948_v20  ;;  %v2860_v48 = vpop.permute.xlu1 %2859  ;;  %v2954_v42 = vmul.f32 1.442695, %v2949_v29  ;;  %v2878_v31 = vmul.f32 1.442695, %v2874_v22  ;;  %v2984_v4 = vsub.f32 %v5647_v6, %v2870_v1 }
 0xfe9   : > { %v2868_v45 = vmul.f32 %v2860_v48, %v2696_v39  ;;  %v2869_v30 = vmul.f32 %v2860_v48, %v2697_v5  ;;  %v2880_v43 = vmul.f32 1.442695, %v2875_v53  ;;  %v2916_v35 = vmul.f32 1.442695, %v2912_v27 }
 0xfea   : > { %4658 = vpow2.f32 %v2952_v24  ;;  %v2918_v3 = vmul.f32 1.442695, %v2913_v52  ;;  %v2985_v63 = vsub.f32 %v5649_v37, %v2871_v8  ;;  %v2988_v16 = vmul.f32 1.442695, %v2984_v4 }
 0xfeb   : > { %v2872_v32 = vmax.f32 %v2852_v25, %v2868_v45  ;;  %v2873_v33 = vmax.f32 %v2853_v47, %v2869_v30  ;;  %4660 = vpow2.f32 %v2954_v42  ;;  %v2966_v25 = vpop.permute.xlu0 %2965 }
 0xfec   : > { %4662 = vpow2.f32 %v2878_v31 }
 0xfed   : > { %v2876_v7 = vsub.f32 %v2812_v2, %v2872_v32  ;;  %v2877_v51 = vsub.f32 %v2813_v10, %v2873_v33  ;;  %v2914_v38 = vsub.f32 %v2828_v50, %v2872_v32  ;;  %v2986_v18 = vsub.f32 %v2868_v45, %v2872_v32  ;;  %v2893_v39 = vpop.permute.xlu1 %2892 }
 0xfee   : > { %v2987_v40 = vsub.f32 %v2869_v30, %v2873_v33  ;;  %v2915_v58 = vsub.f32 %v2829_v0, %v2873_v33  ;;  %4664 = vpow2.f32 %v2880_v43  ;;  %v2950_v56 = vsub.f32 %v2848_v9, %v2872_v32 }
 0xfef   : > { %v2882_v19 = vmul.f32 1.442695, %v2876_v7  ;;  %v2884_v14 = vmul.f32 1.442695, %v2877_v51  ;;  %4666 = vpow2.f32 %v2916_v35  ;;  %v2951_v61 = vsub.f32 %v2849_v12, %v2873_v33  ;;  %v2898_v51 = vpop.permute.xlu0 %2897 }
 0xff0   : > { %v2992_v5 = vmul.f32 1.442695, %v2986_v18  ;;  %v2994_v55 = vmul.f32 1.442695, %v2987_v40  ;;  %v2920_v46 = vmul.f32 1.442695, %v2914_v38 }
 0xff1   : > { %4668 = vpow2.f32 %v2882_v19  ;;  %v2922_v50 = vmul.f32 1.442695, %v2915_v58  ;;  %v2956_v2 = vmul.f32 1.442695, %v2950_v56  ;;  %v2958_v0 = vmul.f32 1.442695, %v2951_v61 }
 0xff2   : > { %4670 = vpow2.f32 %v2884_v14  ;;  %v2930_v10 = vpop.permute.xlu1 %2929  ;;  %v2990_v12 = vmul.f32 1.442695, %v2985_v63 }
 0xff3   : > { %4672 = vpow2.f32 %v2992_v5 }
 0xff4   : > { %4674 = vpow2.f32 %v2994_v55  ;;  %v4659_v9 = vpop.eup %4658 }
 0xff5   : > { %4676 = vpow2.f32 %v2918_v3  ;;  %v4661_v20 = vpop.eup %4660 }
 0xff6   : > { %4678 = vpow2.f32 %v2920_v46  ;;  %v4663_v29 = vpop.eup %4662  ;;  %v2934_v22 = vpop.permute.xlu1 %2933 }
 0xff7   : > { %4680 = vpow2.f32 %v2922_v50  ;;  %v2904_v38 = vmul.f32 %v4663_v29, %v2893_v39 }
 0xff8   : > { %4682 = vpow2.f32 %v2956_v2  ;;  %v4665_v60 = vpop.eup %4664 }
 0xff9   : > { %4684 = vpow2.f32 %v2958_v0  ;;  %v4667_v6 = vpop.eup %4666  ;;  %v2905_v14 = vmul.f32 %v4665_v60, %v2893_v39 }
 0xffa   : > { %4686 = vpow2.f32 %v2988_v16  ;;  %v2924_v53 = vadd.f32 %v4667_v6, %v4663_v29  ;;  %v2940_v18 = vmul.f32 %v4667_v6, %v2930_v10  ;;  %v2976_v16 = vmul.f32 %v4659_v9, %v2966_v25 }
 0xffb   : > { %v4669_v1 = vpop.eup %4668  ;;  %4688 = vpow2.f32 %v2990_v12  ;;  %v2970_v45 = vpop.permute.xlu1 %2969  ;;  %v2977_v6 = vmul.f32 %v4661_v20, %v2966_v25 }
 0xffc   : > { %v4671_v37 = vpop.eup %4670  ;;  %v2960_v30 = vadd.f32 %v4659_v9, %v2924_v53  ;;  %v2906_v4 = vmul.f32 %v4669_v1, %v2898_v51  ;;  %v2944_v2 = vadd.f32 %v2940_v18, %v2904_v38 }
 0xffd   : > { %v4673_v8 = vpop.eup %4672  ;;  %v2907_v58 = vmul.f32 %v4671_v37, %v2898_v51 }
 0xffe   : > { %v4675_v24 = vpop.eup %4674 }
 0xfff   : > { %v4677_v48 = vpop.eup %4676 }
0x1000   : > { %v4679_v27 = vpop.eup %4678  ;;  %v2925_v42 = vadd.f32 %v4677_v48, %v4665_v60  ;;  %v2941_v61 = vmul.f32 %v4677_v48, %v2930_v10  ;;  %v3002_v63 = vpop.permute.xlu1 %3001 }
0x1001   : > { %v4681_v47 = vpop.eup %4680  ;;  %v2926_v31 = vadd.f32 %v4679_v27, %v4669_v1  ;;  %v2942_v50 = vmul.f32 %v4679_v27, %v2934_v22 }
0x1002   : > { %v4683_v32 = vpop.eup %4682  ;;  %v2927_v33 = vadd.f32 %v4681_v47, %v4671_v37  ;;  %v2961_v43 = vadd.f32 %v4661_v20, %v2925_v42  ;;  %v2943_v56 = vmul.f32 %v4681_v47, %v2934_v22  ;;  %v2945_v12 = vadd.f32 %v2941_v61, %v2905_v14  ;;  %v3006_v42 = vpop.permute.xlu0 %3005  ;;  %v4589_v14 = vld [vmem:[%s6317_s13 + $0x8] sm:$0xff]  }
0x1003   : > { %v4685_v52 = vpop.eup %4684  ;;  %v2962_v35 = vadd.f32 %v4683_v32, %v2926_v31  ;;  %v2946_v39 = vadd.f32 %v2942_v50, %v2906_v4  ;;  %v2980_v37 = vadd.f32 %v2976_v16, %v2944_v2  ;;  %v2978_v53 = vmul.f32 %v4683_v32, %v2970_v45 }
0x1004   : > { %v4687_v7 = vpop.eup %4686  ;;  %v2963_v40 = vadd.f32 %v4685_v52, %v2927_v33  ;;  %v2947_v0 = vadd.f32 %v2943_v56, %v2907_v58  ;;  %v2979_v60 = vmul.f32 %v4685_v52, %v2970_v45  ;;  %v2981_v1 = vadd.f32 %v2977_v6, %v2945_v12 }
0x1005   : > { %v4689_v19 = vpop.eup %4688  ;;  %v2996_v3 = vadd.f32 %v4687_v7, %v2960_v30  ;;  %v2998_v46 = vadd.f32 %v4673_v8, %v2962_v35  ;;  %v3012_v29 = vmul.f32 %v4687_v7, %v3002_v63  ;;  %v3015_v27 = vmul.f32 %v4675_v24, %v3006_v42  ;;  %v3186_v58 = vpop.permute.xlu1 %3185 }
0x1006   : > { %v2999_v5 = vadd.f32 %v4675_v24, %v2963_v40  ;;  %v2997_v55 = vadd.f32 %v4689_v19, %v2961_v43  ;;  %v3013_v10 = vmul.f32 %v4689_v19, %v3002_v63  ;;  %v2983_v48 = vadd.f32 %v2979_v60, %v2947_v0 }
0x1007   : > { %4690 = vrcp.f32 %v2996_v3  ;;  %v3016_v22 = vadd.f32 %v3012_v29, %v2980_v37  ;;  %v2982_v47 = vadd.f32 %v2978_v53, %v2946_v39  ;;  %v3014_v33 = vmul.f32 %v4673_v8, %v3006_v42  ;;  %v4588_v8 = vld [vmem:[%s6317_s13] sm:$0xff]  }
0x1008   : > { %4692 = vrcp.f32 %v2999_v5  ;;  %v3017_v30 = vadd.f32 %v3013_v10, %v2981_v1  ;;  %v3019_v43 = vadd.f32 %v3015_v27, %v2983_v48 }
0x1009   : > { %4694 = vrcp.f32 %v2997_v55  ;;  %v3018_v51 = vadd.f32 %v3014_v33, %v2982_v47  ;;  %v3191_v0 = vpop.permute.xlu1 %3190 }
0x100a   : > { %4696 = vrcp.f32 %v2998_v46 }
0x1011   : > { %v4691_v31 = vpop.eup %4690 }
0x1012   : > { %v4693_v9 = vpop.eup %4692  ;;  %v3024_v35 = vmul.f32 %v4691_v31, %v3016_v22 }
0x1013   : > { %v4695_v7 = vpop.eup %4694  ;;  %v3027_v38 = vmul.f32 %v4693_v9, %v3019_v43 }
0x1014   : > { %v4697_v52 = vpop.eup %4696  ;;  %v3025_v20 = vmul.f32 %v4695_v7, %v3017_v30  ;;  %v3028_v25 = vpack.c.bf16 %v3024_v35, %v3024_v35 }
0x1015   : > { %v3031_v18 = vpack.c.bf16 %v3027_v38, %v3027_v38  ;;  %v3026_v45 = vmul.f32 %v4697_v52, %v3018_v51  ;;  %v3201_v38 = vpop.permute.xlu1 %3200 }
0x1016   : > { %v3029_v32 = vpack.c.bf16 %v3025_v20, %v3025_v20  ;;  %v3050_v40 = vsel %vm777_vm1, %v3028_v25, 0 }
0x1017   : > { %4287 = vmatprep.subr.msk.bf16.mxu1 %vm777_vm1, %v3031_v18  ;;  %v3030_v24 = vpack.c.bf16 %v3026_v45, %v3026_v45 }
0x1018   : > { %4284 = vmatprep.subr.msk.bf16.mxu0 %vm777_vm1, %v3029_v32 }
0x1019   : > { %3062 = vmatpush1.bf16.msra.mxu0 %v3050_v40  ;;  %v3056_v19 = vsel %vm777_vm1, %v3030_v24, 0 }
0x101a   : > { %3115 = vmatpush1.bf16.msra.mxu1 %v3056_v19 }
0x101c   : > { %4285 = vmatmul.mubr.msk.bf16.vlgmr.msra.gmra.mrb[64].mxu0 %vm3042_vm9, %v4588_v8 }
0x101d   : > { %3103 = vmatprep.mubr.bf16.mxu0 %v6347_v62  ;;  %4288 = vmatmul.mubr.msk.bf16.vlgmr.msra.gmra.mrb[56].mxu1 %vm3042_vm9, %v4588_v8 }
0x101e   : > { %3156 = vmatprep.mubr.bf16.mxu1 %v6347_v62 }
0x1024   : > { %4286 = vmatmul.mubr.msk.bf16.gmra.mrb[68].mxu0 %vm3042_vm9, %v4589_v14 }
0x1025   : > { %4289 = vmatmul.mubr.msk.bf16.gmra.mrb[60].mxu1 %vm3042_vm9, %v4589_v14  ;;  %3539 = vmatprep.mubr.bf16.mxu0 %v6347_v62 }
0x1026   : > { %3612 = vmatprep.mubr.bf16.mxu1 %v6347_v62 }
0x10ef   : > { %v3095_v56 = vpop.f32.mrb[64].mxu0 }
0x10f0   : > { %v3167_v3 = vadd.f32 %v3095_v56, %v5322_v11  ;;  %v3097_v61 = vpop.f32.mrb[65].mxu0  ;;  %v3148_v5 = vpop.f32.mrb[56].mxu1 }
0x10f1   : > { %v3168_v55 = vadd.f32 %v3097_v61, %v5328_v15  ;;  %v3099_v46 = vpop.f32.mrb[66].mxu0  ;;  %v3150_v4 = vpop.f32.mrb[57].mxu1  ;;  %v3169_v12 = vadd.f32 %v3148_v5, %v5337_v21 }
0x10f2   : > { %v3171_v50 = vadd.f32 %v3099_v46, %v5325_v13  ;;  %v3101_v63 = vpop.f32.mrb[67].mxu0  ;;  %v3152_v2 = vpop.f32.mrb[58].mxu1  ;;  %v5675_v60 = vadd.f32 %v3186_v58, %v3167_v3  ;;  %v3170_v15 = vadd.f32 %v3150_v4, %v5346_v26 }
0x10f3   : > { %v3172_v16 = vadd.f32 %v3101_v63, %v5331_v17  ;;  %v3173_v29 = vadd.f32 %v3152_v2, %v5340_v23  ;;  %v3154_v39 = vpop.f32.mrb[59].mxu1  ;;  %v5681_v37 = vadd.f32 %v3186_v58, %v3168_v55  ;;  %v3196_v21 = vpop.permute.xlu0 %3195  ;;  %v5689_v53 = vadd.f32 %v3186_v58, %v3169_v12 }
0x10f4   : > { %6348 = vst [vmem:[#allocation2_spill] sm:$0xff] %v5675_v60  ;;  %v5677_v11 = vadd.f32 %v3191_v0, %v3171_v50  ;;  %v3174_v6 = vadd.f32 %v3154_v39, %v5349_v28  ;;  %v5693_v42 = vadd.f32 %v3186_v58, %v3170_v15 }
0x10f5   : > { %6350 = vst [vmem:[#allocation4_spill] sm:$0xff] %v5681_v37  ;;  %v5683_v13 = vadd.f32 %v3191_v0, %v3172_v16  ;;  %v5685_v10 = vadd.f32 %v3191_v0, %v3173_v29  ;;  %6354 = vst [vmem:[#allocation8_spill] sm:$0xff] %v5689_v53 }
0x10f6   : > { %6349 = vst [vmem:[#allocation3_spill] sm:$0xff] %v5677_v11  ;;  %v5687_v17 = vadd.f32 %v3191_v0, %v3174_v6  ;;  %v3219_v48 = vadd.f32 %v5677_v11, %v5675_v60  ;;  %6355 = vst [vmem:[#allocation9_spill] sm:$0xff] %v5693_v42 }
0x10f7   : > { %6351 = vst [vmem:[#allocation5_spill] sm:$0xff] %v5683_v13  ;;  %6352 = vst [vmem:[#allocation6_spill] sm:$0xff] %v5685_v10  ;;  %v3105_v23 = vpop.f32.mrb[68].mxu0  ;;  %v3228_v22 = vadd.f32 %v5683_v13, %v5681_v37  ;;  %v3237_v47 = vadd.f32 %v5685_v10, %v5689_v53 }
0x10f8   : > { %6353 = vst [vmem:[#allocation7_spill] sm:$0xff] %v5687_v17  ;;  %v3175_v26 = vadd.f32 %v3105_v23, %v5360_v34  ;;  %v3107_v28 = vpop.f32.mrb[69].mxu0  ;;  %v3158_v1 = vpop.f32.mrb[60].mxu1  ;;  %v3246_v34 = vadd.f32 %v5687_v17, %v5693_v42 }
0x10f9   : > { %v3176_v27 = vadd.f32 %v3107_v28, %v5365_v36  ;;  %v3109_v30 = vpop.f32.mrb[70].mxu0  ;;  %v3177_v31 = vadd.f32 %v3158_v1, %v5376_v41  ;;  %v3160_v33 = vpop.f32.mrb[61].mxu1 }
0x10fa   : > { %v5702_v43 = vadd.f32 %v3196_v21, %v3175_v26  ;;  %v3179_v9 = vadd.f32 %v3109_v30, %v5390_v49  ;;  %v3111_v35 = vpop.f32.mrb[71].mxu0  ;;  %v3178_v7 = vadd.f32 %v3160_v33, %v5381_v44  ;;  %v3162_v51 = vpop.f32.mrb[62].mxu1 }
0x10fb   : > { %v5708_v36 = vadd.f32 %v3196_v21, %v3176_v27  ;;  %v3180_v52 = vadd.f32 %v3111_v35, %v5394_v54  ;;  %v5711_v20 = vadd.f32 %v3196_v21, %v3177_v31  ;;  %v3181_v41 = vadd.f32 %v3162_v51, %v5398_v57  ;;  %v3164_v25 = vpop.f32.mrb[63].mxu1 }
0x10fc   : > { %6356 = vst [vmem:[#allocation10_spill] sm:$0xff] %v5702_v43  ;;  %v3220_v18 = vadd.f32 %v3219_v48, %v5702_v43  ;;  %v5715_v49 = vadd.f32 %v3201_v38, %v3179_v9  ;;  %v5717_v45 = vadd.f32 %v3196_v21, %v3178_v7  ;;  %v3182_v32 = vadd.f32 %v3164_v25, %v5402_v59 }
0x10fd   : > { %6357 = vst [vmem:[#allocation11_spill] sm:$0xff] %v5708_v36  ;;  %6358 = vst [vmem:[#allocation12_spill] sm:$0xff] %v5711_v20  ;;  %v3229_v44 = vadd.f32 %v3228_v22, %v5708_v36  ;;  %v5721_v40 = vadd.f32 %v3201_v38, %v3180_v52  ;;  %v3238_v24 = vadd.f32 %v3237_v47, %v5711_v20 }
0x10fe   : > { %6359 = vst [vmem:[#allocation13_spill] sm:$0xff] %v5715_v49  ;;  %6360 = vst [vmem:[#allocation14_spill] sm:$0xff] %v5717_v45  ;;  %v5724_v54 = vadd.f32 %v3201_v38, %v3181_v41  ;;  %v3221_v8 = vadd.f32 %v3220_v18, %v5715_v49  ;;  %v3247_v57 = vadd.f32 %v3246_v34, %v5717_v45 }
0x10ff   : > { %6361 = vst [vmem:[#allocation15_spill] sm:$0xff] %v5721_v40  ;;  %v5728_v19 = vadd.f32 %v3201_v38, %v3182_v32  ;;  %v3230_v14 = vadd.f32 %v3229_v44, %v5721_v40 }
0x1100   : > { %6362 = vst [vmem:[#allocation16_spill] sm:$0xff] %v5724_v54  ;;  %v3239_v58 = vadd.f32 %v3238_v24, %v5724_v54  ;;  %v3222_v56 = vrot.slane %v3221_v8, 4 }
0x1101   : > { %6363 = vst [vmem:[#allocation17_spill] sm:$0xff] %v5728_v19  ;;  %v3248_v59 = vadd.f32 %v3247_v57, %v5728_v19  ;;  %v3231_v3 = vrot.slane %v3230_v14, 4 }
0x1102   : > { %v3240_v61 = vrot.slane %v3239_v58, 4  ;;  %v3223_v5 = vadd.f32 %v3222_v56, %v3221_v8 }
0x1103   : > { %v3249_v55 = vrot.slane %v3248_v59, 4  ;;  %v3232_v46 = vadd.f32 %v3231_v3, %v3230_v14 }
0x1104   : > { %v3241_v4 = vadd.f32 %v3240_v61, %v3239_v58  ;;  %v3224_v50 = vrot.slane %v3223_v5, 2 }
0x1105   : > { %v3250_v63 = vadd.f32 %v3249_v55, %v3248_v59  ;;  %v3233_v2 = vrot.slane %v3232_v46, 2 }
0x1106   : > { %v3242_v0 = vrot.slane %v3241_v4, 2  ;;  %v3225_v16 = vadd.f32 %v3224_v50, %v3223_v5 }
0x1107   : > { %v3251_v12 = vrot.slane %v3250_v63, 2  ;;  %v3234_v29 = vadd.f32 %v3233_v2, %v3232_v46 }
0x1108   : > { %v3243_v39 = vadd.f32 %v3242_v0, %v3241_v4  ;;  %v3226_v15 = vrot.slane %v3225_v16, 1 }
0x1109   : > { %v3252_v6 = vadd.f32 %v3251_v12, %v3250_v63  ;;  %v3235_v21 = vrot.slane %v3234_v29, 1 }
0x110a   : > { %v3244_v23 = vrot.slane %v3243_v39, 1  ;;  %v3227_v48 = vadd.f32 %v3226_v15, %v3225_v16 }
0x110b   : > { %v3253_v26 = vrot.slane %v3252_v6, 1  ;;  %v3236_v28 = vadd.f32 %v3235_v21, %v3234_v29 }
0x110c   : > { %v3245_v1 = vadd.f32 %v3244_v23, %v3243_v39  ;;  %v3255_v22 = vmul.f32 0.03125, %v3227_v48 }
0x110d   : > { %v3256_v27 = vmul.f32 0.03125, %v3236_v28  ;;  %v3254_v47 = vadd.f32 %v3253_v26, %v3252_v6 }
0x110e   : > { %v5734_v30 = vsub.f32 %v5675_v60, %v3255_v22  ;;  %v5737_v31 = vsub.f32 %v5677_v11, %v3255_v22  ;;  %v5740_v33 = vsub.f32 %v5702_v43, %v3255_v22  ;;  %v3257_v9 = vmul.f32 0.03125, %v3245_v1 }
0x110f   : > { %v5743_v34 = vsub.f32 %v5715_v49, %v3255_v22  ;;  %v5746_v35 = vsub.f32 %v5681_v37, %v3256_v27  ;;  %v5749_v7 = vsub.f32 %v5683_v13, %v3256_v27  ;;  %v5752_v51 = vsub.f32 %v5708_v36, %v3256_v27 }
0x1110   : > { %v3275_v38 = vmul.f32 %v5734_v30, %v5734_v30  ;;  %v3279_v52 = vmul.f32 %v5737_v31, %v5737_v31  ;;  %v3283_v41 = vmul.f32 %v5740_v33, %v5740_v33  ;;  %v5761_v25 = vsub.f32 %v5721_v40, %v3256_v27 }
0x1111   : > { %v3276_v18 = vmul.f32 %v5746_v35, %v5746_v35  ;;  %v3280_v32 = vmul.f32 %v5749_v7, %v5749_v7  ;;  %v5768_v24 = vsub.f32 %v5689_v53, %v3257_v9  ;;  %v5771_v8 = vsub.f32 %v5685_v10, %v3257_v9 }
0x1112   : > { %v3291_v44 = vadd.f32 %v3279_v52, %v3275_v38  ;;  %v5774_v57 = vsub.f32 %v5711_v20, %v3257_v9  ;;  %v3287_v14 = vmul.f32 %v5743_v34, %v5743_v34  ;;  %v3284_v58 = vmul.f32 %v5752_v51, %v5752_v51 }
0x1113   : > { %v3300_v56 = vadd.f32 %v3280_v32, %v3276_v18  ;;  %v3258_v59 = vmul.f32 0.03125, %v3254_v47  ;;  %v5781_v61 = vsub.f32 %v5724_v54, %v3257_v9  ;;  %v3277_v5 = vmul.f32 %v5768_v24, %v5768_v24 }
0x1114   : > { %v3292_v3 = vadd.f32 %v3291_v44, %v3283_v41  ;;  %v3281_v55 = vmul.f32 %v5771_v8, %v5771_v8  ;;  %v3288_v46 = vmul.f32 %v5761_v25, %v5761_v25  ;;  %v3285_v0 = vmul.f32 %v5774_v57, %v5774_v57 }
0x1115   : > { %v3301_v4 = vadd.f32 %v3300_v56, %v3284_v58  ;;  %v5790_v50 = vsub.f32 %v5693_v42, %v3258_v59  ;;  %v5793_v63 = vsub.f32 %v5687_v17, %v3258_v59  ;;  %v5798_v12 = vsub.f32 %v5717_v45, %v3258_v59 }
0x1116   : > { %v3293_v2 = vadd.f32 %v3292_v3, %v3287_v14  ;;  %v3309_v16 = vadd.f32 %v3281_v55, %v3277_v5  ;;  %v5801_v39 = vsub.f32 %v5728_v19, %v3258_v59  ;;  %v3289_v23 = vmul.f32 %v5781_v61, %v5781_v61 }
0x1117   : > { %v3302_v29 = vadd.f32 %v3301_v4, %v3288_v46  ;;  %v3278_v15 = vmul.f32 %v5790_v50, %v5790_v50  ;;  %v3282_v6 = vmul.f32 %v5793_v63, %v5793_v63  ;;  %v3286_v28 = vmul.f32 %v5798_v12, %v5798_v12 }
0x1118   : > { %v3294_v21 = vrot.slane %v3293_v2, 4  ;;  %v3310_v48 = vadd.f32 %v3309_v16, %v3285_v0  ;;  %v3290_v9 = vmul.f32 %v5801_v39, %v5801_v39 }
0x1119   : > { %v3303_v26 = vrot.slane %v3302_v29, 4  ;;  %v3318_v1 = vadd.f32 %v3282_v6, %v3278_v15  ;;  %v3358_v15 = vpop.permute.xlu1 %3357  ;;  %v5813_v6 = vpop.permute.xlu0 %3362 }
0x111a   : > { %v3295_v22 = vadd.f32 %v3294_v21, %v3293_v2  ;;  %v3311_v27 = vadd.f32 %v3310_v48, %v3289_v23 }
0x111b   : > { %v3304_v47 = vadd.f32 %v3303_v26, %v3302_v29  ;;  %v3319_v38 = vadd.f32 %v3318_v1, %v3286_v28 }
0x111c   : > { %v3296_v52 = vrot.slane %v3295_v22, 2  ;;  %v3312_v41 = vrot.slane %v3311_v27, 4 }
0x111d   : > { %v3305_v18 = vrot.slane %v3304_v47, 2  ;;  %v3320_v32 = vadd.f32 %v3319_v38, %v3290_v9  ;;  %v3394_v9 = vpop.permute.xlu1 %3393  ;;  %v5815_v38 = vpop.permute.xlu0 %3398 }
0x111e   : > { %v3297_v44 = vadd.f32 %v3296_v52, %v3295_v22  ;;  %v3313_v14 = vadd.f32 %v3312_v41, %v3311_v27 }
0x111f   : > { %v3306_v58 = vadd.f32 %v3305_v18, %v3304_v47  ;;  %v3321_v56 = vrot.slane %v3320_v32, 4 }
0x1120   : > { %v3298_v59 = vrot.slane %v3297_v44, 1  ;;  %v3314_v3 = vrot.slane %v3313_v14, 2 }
0x1121   : > { %v3307_v5 = vrot.slane %v3306_v58, 1  ;;  %v3322_v55 = vadd.f32 %v3321_v56, %v3320_v32  ;;  %v3368_v18 = vpop.permute.xlu1 %3367  ;;  %v3373_v32 = vpop.permute.xlu0 %3372 }
0x1122   : > { %v3299_v46 = vadd.f32 %v3298_v59, %v3297_v44  ;;  %v3315_v4 = vadd.f32 %v3314_v3, %v3313_v14 }
0x1123   : > { %v3308_v2 = vadd.f32 %v3307_v5, %v3306_v58  ;;  %v3323_v0 = vrot.slane %v3322_v55, 2 }
0x1124   : > { %v3327_v16 = vmul.f32 0.03125, %v3299_v46  ;;  %v3316_v29 = vrot.slane %v3315_v4, 1 }
0x1125   : > { %v3328_v21 = vmul.f32 0.03125, %v3308_v2  ;;  %v3324_v23 = vadd.f32 %v3323_v0, %v3322_v55 }
0x1126   : > { %v3331_v48 = vadd.f32 1e-05, %v3327_v16  ;;  %v3317_v26 = vadd.f32 %v3316_v29, %v3315_v4 }
0x1127   : > { %v3332_v28 = vadd.f32 1e-05, %v3328_v21  ;;  %v3325_v1 = vrot.slane %v3324_v23, 1 }
0x1128   : > { %4698 = vrsqrt.f32 %v3331_v48  ;;  %v3329_v22 = vmul.f32 0.03125, %v3317_v26  ;;  %v3409_v48 = vpop.permute.xlu0 %3408 }
0x1129   : > { %4700 = vrsqrt.f32 %v3332_v28  ;;  %v3326_v27 = vadd.f32 %v3325_v1, %v3324_v23 }
0x112a   : > { %v3333_v47 = vadd.f32 1e-05, %v3329_v22 }
0x112b   : > { %v3330_v52 = vmul.f32 0.03125, %v3326_v27 }
0x112c   : > { %4702 = vrsqrt.f32 %v3333_v47 }
0x112d   : > { %v3334_v41 = vadd.f32 1e-05, %v3330_v52 }
0x112f   : > { %4704 = vrsqrt.f32 %v3334_v41 }
0x1132   : > { %v4699_v44 = vpop.eup %4698 }
0x1133   : > { %v4701_v14 = vpop.eup %4700  ;;  %v3351_v58 = vmul.f32 %v4699_v44, %v5743_v34  ;;  %v3339_v56 = vmul.f32 %v4699_v44, %v5734_v30  ;;  %v3343_v59 = vmul.f32 %v4699_v44, %v5737_v31  ;;  %v3347_v3 = vmul.f32 %v4699_v44, %v5740_v33  ;;  %v3404_v33 = vpop.permute.xlu1 %3403 }
0x1134   : > { %v3352_v5 = vmul.f32 %v4701_v14, %v5761_v25  ;;  %v3340_v55 = vmul.f32 %v4701_v14, %v5746_v35  ;;  %v3344_v46 = vmul.f32 %v4701_v14, %v5749_v7  ;;  %v3348_v4 = vmul.f32 %v4701_v14, %v5752_v51 }
0x1135   : > { %v3387_v2 = vmul.f32 %v3373_v32, %v3351_v58  ;;  %v3375_v0 = vmul.f32 %v3358_v15, %v3339_v56  ;;  %v3379_v16 = vmul.f32 %v5813_v6, %v3343_v59  ;;  %v3383_v29 = vmul.f32 %v3368_v18, %v3347_v3 }
0x1136   : > { %v4703_v34 = vpop.eup %4702  ;;  %v3376_v21 = vmul.f32 %v3358_v15, %v3340_v55  ;;  %v3380_v30 = vmul.f32 %v5813_v6, %v3344_v46  ;;  %v3384_v31 = vmul.f32 %v3368_v18, %v3348_v4  ;;  %v3388_v23 = vmul.f32 %v3373_v32, %v3352_v5 }
0x1137   : > { %v3411_v25 = vadd.f32 %v3394_v9, %v3375_v0  ;;  %v3415_v35 = vadd.f32 %v5815_v38, %v3379_v16  ;;  %v3353_v22 = vmul.f32 %v4703_v34, %v5781_v61  ;;  %v3419_v47 = vadd.f32 %v3404_v33, %v3383_v29 }
0x1138   : > { %v3412_v26 = vadd.f32 %v3394_v9, %v3376_v21  ;;  %v3416_v7 = vadd.f32 %v5815_v38, %v3380_v30  ;;  %v3420_v51 = vadd.f32 %v3404_v33, %v3384_v31  ;;  %v3424_v28 = vadd.f32 %v3409_v48, %v3388_v23  ;;  %v4592_v31 = vld [vmem:[%s6318_s14 + $0x10] sm:$0xff]   ;;  %v4593_v23 = vld [vmem:[%s6318_s14 + $0x18] sm:$0xff]  }
0x1139   : > { %v4705_v1 = vpop.eup %4704  ;;  %v3427_v27 = vpack.c.bf16 %v3415_v35, %v3411_v25  ;;  %v3341_v52 = vmul.f32 %v4703_v34, %v5768_v24  ;;  %v3423_v14 = vadd.f32 %v3409_v48, %v3387_v2  ;;  %v3345_v3 = vmul.f32 %v4703_v34, %v5771_v8 }
0x113a   : > { %v3354_v41 = vmul.f32 %v4705_v1, %v5801_v39  ;;  %v3428_v44 = vpack.c.bf16 %v3416_v7, %v3412_v26  ;;  %v3342_v58 = vmul.f32 %v4705_v1, %v5790_v50  ;;  %v3432_v56 = vpack.c.bf16 %v3424_v28, %v3420_v51  ;;  %v3443_v26 = vpop.permute.xlu0 %3442 }
0x113b   : > { %v3346_v59 = vmul.f32 %v4705_v1, %v5793_v63  ;;  %v3377_v5 = vmul.f32 %v3358_v15, %v3341_v52  ;;  %v3350_v61 = vmul.f32 %v4705_v1, %v5798_v12  ;;  %v3349_v4 = vmul.f32 %v4703_v34, %v5774_v57  ;;  %v4590_v57 = vld [vmem:[%s6318_s14] sm:$0xff]  }
0x113c   : > { %3507 = vmatprep.subr.bf16.mxu0 %v3428_v44  ;;  %v3378_v55 = vmul.f32 %v3358_v15, %v3342_v58  ;;  %v3390_v46 = vmul.f32 %v3373_v32, %v3354_v41  ;;  %v3389_v24 = vmul.f32 %v3373_v32, %v3353_v22  ;;  %v3381_v2 = vmul.f32 %v5813_v6, %v3345_v3 }
0x113d   : > { %3508 = vmatpush1.bf16.msra.mxu0 %v3427_v27  ;;  %v3382_v39 = vmul.f32 %v5813_v6, %v3346_v59  ;;  %v3413_v0 = vadd.f32 %v3394_v9, %v3377_v5  ;;  %v3386_v63 = vmul.f32 %v3368_v18, %v3350_v61  ;;  %v3385_v16 = vmul.f32 %v3368_v18, %v3349_v4  ;;  %v4591_v18 = vld [vmem:[%s6318_s14 + $0x8] sm:$0xff]  }
0x113e   : > { %3509 = vmatprep.subr.bf16.mxu0 %v3432_v56  ;;  %v3414_v50 = vadd.f32 %v3394_v9, %v3378_v55  ;;  %v3431_v8 = vpack.c.bf16 %v3423_v14, %v3419_v47  ;;  %v3417_v15 = vadd.f32 %v5815_v38, %v3381_v2  ;;  %v3426_v12 = vadd.f32 %v3409_v48, %v3390_v46 }
0x113f   : > { %v3418_v29 = vadd.f32 %v5815_v38, %v3382_v39  ;;  %v3422_v32 = vadd.f32 %v3404_v33, %v3386_v63  ;;  %v3421_v6 = vadd.f32 %v3404_v33, %v3385_v16  ;;  %v3425_v30 = vadd.f32 %v3409_v48, %v3389_v24  ;;  %v3438_v33 = vpop.permute.xlu1 %3437 }
0x1140   : > { %v3429_v21 = vpack.c.bf16 %v3417_v15, %v3413_v0 }
0x1141   : > { %3510 = vmatpush1.bf16.msra.mxu0 %v3431_v8  ;;  %v3430_v34 = vpack.c.bf16 %v3418_v29, %v3414_v50  ;;  %v3434_v9 = vpack.c.bf16 %v3426_v12, %v3422_v32  ;;  %v3433_v38 = vpack.c.bf16 %v3425_v30, %v3421_v6 }
0x1143   : > { %3580 = vmatprep.subr.bf16.mxu1 %v3430_v34  ;;  %v5874_v44 = vpop.permute.xlu1 %3447 }
0x1144   : > { %4294 = vmatmul.mubr.msk.bf16.vlgmr.msra.gmra.mrb[72].mxu0 %vm691_vm0, %v4590_v57  ;;  %3581 = vmatpush1.bf16.msra.mxu1 %v3429_v21 }
0x1145   : > { %3582 = vmatprep.subr.bf16.mxu1 %v3434_v9  ;;  %3549 = vmatprep.mubr.bf16.mxu0 %v6347_v62 }
0x1148   : > { %3583 = vmatpush1.bf16.msra.mxu1 %v3433_v38 }
0x114b   : > { %4298 = vmatmul.mubr.msk.bf16.vlgmr.msra.gmra.mrb[64].mxu1 %vm691_vm0, %v4590_v57  ;;  %v5896_v57 = vpop.permute.xlu0 %3452 }
0x114c   : > { %4295 = vmatmul.mubr.msk.bf16.gmra.mrb[76].mxu0 %vm691_vm0, %v4591_v18  ;;  %3622 = vmatprep.mubr.bf16.mxu1 %v6347_v62 }
0x114d   : > { %3559 = vmatprep.mubr.bf16.mxu0 %v6347_v62 }
0x1153   : > { %4299 = vmatmul.mubr.msk.bf16.gmra.mrb[68].mxu1 %vm691_vm0, %v4591_v18 }
0x1154   : > { %4296 = vmatmul.mubr.msk.bf16.gmra.mrb[80].mxu0 %vm691_vm0, %v4592_v31  ;;  %3632 = vmatprep.mubr.bf16.mxu1 %v6347_v62 }
0x1155   : > { %3569 = vmatprep.mubr.bf16.mxu0 %v6347_v62 }
0x115b   : > { %4300 = vmatmul.mubr.msk.bf16.gmra.mrb[72].mxu1 %vm691_vm0, %v4592_v31 }
0x115c   : > { %4297 = vmatmul.mubr.msk.bf16.gmra.mrb[84].mxu0 %vm691_vm0, %v4593_v23  ;;  %3642 = vmatprep.mubr.bf16.mxu1 %v6347_v62 }
0x115d   : > { %4005 = vmatprep.mubr.bf16.mxu0 %v6347_v62 }
0x1163   : > { %4301 = vmatmul.mubr.msk.bf16.gmra.mrb[76].mxu1 %vm691_vm0, %v4593_v23 }
0x1164   : > { %4058 = vmatprep.mubr.bf16.mxu1 %v6347_v62 }
0x1217   : > { %v3541_v48 = vpop.f32.mrb[72].mxu0 }
0x1218   : > { %v3542_v25 = vadd.f32 %v3541_v48, %v3438_v33  ;;  %v3543_v35 = vpop.f32.mrb[73].mxu0 }
0x1219   : > { %v5869_v7 = vadd.f32 %v3543_v35, %v3438_v33  ;;  %v3545_v51 = vpop.f32.mrb[74].mxu0 }
0x121a   : > { %v3685_v28 = vmul.f32 0.044715, %v3542_v25  ;;  %v3546_v1 = vadd.f32 %v3545_v51, %v3443_v26  ;;  %v3547_v22 = vpop.f32.mrb[75].mxu0  ;;  %v5882_v46 = vmul.f32 0.5, %v3542_v25 }
0x121b   : > { %v3686_v27 = vmul.f32 0.044715, %v5869_v7  ;;  %v5872_v41 = vadd.f32 %v3547_v22, %v3443_v26  ;;  %v5880_v61 = vmul.f32 0.5, %v5869_v7  ;;  %v5919_v22 = vpop.permute.xlu1 %3457 }
0x121c   : > { %v3717_v47 = vmul.f32 %v3685_v28, %v3542_v25  ;;  %v3689_v52 = vmul.f32 0.044715, %v3546_v1  ;;  %v5900_v6 = vmul.f32 0.5, %v3546_v1 }
0x121d   : > { %v3718_v59 = vmul.f32 %v3686_v27, %v5869_v7  ;;  %6364 = vst [vmem:[#allocation18_spill] sm:$0xff] %v5880_v61  ;;  %v3690_v24 = vmul.f32 0.044715, %v5872_v41 }
0x121e   : > { %v3749_v14 = vmul.f32 %v3717_v47, %v3542_v25  ;;  %v3721_v58 = vmul.f32 %v3689_v52, %v3546_v1  ;;  %v3614_v56 = vpop.f32.mrb[64].mxu1 }
0x121f   : > { %v5877_v3 = vadd.f32 %v3614_v56, %v3438_v33  ;;  %v3551_v5 = vpop.f32.mrb[76].mxu0  ;;  %v3616_v55 = vpop.f32.mrb[65].mxu1  ;;  %v5909_v23 = vmul.f32 %v3718_v59, %v5869_v7 }
0x1220   : > { %v3753_v4 = vmul.f32 %v3721_v58, %v3546_v1  ;;  %v5886_v39 = vadd.f32 %v3551_v5, %v5874_v44  ;;  %v5888_v2 = vadd.f32 %v3616_v55, %v3438_v33  ;;  %v3553_v50 = vpop.f32.mrb[77].mxu0  ;;  %v3618_v0 = vpop.f32.mrb[66].mxu1  ;;  %v3781_v63 = vadd.f32 %v3749_v14, %v3542_v25 }
0x1221   : > { %v3687_v16 = vmul.f32 0.044715, %v5877_v3  ;;  %v5892_v8 = vadd.f32 %v3553_v50, %v5874_v44  ;;  %v5894_v29 = vadd.f32 %v3618_v0, %v3443_v26  ;;  %v3555_v15 = vpop.f32.mrb[78].mxu0  ;;  %v3620_v12 = vpop.f32.mrb[67].mxu1  ;;  %v3722_v33 = vmul.f32 %v3690_v24, %v5872_v41 }
0x1222   : > { %v3785_v32 = vadd.f32 %v3753_v4, %v3546_v1  ;;  %v3693_v34 = vmul.f32 0.044715, %v5886_v39  ;;  %v3688_v21 = vmul.f32 0.044715, %v5888_v2  ;;  %v5906_v18 = vadd.f32 %v3555_v15, %v5896_v57  ;;  %v3557_v31 = vpop.f32.mrb[79].mxu0  ;;  %v3468_v17 = vpop.permute.xlu1 %3467 }
0x1223   : > { %v3719_v30 = vmul.f32 %v3687_v16, %v5877_v3  ;;  %v3694_v9 = vmul.f32 0.044715, %v5892_v8  ;;  %v3691_v38 = vmul.f32 0.044715, %v5894_v29  ;;  %v5914_v25 = vmul.f32 0.5, %v5872_v41 }
0x1224   : > { %v3725_v48 = vmul.f32 %v3693_v34, %v5886_v39  ;;  %v3813_v35 = vmul.f32 0.7978846, %v3781_v63  ;;  %v3697_v1 = vmul.f32 0.044715, %v5906_v18  ;;  %v3817_v27 = vmul.f32 0.7978846, %v3785_v32 }
0x1225   : > { %6365 = vst [vmem:[#allocation19_spill] sm:$0xff] %v5914_v25  ;;  %v3751_v51 = vmul.f32 %v3719_v30, %v5877_v3  ;;  %v3723_v28 = vmul.f32 %v3691_v38, %v5894_v29  ;;  %v3720_v52 = vmul.f32 %v3688_v21, %v5888_v2  ;;  %v5923_v14 = vadd.f32 %v3620_v12, %v3443_v26 }
0x1226   : > { %v3757_v47 = vmul.f32 %v3725_v48, %v5886_v39  ;;  %v3624_v58 = vpop.f32.mrb[68].mxu1  ;;  %v3726_v59 = vmul.f32 %v3694_v9, %v5892_v8  ;;  %v3729_v55 = vmul.f32 %v3697_v1, %v5906_v18  ;;  %v5932_v63 = vadd.f32 %v3557_v31, %v5896_v57 }
0x1227   : > { %v3783_v56 = vadd.f32 %v3751_v51, %v5877_v3  ;;  %v3755_v5 = vmul.f32 %v3723_v28, %v5894_v29  ;;  %v3561_v4 = vpop.f32.mrb[80].mxu0  ;;  %v3626_v24 = vpop.f32.mrb[69].mxu1  ;;  %v3692_v0 = vmul.f32 0.044715, %v5923_v14  ;;  %v5935_v26 = vadd.f32 %v3624_v58, %v5874_v44 }
0x1228   : > { %v3789_v50 = vadd.f32 %v3757_v47, %v5886_v39  ;;  %v3563_v16 = vpop.f32.mrb[81].mxu0  ;;  %v3628_v15 = vpop.f32.mrb[70].mxu1  ;;  %v3761_v34 = vmul.f32 %v3729_v55, %v5906_v18  ;;  %v5940_v21 = vadd.f32 %v3561_v4, %v5919_v22  ;;  %4706 = vtanh.f32 %v3813_v35 }
0x1229   : > { %6366 = vst [vmem:[#allocation20_spill] sm:$0xff] %v5935_v26  ;;  %v3815_v12 = vmul.f32 0.7978846, %v3783_v56  ;;  %v3787_v32 = vadd.f32 %v3755_v5, %v5894_v29  ;;  %v3565_v30 = vpop.f32.mrb[82].mxu0  ;;  %v3630_v9 = vpop.f32.mrb[71].mxu1  ;;  %v5943_v38 = vmul.f32 %v3722_v33, %v5872_v41  ;;  %4708 = vtanh.f32 %v3817_v27 }
0x122a   : > { %6367 = vst [vmem:[#allocation21_spill] sm:$0xff] %v5940_v21  ;;  %v3698_v31 = vmul.f32 0.044715, %v5932_v63  ;;  %v3695_v48 = vmul.f32 0.044715, %v5935_v26  ;;  %v5948_v51 = vmul.f32 %v3720_v52, %v5888_v2  ;;  %v3793_v28 = vadd.f32 %v3761_v34, %v5906_v18  ;;  %v3567_v47 = vpop.f32.mrb[83].mxu0  ;;  %v5961_v55 = vpop.permute.xlu0 %3462 }
0x122b   : > { %v3701_v1 = vmul.f32 0.044715, %v5940_v21  ;;  %v3821_v58 = vmul.f32 0.7978846, %v3789_v50  ;;  %v5953_v56 = vmul.f32 %v3726_v59, %v5892_v8  ;;  %v3724_v33 = vmul.f32 %v3692_v0, %v5923_v14 }
0x122c   : > { %v3727_v35 = vmul.f32 %v3695_v48, %v5935_v26  ;;  %4710 = vtanh.f32 %v3815_v12  ;;  %v3819_v5 = vmul.f32 0.7978846, %v3787_v32  ;;  %v5959_v52 = vadd.f32 %v3626_v24, %v5874_v44 }
0x122d   : > { %v3733_v27 = vmul.f32 %v3701_v1, %v5940_v21  ;;  %v3730_v4 = vmul.f32 %v3698_v31, %v5932_v63  ;;  %v5966_v59 = vadd.f32 %v3563_v16, %v5919_v22  ;;  %v5969_v0 = vadd.f32 %v3628_v15, %v5896_v57 }
0x122e   : > { %v3759_v50 = vmul.f32 %v3727_v35, %v5935_v26  ;;  %v3634_v34 = vpop.f32.mrb[72].mxu1  ;;  %v3825_v12 = vmul.f32 0.7978846, %v3793_v28  ;;  %v3696_v48 = vmul.f32 0.044715, %v5959_v52  ;;  %v5974_v44 = vadd.f32 %v3565_v30, %v5961_v55 }
0x122f   : > { %6368 = vst [vmem:[#allocation22_spill] sm:$0xff] %v5969_v0  ;;  %v3765_v32 = vmul.f32 %v3733_v27, %v5940_v21  ;;  %v3571_v24 = vpop.f32.mrb[84].mxu0  ;;  %v3636_v1 = vpop.f32.mrb[73].mxu1  ;;  %v3702_v35 = vmul.f32 0.044715, %v5966_v59  ;;  %v5980_v15 = vadd.f32 %v3630_v9, %v5896_v57  ;;  %v5986_v45 = vadd.f32 %v3567_v47, %v5961_v55 }
0x1230   : > { %6369 = vst [vmem:[#allocation23_spill] sm:$0xff] %v5974_v44  ;;  %v3791_v31 = vadd.f32 %v3759_v50, %v5935_v26  ;;  %v3699_v16 = vmul.f32 0.044715, %v5969_v0  ;;  %v3573_v19 = vpop.f32.mrb[85].mxu0  ;;  %v3638_v28 = vpop.f32.mrb[74].mxu1  ;;  %v3728_v54 = vmul.f32 %v3696_v48, %v5959_v52  ;;  %4712 = vtanh.f32 %v3821_v58 }
0x1231   : > { %v3797_v27 = vadd.f32 %v3765_v32, %v5940_v21  ;;  %v3705_v30 = vmul.f32 0.044715, %v5974_v44  ;;  %v3575_v40 = vpop.f32.mrb[86].mxu0  ;;  %v3640_v50 = vpop.f32.mrb[75].mxu1  ;;  %v3700_v57 = vmul.f32 0.044715, %v5980_v15  ;;  %4714 = vtanh.f32 %v3819_v5 }
0x1232   : > { %v3823_v20 = vmul.f32 0.7978846, %v3791_v31  ;;  %v3731_v49 = vmul.f32 %v3699_v16, %v5969_v0  ;;  %v3577_v9 = vpop.f32.mrb[87].mxu0  ;;  %v5991_v36 = vmul.f32 %v3724_v33, %v5923_v14  ;;  %v5994_v32 = vmul.f32 %v3730_v4, %v5932_v63  ;;  %v5997_v47 = vpop.eup %4706 }
0x1233   : > { %v3737_v48 = vmul.f32 %v3705_v30, %v5974_v44  ;;  %4716 = vtanh.f32 %v3825_v12  ;;  %v3829_v43 = vmul.f32 0.7978846, %v3797_v27  ;;  %v3734_v58 = vmul.f32 %v3702_v35, %v5966_v59  ;;  %v6001_v16 = vpop.eup %4708 }
0x1234   : > { %v3763_v31 = vmul.f32 %v3731_v49, %v5969_v0  ;;  %v6004_v5 = vmul.f32 %v3728_v54, %v5959_v52  ;;  %v3706_v4 = vmul.f32 0.044715, %v5986_v45  ;;  %v6009_v30 = vadd.f32 %v3634_v34, %v5919_v22 }
0x1235   : > { %v3769_v33 = vmul.f32 %v3737_v48, %v5974_v44  ;;  %4718 = vtanh.f32 %v3823_v20  ;;  %v3732_v12 = vmul.f32 %v3700_v57, %v5980_v15  ;;  %v6012_v27 = vadd.f32 %v3571_v24, %v3468_v17  ;;  %v6024_v20 = vpop.permute.xlu0 %3472 }
0x1236   : > { %6370 = vst [vmem:[#allocation24_spill] sm:$0xff] %v6009_v30  ;;  %v6015_v49 = vadd.f32 %v3636_v1, %v5919_v22  ;;  %v3644_v35 = vpop.f32.mrb[76].mxu1  ;;  %v6017_v10 = vpop.eup %4710  ;;  %v3795_v54 = vadd.f32 %v3763_v31, %v5969_v0  ;;  %v3703_v42 = vmul.f32 0.044715, %v6009_v30  ;;  %v6022_v13 = vadd.f32 %v3573_v19, %v3468_v17 }
0x1237   : > { %v3801_v48 = vadd.f32 %v3769_v33, %v5974_v44  ;;  %v3646_v34 = vpop.f32.mrb[77].mxu1  ;;  %v6027_v24 = vmul.f32 %v3734_v58, %v5966_v59  ;;  %v3709_v22 = vmul.f32 0.044715, %v6012_v27  ;;  %v6032_v57 = vadd.f32 %v3638_v28, %v5961_v55 }
0x1238   : > { %v3704_v1 = vmul.f32 0.044715, %v6015_v49  ;;  %4720 = vtanh.f32 %v3829_v43  ;;  %v3735_v31 = vmul.f32 %v3703_v42, %v6009_v30  ;;  %v3710_v33 = vmul.f32 0.044715, %v6022_v13  ;;  %v3648_v53 = vpop.f32.mrb[78].mxu1 }
0x1239   : > { %v6037_v19 = vadd.f32 %v3575_v40, %v6024_v20  ;;  %v6040_v11 = vmul.f32 %v3732_v12, %v5980_v15  ;;  %v3738_v58 = vmul.f32 %v3706_v4, %v5986_v45  ;;  %v3741_v37 = vmul.f32 %v3709_v22, %v6012_v27  ;;  %v3650_v28 = vpop.f32.mrb[79].mxu1 }
0x123a   : > { %v3707_v60 = vmul.f32 0.044715, %v6032_v57  ;;  %v3827_v62 = vmul.f32 0.7978846, %v3795_v54  ;;  %v3833_v43 = vmul.f32 0.7978846, %v3801_v48  ;;  %v3767_v42 = vmul.f32 %v3735_v31, %v6009_v30  ;;  %v6047_v21 = vpop.eup %4712 }
0x123b   : > { %v3713_v44 = vmul.f32 0.044715, %v6037_v19  ;;  %v3773_v40 = vmul.f32 %v3741_v37, %v6012_v27  ;;  %v3736_v12 = vmul.f32 %v3704_v1, %v6015_v49  ;;  %v6053_v4 = vadd.f32 %v3640_v50, %v5961_v55  ;;  %v6055_v22 = vpop.eup %4714 }
0x123c   : > { %v3739_v0 = vmul.f32 %v3707_v60, %v6032_v57  ;;  %v3799_v54 = vadd.f32 %v3767_v42, %v6009_v30  ;;  %v3742_v48 = vmul.f32 %v3710_v33, %v6022_v13  ;;  %v6061_v26 = vadd.f32 %v3577_v9, %v6024_v20 }
0x123d   : > { %v3745_v31 = vmul.f32 %v3713_v44, %v6037_v19  ;;  %v6063_v25 = vpop.eup %4716  ;;  %v3805_v37 = vadd.f32 %v3773_v40, %v6012_v27  ;;  %v3708_v55 = vmul.f32 0.044715, %v6053_v4  ;;  %v6068_v50 = vadd.f32 %v3644_v35, %v3468_v17 }
0x123e   : > { %v3771_v60 = vmul.f32 %v3739_v0, %v6032_v57  ;;  %v3831_v1 = vmul.f32 0.7978846, %v3799_v54  ;;  %v3714_v33 = vmul.f32 0.044715, %v6061_v26  ;;  %v6072_v30 = vadd.f32 %v3646_v34, %v3468_v17 }
0x123f   : > { %v3777_v42 = vmul.f32 %v3745_v31, %v6037_v19  ;;  %v6074_v44 = vpop.eup %4718  ;;  %4722 = vtanh.f32 %v3827_v62  ;;  %v3837_v9 = vmul.f32 0.7978846, %v3805_v37  ;;  %v3711_v40 = vmul.f32 0.044715, %v6068_v50 }
0x1240   : > { %v3803_v61 = vadd.f32 %v3771_v60, %v6032_v57  ;;  %4724 = vtanh.f32 %v3833_v43  ;;  %v6079_v0 = vmul.f32 %v3738_v58, %v5986_v45  ;;  %v3712_v54 = vmul.f32 0.044715, %v6072_v30 }
0x1241   : > { %v3809_v35 = vadd.f32 %v3777_v42, %v6037_v19  ;;  %v6084_v31 = vmul.f32 %v3736_v12, %v6015_v49  ;;  %v6087_v17 = vmul.f32 %v3742_v48, %v6022_v13  ;;  %v3740_v62 = vmul.f32 %v3708_v55, %v6053_v4 }
0x1242   : > { %v3743_v34 = vmul.f32 %v3711_v40, %v6068_v50  ;;  %v6091_v37 = vpop.eup %4720  ;;  %4726 = vtanh.f32 %v3831_v1  ;;  %v3835_v43 = vmul.f32 0.7978846, %v3803_v61  ;;  %v3746_v58 = vmul.f32 %v3714_v33, %v6061_v26 }
0x1243   : > { %v6095_v60 = vadd.f32 %v3648_v53, %v6024_v20  ;;  %4728 = vtanh.f32 %v3837_v9  ;;  %v3782_v48 = vadd.f32 %v5909_v23, %v5869_v7  ;;  %v3786_v55 = vadd.f32 %v5943_v38, %v5872_v41 }
0x1244   : > { %v3775_v12 = vmul.f32 %v3743_v34, %v6068_v50  ;;  %v3841_v42 = vmul.f32 0.7978846, %v3809_v35  ;;  %v3744_v40 = vmul.f32 %v3712_v54, %v6072_v30  ;;  %v6105_v61 = vadd.f32 %v3650_v28, %v6024_v20 }
0x1245   : > { %v3715_v1 = vmul.f32 0.044715, %v6095_v60  ;;  %v3814_v33 = vmul.f32 0.7978846, %v3782_v48  ;;  %v3818_v9 = vmul.f32 0.7978846, %v3786_v55  ;;  %4730 = vtanh.f32 %v3835_v43 }
0x1246   : > { %v3807_v53 = vadd.f32 %v3775_v12, %v6068_v50  ;;  %v3877_v34 = vadd.f32 1.0, %v5997_v47  ;;  %v3716_v23 = vmul.f32 0.044715, %v6105_v61  ;;  %v3881_v41 = vadd.f32 1.0, %v6001_v16 }
0x1247   : > { %v3747_v7 = vmul.f32 %v3715_v1, %v6095_v60  ;;  %v6113_v38 = vmul.f32 %v3740_v62, %v6053_v4  ;;  %v6116_v35 = vmul.f32 %v3746_v58, %v6061_v26  ;;  %4732 = vtanh.f32 %v3814_v33 }
0x1248   : > { %v3839_v20 = vmul.f32 0.7978846, %v3807_v53  ;;  %4734 = vtanh.f32 %v3818_v9  ;;  %v6120_v47 = vmul.f32 %v3877_v34, %v5882_v46  ;;  %v6123_v54 = vmul.f32 %v3881_v41, %v5900_v6 }
0x1249   : > { %v3779_v28 = vmul.f32 %v3747_v7, %v6095_v60  ;;  %v6125_v43 = vpop.eup %4722  ;;  %4736 = vtanh.f32 %v3841_v42  ;;  %v6128_v16 = vmul.f32 %v3744_v40, %v6072_v30  ;;  %v3784_v62 = vadd.f32 %v5948_v51, %v5888_v2 }
0x124a   : > { %v3788_v58 = vadd.f32 %v5991_v36, %v5923_v14  ;;  %v6134_v12 = vpop.eup %4724  ;;  %v3748_v48 = vmul.f32 %v3716_v23, %v6105_v61  ;;  %v3941_v6 = vpack.c.bf16 %v6123_v54, %v6120_v47  ;;  %v6141_v55 = vmul.f32 0.5, %v5888_v2 }
0x124b   : > { %v3811_v46 = vadd.f32 %v3779_v28, %v6095_v60  ;;  %v3816_v42 = vmul.f32 0.7978846, %v3784_v62  ;;  %v3790_v51 = vadd.f32 %v5953_v56, %v5892_v8  ;;  %v3794_v36 = vadd.f32 %v5994_v32, %v5932_v63 }
0x124c   : > { %v3820_v40 = vmul.f32 0.7978846, %v3788_v58  ;;  %v6147_v1 = vpop.eup %4726  ;;  %4738 = vtanh.f32 %v3839_v20  ;;  %v3655_v53 = vmul.f32 0.5, %v5877_v3  ;;  %v3659_v33 = vmul.f32 0.5, %v5894_v29 }
0x124d   : > { %v3879_v9 = vadd.f32 1.0, %v6017_v10  ;;  %v6152_v34 = vpop.eup %4728  ;;  %4740 = vtanh.f32 %v3816_v42  ;;  %v3822_v2 = vmul.f32 0.7978846, %v3790_v51  ;;  %v3826_v7 = vmul.f32 0.7978846, %v3794_v36 }
0x124e   : > { %v3883_v23 = vadd.f32 1.0, %v6055_v22  ;;  %v3843_v56 = vmul.f32 0.7978846, %v3811_v46  ;;  %v3661_v32 = vmul.f32 0.5, %v5886_v39  ;;  %v3665_v20 = vmul.f32 0.5, %v5906_v18 }
0x124f   : > { %v6155_v41 = vmul.f32 %v3879_v9, %v3655_v53  ;;  %4742 = vtanh.f32 %v3820_v40  ;;  %v3885_v29 = vadd.f32 1.0, %v6047_v21  ;;  %v3889_v10 = vadd.f32 1.0, %v6063_v25  ;;  %v6163_v28 = vpop.eup %4730 }
0x1250   : > { %v6159_v3 = vmul.f32 %v3883_v23, %v3659_v33  ;;  %v3660_v62 = vmul.f32 0.5, %v5923_v14  ;;  %v3662_v22 = vmul.f32 0.5, %v5892_v8  ;;  %4744 = vtanh.f32 %v3822_v2  ;;  %v6371_v33 = vld [vmem:[#allocation18_spill] sm:$0xff] }
0x1251   : > { %v3792_v58 = vadd.f32 %v6004_v5, %v5959_v52  ;;  %v4733_v39 = vpop.eup %4732  ;;  %4746 = vtanh.f32 %v3826_v7  ;;  %v6171_v46 = vmul.f32 %v3885_v29, %v3661_v32  ;;  %v6173_v21 = vmul.f32 %v3889_v10, %v3665_v20  ;;  %v6372_v7 = vld [vmem:[#allocation19_spill] sm:$0xff]  ;;  %v6373_v32 = vld [vmem:[#allocation20_spill] sm:$0xff] }
0x1252   : > { %v3943_v18 = vpack.c.bf16 %v6159_v3, %v6155_v41  ;;  %v4735_v25 = vpop.eup %4734  ;;  %v3878_v42 = vadd.f32 1.0, %v4733_v39  ;;  %v6176_v40 = vmul.f32 %v3748_v48, %v6105_v61  ;;  %v3796_v8 = vadd.f32 %v6040_v11, %v5980_v15 }
0x1253   : > { %v3824_v14 = vmul.f32 0.7978846, %v3792_v58  ;;  %v6180_v51 = vpop.eup %4736  ;;  %4748 = vtanh.f32 %v3843_v56  ;;  %v3882_v5 = vadd.f32 1.0, %v4735_v25  ;;  %v3945_v36 = vpack.c.bf16 %v6173_v21, %v6171_v46  ;;  %v6374_v56 = vld [vmem:[#allocation22_spill] sm:$0xff] }
0x1254   : > { %v3798_v53 = vadd.f32 %v6027_v24, %v5966_v59  ;;  %v3910_v9 = vmul.f32 %v3878_v42, %v6371_v33  ;;  %v3828_v2 = vmul.f32 0.7978846, %v3796_v8  ;;  %v3802_v48 = vadd.f32 %v6079_v0, %v5986_v45 }
0x1255   : > { %4750 = vtanh.f32 %v3824_v14  ;;  %v3914_v11 = vmul.f32 %v3882_v5, %v6372_v7  ;;  %v3663_v20 = vmul.f32 0.5, %v6373_v32  ;;  %v3667_v29 = vmul.f32 0.5, %v6374_v56 }
0x1256   : > { %v3830_v23 = vmul.f32 0.7978846, %v3798_v53  ;;  %v6192_v10 = vpop.eup %4738  ;;  %4752 = vtanh.f32 %v3828_v2  ;;  %v3834_v58 = vmul.f32 0.7978846, %v3802_v48  ;;  %v3887_v24 = vadd.f32 1.0, %v6074_v44  ;;  %v6375_v2 = vld [vmem:[#allocation21_spill] sm:$0xff] }
0x1257   : > { %v3891_v39 = vadd.f32 1.0, %v6125_v43  ;;  %v4741_v25 = vpop.eup %4740  ;;  %v3942_v42 = vpack.c.bf16 %v3914_v11, %v3910_v9  ;;  %v3666_v8 = vmul.f32 0.5, %v5932_v63  ;;  %v3664_v0 = vmul.f32 0.5, %v5959_v52  ;;  %v6376_v44 = vld [vmem:[#allocation23_spill] sm:$0xff] }
0x1258   : > { %4754 = vtanh.f32 %v3830_v23  ;;  %v3880_v14 = vadd.f32 1.0, %v4741_v25  ;;  %v6198_v5 = vmul.f32 %v3887_v24, %v3663_v20  ;;  %v3669_v48 = vmul.f32 0.5, %v6375_v2 }
0x1259   : > { %4756 = vtanh.f32 %v3834_v58  ;;  %v6200_v53 = vmul.f32 %v3891_v39, %v3667_v29  ;;  %v4743_v33 = vpop.eup %4742  ;;  %3973 = vmatprep.subr.bf16.mxu0 %v3942_v42  ;;  %v3673_v7 = vmul.f32 0.5, %v6376_v44  ;;  %v3893_v43 = vadd.f32 1.0, %v6091_v37  ;;  %v6377_v44 = vld [vmem:[#allocation24_spill] sm:$0xff] }
0x125a   : > { %v3897_v9 = vadd.f32 1.0, %v6134_v12  ;;  %v4745_v63 = vpop.eup %4744  ;;  %3974 = vmatpush1.bf16.msra.mxu0 %v3941_v6  ;;  %v3884_v52 = vadd.f32 1.0, %v4743_v33  ;;  %v3668_v11 = vmul.f32 0.5, %v5980_v15  ;;  %v3800_v32 = vadd.f32 %v6084_v31, %v6015_v49 }
0x125b   : > { %v3947_v23 = vpack.c.bf16 %v6200_v53, %v6198_v5  ;;  %v4747_v20 = vpop.eup %4746  ;;  %v3886_v56 = vadd.f32 1.0, %v4745_v63  ;;  %v6214_v29 = vmul.f32 %v3893_v43, %v3669_v48  ;;  %v3804_v12 = vadd.f32 %v6113_v38, %v6053_v4 }
0x125c   : > { %v6216_v37 = vmul.f32 %v3897_v9, %v3673_v7  ;;  %v3912_v47 = vmul.f32 %v3880_v14, %v6141_v55  ;;  %v3916_v54 = vmul.f32 %v3884_v52, %v3660_v62  ;;  %v3890_v6 = vadd.f32 1.0, %v4747_v20 }
0x125d   : > { %v3832_v15 = vmul.f32 0.7978846, %v3800_v32  ;;  %v4749_v58 = vpop.eup %4748  ;;  %v3918_v24 = vmul.f32 %v3886_v56, %v3662_v22  ;;  %v3670_v39 = vmul.f32 0.5, %v5966_v59  ;;  %v3836_v25 = vmul.f32 0.7978846, %v3804_v12 }
0x125e   : > { %v3949_v31 = vpack.c.bf16 %v6216_v37, %v6214_v29  ;;  %v3944_v33 = vpack.c.bf16 %v3916_v54, %v3912_v47  ;;  %v3922_v2 = vmul.f32 %v3890_v6, %v3666_v8  ;;  %v3806_v38 = vadd.f32 %v6087_v17, %v6022_v13 }
0x125f   : > { %v4751_v42 = vpop.eup %4750  ;;  %4758 = vtanh.f32 %v3832_v15  ;;  %v3674_v55 = vmul.f32 0.5, %v5986_v45  ;;  %v3810_v62 = vadd.f32 %v6116_v35, %v6061_v26  ;;  %v3671_v7 = vmul.f32 0.5, %v6377_v44 }
0x1260   : > { %v3888_v48 = vadd.f32 1.0, %v4751_v42  ;;  %4760 = vtanh.f32 %v3836_v25  ;;  %v4753_v22 = vpop.eup %4752  ;;  %4026 = vmatprep.subr.bf16.mxu1 %v3944_v33  ;;  %v3946_v59 = vpack.c.bf16 %v3922_v2, %v3918_v24  ;;  %v3838_v14 = vmul.f32 0.7978846, %v3806_v38 }
0x1261   : > { %v3895_v43 = vadd.f32 1.0, %v6147_v1  ;;  %4027 = vmatpush1.bf16.msra.mxu1 %v3943_v18  ;;  %v3892_v17 = vadd.f32 1.0, %v4753_v22  ;;  %v3842_v9 = vmul.f32 0.7978846, %v3810_v62  ;;  %v3675_v45 = vmul.f32 0.5, %v6032_v57  ;;  %v4594_v22 = vld [vmem:[%s6319_s15] sm:$0xff]  }
0x1262   : > { %v4755_v8 = vpop.eup %4754  ;;  %v3899_v63 = vadd.f32 1.0, %v6163_v28  ;;  %3975 = vmatprep.subr.bf16.mxu0 %v3946_v59  ;;  %v3920_v52 = vmul.f32 %v3888_v48, %v3664_v0  ;;  %4762 = vtanh.f32 %v3838_v14  ;;  %v3677_v3 = vmul.f32 0.5, %v6012_v27 }
0x1263   : > { %v4757_v35 = vpop.eup %4756  ;;  %v3894_v32 = vadd.f32 1.0, %v4755_v8  ;;  %v3927_v20 = vmul.f32 %v3895_v43, %v3671_v7  ;;  %3976 = vmatpush1.bf16.msra.mxu0 %v3945_v36  ;;  %v3924_v1 = vmul.f32 %v3892_v17, %v3668_v11  ;;  %4764 = vtanh.f32 %v3842_v9  ;;  %v4595_v9 = vld [vmem:[%s6319_s15 + $0x8] sm:$0xff]  }
0x1264   : > { %v3898_v56 = vadd.f32 1.0, %v4757_v35  ;;  %v3931_v41 = vmul.f32 %v3899_v63, %v3675_v45  ;;  %v3681_v57 = vmul.f32 0.5, %v6037_v19  ;;  %v3901_v28 = vadd.f32 1.0, %v6152_v34  ;;  %v4098_v35 = vpop.permute.xlu1 %4097 }
0x1265   : > { %v3905_v18 = vadd.f32 1.0, %v6180_v51  ;;  %v3948_v0 = vpack.c.bf16 %v3924_v1, %v3920_v52  ;;  %v3926_v29 = vmul.f32 %v3894_v32, %v3670_v39  ;;  %v3808_v46 = vadd.f32 %v6128_v16, %v6072_v30  ;;  %v6379_v52 = vld [vmem:[#allocation2_spill] sm:$0xff] }
0x1266   : > { %v3930_v37 = vmul.f32 %v3898_v56, %v3674_v55  ;;  %v3951_v12 = vpack.c.bf16 %v3931_v41, %v3927_v20  ;;  %v3933_v47 = vmul.f32 %v3901_v28, %v3677_v3  ;;  %v3812_v27 = vadd.f32 %v6176_v40, %v6105_v61  ;;  %v6380_v20 = vld [vmem:[#allocation4_spill] sm:$0xff]  ;;  %v6381_v3 = vld [vmem:[#allocation3_spill] sm:$0xff] }
0x1267   : > { %v3937_v54 = vmul.f32 %v3905_v18, %v3681_v57  ;;  %4028 = vmatprep.subr.bf16.mxu1 %v3948_v0  ;;  %v3679_v19 = vmul.f32 0.5, %v6068_v50  ;;  %v3683_v34 = vmul.f32 0.5, %v6095_v60  ;;  %v3840_v11 = vmul.f32 0.7978846, %v3808_v46  ;;  %v6382_v28 = vld [vmem:[#allocation8_spill] sm:$0xff] }
0x1268   : > { %v3950_v21 = vpack.c.bf16 %v3930_v37, %v3926_v29  ;;  %4029 = vmatpush1.bf16.msra.mxu1 %v3947_v23  ;;  %v3903_v6 = vadd.f32 1.0, %v6192_v10  ;;  %v3907_v15 = vadd.f32 1.0, %v4749_v58  ;;  %v3672_v24 = vmul.f32 0.5, %v6015_v49  ;;  %v6383_v37 = vld [vmem:[#allocation5_spill] sm:$0xff] }
0x1269   : > { %v4759_v36 = vpop.eup %4758  ;;  %v3953_v51 = vpack.c.bf16 %v3937_v54, %v3933_v47  ;;  %v3676_v40 = vmul.f32 0.5, %v6053_v4  ;;  %v3844_v50 = vmul.f32 0.7978846, %v3812_v27  ;;  %4766 = vtanh.f32 %v3840_v11  ;;  %v6384_v47 = vld [vmem:[#allocation9_spill] sm:$0xff] }
0x126a   : > { %v4761_v16 = vpop.eup %4760  ;;  %3977 = vmatprep.subr.bf16.mxu0 %v3950_v21  ;;  %v3896_v39 = vadd.f32 1.0, %v4759_v36  ;;  %v3935_v25 = vmul.f32 %v3903_v6, %v3679_v19  ;;  %v3939_v42 = vmul.f32 %v3907_v15, %v3683_v34  ;;  %v3678_v38 = vmul.f32 0.5, %v6022_v13  ;;  %v6385_v34 = vld [vmem:[#allocation6_spill] sm:$0xff]  ;;  %v4103_v6 = vpop.permute.xlu0 %4102 }
0x126b   : > { %3978 = vmatpush1.bf16.msra.mxu0 %v3949_v31  ;;  %v3900_v60 = vadd.f32 1.0, %v4761_v16  ;;  %4768 = vtanh.f32 %v3844_v50  ;;  %v3682_v49 = vmul.f32 0.5, %v6061_v26  ;;  %v3680_v44 = vmul.f32 0.5, %v6072_v30 }
0x126c   : > { %v4763_v5 = vpop.eup %4762  ;;  %v3928_v53 = vmul.f32 %v3896_v39, %v3672_v24  ;;  %v3955_v33 = vpack.c.bf16 %v3939_v42, %v3935_v25  ;;  %v3684_v13 = vmul.f32 0.5, %v6105_v61  ;;  %v6378_v8 = vmov 0   ;;  %v6386_v24 = vld [vmem:[#allocation7_spill] sm:$0xff] }
0x126d   : > { %v3932_v23 = vmul.f32 %v3900_v60, %v3676_v40  ;;  %v4765_v10 = vpop.eup %4764  ;;  %v3902_v58 = vadd.f32 1.0, %v4763_v5 }
0x126e   : > { %v3906_v4 = vadd.f32 1.0, %v4765_v10 }
0x126f   : > { %v3952_v2 = vpack.c.bf16 %v3932_v23, %v3928_v53  ;;  %v3934_v48 = vmul.f32 %v3902_v58, %v3678_v38  ;;  %v6387_v23 = vld [vmem:[#allocation10_spill] sm:$0xff] }
0x1270   : > { %v3938_v31 = vmul.f32 %v3906_v4, %v3682_v49 }
0x1271   : > { %4030 = vmatprep.subr.bf16.mxu1 %v3952_v2  ;;  %v6388_v2 = vld [vmem:[#allocation11_spill] sm:$0xff] }
0x1272   : > { %4031 = vmatpush1.bf16.msra.mxu1 %v3951_v12  ;;  %v3954_v55 = vpack.c.bf16 %v3938_v31, %v3934_v48  ;;  %v6389_v31 = vld [vmem:[#allocation13_spill] sm:$0xff] }
0x1273   : > { %v4767_v62 = vpop.eup %4766 }
0x1274   : > { %3979 = vmatprep.subr.bf16.mxu0 %v3954_v55  ;;  %v3904_v14 = vadd.f32 1.0, %v4767_v62  ;;  %v6390_v62 = vld [vmem:[#allocation12_spill] sm:$0xff] }
0x1275   : > { %v4769_v59 = vpop.eup %4768  ;;  %3980 = vmatpush1.bf16.msra.mxu0 %v3953_v51 }
0x1276   : > { %v3908_v26 = vadd.f32 1.0, %v4769_v59  ;;  %v3936_v7 = vmul.f32 %v3904_v14, %v3680_v44  ;;  %v4108_v14 = vpop.permute.xlu1 %4107 }
0x1278   : > { %4304 = vmatmul.mubr.msk.bf16.vlgmr.msra.gmra.mrb[88].mxu0 %vm1123_vm3, %v4594_v22  ;;  %v3940_v43 = vmul.f32 %v3908_v26, %v3684_v13  ;;  %v6391_v13 = vld [vmem:[#allocation15_spill] sm:$0xff] }
0x1279   : > { %4015 = vmatprep.mubr.bf16.mxu0 %v6378_v8 }
0x127a   : > { %v3956_v17 = vpack.c.bf16 %v3940_v43, %v3936_v7  ;;  %v6392_v7 = vld [vmem:[#allocation14_spill] sm:$0xff] }
0x127c   : > { %4032 = vmatprep.subr.bf16.mxu1 %v3956_v17 }
0x127d   : > { %4033 = vmatpush1.bf16.msra.mxu1 %v3955_v33 }
0x1280   : > { %4306 = vmatmul.mubr.msk.bf16.vlgmr.msra.gmra.mrb[80].mxu1 %vm1123_vm3, %v4594_v22  ;;  %4305 = vmatmul.mubr.msk.bf16.gmra.mrb[92].mxu0 %vm1123_vm3, %v4595_v9 }
0x1281   : > { %4068 = vmatprep.mubr.bf16.mxu1 %v6378_v8 }
0x1288   : > { %4307 = vmatmul.mubr.msk.bf16.gmra.mrb[84].mxu1 %vm1123_vm3, %v4595_v9 }
0x134b   : > { %v4007_v30 = vpop.f32.mrb[88].mxu0 }
0x134c   : > { %v4009_v61 = vpop.f32.mrb[89].mxu0  ;;  %v4079_v32 = vadd.f32 %v4007_v30, %v6379_v52  ;;  %v6393_v30 = vld [vmem:[#allocation16_spill] sm:$0xff] }
0x134d   : > { %v4011_v45 = vpop.f32.mrb[90].mxu0  ;;  %v4080_v1 = vadd.f32 %v4009_v61, %v6380_v20 }
0x134e   : > { %v4013_v63 = vpop.f32.mrb[91].mxu0  ;;  %v4083_v57 = vadd.f32 %v4011_v45, %v6381_v3  ;;  %v4115_v27 = vadd.f32 %v4098_v35, %v4079_v32  ;;  %v6394_v32 = vld [vmem:[#allocation17_spill] sm:$0xff] }
0x134f   : > { %v4084_v12 = vadd.f32 %v4013_v63, %v6383_v37  ;;  %v4116_v15 = vadd.f32 %v4098_v35, %v4080_v1  ;;  %v4113_v63 = vpop.permute.xlu0 %4112 }
0x1350   : > { %v4119_v39 = vadd.f32 %v4103_v6, %v4083_v57 }
0x1351   : > { %v4120_v25 = vadd.f32 %v4103_v6, %v4084_v12 }
0x1353   : > { %v4060_v56 = vpop.f32.mrb[80].mxu1  ;;  %v4017_v41 = vpop.f32.mrb[92].mxu0 }
0x1354   : > { %v4081_v18 = vadd.f32 %v4060_v56, %v6382_v28  ;;  %v4062_v0 = vpop.f32.mrb[81].mxu1  ;;  %v4019_v29 = vpop.f32.mrb[93].mxu0  ;;  %v4087_v33 = vadd.f32 %v4017_v41, %v6387_v23 }
0x1355   : > { %v4082_v54 = vadd.f32 %v4062_v0, %v6384_v47  ;;  %v4064_v46 = vpop.f32.mrb[82].mxu1  ;;  %v4021_v21 = vpop.f32.mrb[94].mxu0  ;;  %v4088_v38 = vadd.f32 %v4019_v29, %v6388_v2 }
0x1356   : > { %v4117_v19 = vadd.f32 %v4098_v35, %v4081_v18  ;;  %v4085_v36 = vadd.f32 %v4064_v46, %v6385_v34  ;;  %v4066_v51 = vpop.f32.mrb[83].mxu1  ;;  %v4023_v11 = vpop.f32.mrb[95].mxu0  ;;  %v4091_v55 = vadd.f32 %v4021_v21, %v6389_v31  ;;  %v4123_v17 = vadd.f32 %v4108_v14, %v4087_v33 }
0x1357   : > { %v4118_v16 = vadd.f32 %v4098_v35, %v4082_v54  ;;  %v4086_v40 = vadd.f32 %v4066_v51, %v6386_v24  ;;  %v4092_v26 = vadd.f32 %v4023_v11, %v6391_v13  ;;  %v4124_v35 = vadd.f32 %v4108_v14, %v4088_v38 }
0x1358   : > { %v4131_v50 = vsub.f32 %v4117_v19, %v4115_v27  ;;  %v4121_v60 = vadd.f32 %v4103_v6, %v4085_v36  ;;  %v4127_v1 = vadd.f32 %v4113_v63, %v4091_v55 }
0x1359   : > { %v4132_v42 = vsub.f32 %v4118_v16, %v4116_v15  ;;  %v4122_v5 = vadd.f32 %v4103_v6, %v4086_v40  ;;  %v4128_v3 = vadd.f32 %v4113_v63, %v4092_v26 }
0x135a   : > { %v4139_v53 = vand.u32 2147483647, %v4131_v50  ;;  %v4133_v10 = vsub.f32 %v4121_v60, %v4119_v39 }
0x135b   : > { %v4140_v58 = vand.u32 2147483647, %v4132_v42  ;;  %v4134_v49 = vsub.f32 %v4122_v5, %v4120_v25  ;;  %v4070_v4 = vpop.f32.mrb[84].mxu1 }
0x135c   : > { %4147 = vst [vmem:[%s6283_s30] sm:$0xff] %v4139_v53  ;;  %v4141_v48 = vand.u32 2147483647, %v4133_v10  ;;  %v4089_v22 = vadd.f32 %v4070_v4, %v6390_v62  ;;  %v4072_v59 = vpop.f32.mrb[85].mxu1 }
0x135d   : > { %4148 = vst [vmem:[%s6283_s30 + $0x8] sm:$0xff] %v4140_v58  ;;  %v4142_v44 = vand.u32 2147483647, %v4134_v49  ;;  %v4090_v43 = vadd.f32 %v4072_v59, %v6392_v7  ;;  %v4074_v8 = vpop.f32.mrb[86].mxu1 }
0x135e   : > { %4149 = vst [vmem:[%s6283_s30 + $0x10] sm:$0xff] %v4141_v48  ;;  %v4125_v9 = vadd.f32 %v4108_v14, %v4089_v22  ;;  %v4093_v61 = vadd.f32 %v4074_v8, %v6393_v30  ;;  %v4076_v45 = vpop.f32.mrb[87].mxu1 }
0x135f   : > { %4150 = vst [vmem:[%s6283_s30 + $0x18] sm:$0xff] %v4142_v44  ;;  %v4126_v52 = vadd.f32 %v4108_v14, %v4090_v43  ;;  %v4094_v20 = vadd.f32 %v4076_v45, %v6394_v32 }
0x1360   : > { %v4135_v56 = vsub.f32 %v4125_v9, %v4123_v17  ;;  %v4129_v41 = vadd.f32 %v4113_v63, %v4093_v61 }
0x1361   : > { %v4136_v57 = vsub.f32 %v4126_v52, %v4124_v35  ;;  %v4130_v28 = vadd.f32 %v4113_v63, %v4094_v20 }
0x1362   : > { %v4143_v18 = vand.u32 2147483647, %v4135_v56  ;;  %v4137_v0 = vsub.f32 %v4129_v41, %v4127_v1 }
0x1363   : > { %v4144_v29 = vand.u32 2147483647, %v4136_v57  ;;  %v4138_v37 = vsub.f32 %v4130_v28, %v4128_v3 }
0x1364   : > { %4151 = vst [vmem:[%s6283_s30 + $0x20] sm:$0xff] %v4143_v18  ;;  %v4145_v12 = vand.u32 2147483647, %v4137_v0 }
0x1365   : > { %4152 = vst [vmem:[%s6283_s30 + $0x28] sm:$0xff] %v4144_v29  ;;  %v4146_v47 = vand.u32 2147483647, %v4138_v37 }
0x1366   : > { %4153 = vst [vmem:[%s6283_s30 + $0x30] sm:$0xff] %v4145_v12 }
0x1367   : > { %4154 = vst [vmem:[%s6283_s30 + $0x38] sm:$0xff] %v4146_v47 }
0x1368 PF: > { %s26_s21 = sadd.s32 1, %s4793_s21  }
0x1369   : > { %p23_p4 = scmp.ge.s32.totalorder %s26_s21, 4  }
0x136b   :  { %25 = sbr.rel (!%p23_p4) target bundleno = 2 (0x2), region = 114 }

</bundles_post_ra>
